<compile_context>
chip_gen: v5e
topology: v5e:2x2
jax: 0.10.0
libtpu: 0.0.40
codegen_flags: <defaults>
</compile_context>

<pallas_src>
import jax
import jax.numpy as jnp
from jax import lax
from jax.experimental import pallas as pl
from jax.experimental.pallas import tpu as pltpu

BN_EPS = 1e-5
LRELU_SLOPE = 0.01  # F.leaky_relu default


# ---------------------------------------------------------------------------
# Fused Pallas kernel: whole forward pass, whole batch, single grid step.
# ---------------------------------------------------------------------------
def cnn_kernel(x_ref,
               w1_ref, b1_ref, g1_ref, be1_ref,
               w2_ref, b2_ref, g2_ref, be2_ref,
               w3_ref, b3_ref, g3_ref, be3_ref,
               w4_ref, b4_ref,
               out_ref):

    def linear(h, w_ref, b_ref):
        # (B, Din) @ (Din, Dout) on the MXU, f32 accumulation, + bias (1, Dout)
        return jnp.dot(h, w_ref[...], preferred_element_type=jnp.float32) + b_ref[...]

    def bn_lrelu(h, g_ref, be_ref):
        # BatchNorm1d with batch statistics (training-mode forward), then LeakyReLU.
        mean = jnp.mean(h, axis=0, keepdims=True)
        var = jnp.mean(jnp.square(h - mean), axis=0, keepdims=True)  # biased variance
        hn = (h - mean) * lax.rsqrt(var + BN_EPS) * g_ref[...] + be_ref[...]
        return jnp.where(hn >= 0, hn, LRELU_SLOPE * hn)

    h = bn_lrelu(linear(x_ref[...], w1_ref, b1_ref), g1_ref, be1_ref)
    h = bn_lrelu(linear(h, w2_ref, b2_ref), g2_ref, be2_ref)
    h = bn_lrelu(linear(h, w3_ref, b3_ref), g3_ref, be3_ref)

    logits = linear(h, w4_ref, b4_ref)
    # softmax over the class dim
    m = jnp.max(logits, axis=-1, keepdims=True)
    e = jnp.exp(logits - m)
    out_ref[...] = (e / jnp.sum(e, axis=-1, keepdims=True)).astype(out_ref.dtype)


def cnn_forward(feature, params):
    """feature: (B, input_size). params: nested tuples of pre-transposed weights.

    Returns softmax probabilities of shape (B, n_classes)."""
    (w1, b1, g1, be1), (w2, b2, g2, be2), (w3, b3, g3, be3), (w4, b4) = params
    B, D0 = feature.shape
    D1, D2, D3 = w1.shape[1], w2.shape[1], w3.shape[1]
    C = w4.shape[1]

    def full(shape):
        # Whole-array block, loaded once into VMEM (single grid step).
        return pl.BlockSpec(shape, lambda i, _s=shape: (0,) * len(_s))

    return pl.pallas_call(
        cnn_kernel,
        out_shape=jax.ShapeDtypeStruct((B, C), jnp.float32),
        grid_spec=pltpu.PrefetchScalarGridSpec(
            num_scalar_prefetch=0,
            grid=(1,),
            in_specs=[
                full((B, D0)),                                             # feature
                full((D0, D1)), full((1, D1)), full((1, D1)), full((1, D1)),  # fc1+bn1
                full((D1, D2)), full((1, D2)), full((1, D2)), full((1, D2)),  # fc2+bn2
                full((D2, D3)), full((1, D3)), full((1, D3)), full((1, D3)),  # fc3+bn3
                full((D3, C)), full((1, C)),                                  # fc4
            ],
            out_specs=full((B, C)),
        ),
        compiler_params=pltpu.CompilerParams(
            dimension_semantics=("arbitrary",)),
    )(feature,
      w1, b1, g1, be1,
      w2, b2, g2, be2,
      w3, b3, g3, be3,
      w4, b4)


# ---------------------------------------------------------------------------
# Pure-JAX reference for a correctness check.
# ---------------------------------------------------------------------------
def ref_forward(feature, params):
    (w1, b1, g1, be1), (w2, b2, g2, be2), (w3, b3, g3, be3), (w4, b4) = params

    def dot(a, b):
        return jnp.dot(a, b, precision=lax.Precision.HIGHEST)

    def bn_lrelu(h, g, be):
        mean = jnp.mean(h, axis=0, keepdims=True)
        var = jnp.mean(jnp.square(h - mean), axis=0, keepdims=True)
        hn = (h - mean) / jnp.sqrt(var + BN_EPS) * g + be
        return jax.nn.leaky_relu(hn, negative_slope=LRELU_SLOPE)

    h = bn_lrelu(dot(feature, w1) + b1, g1, be1)
    h = bn_lrelu(dot(h, w2) + b2, g2, be2)
    h = bn_lrelu(dot(h, w3) + b3, g3, be3)
    return jax.nn.softmax(dot(h, w4) + b4, axis=-1)


# ---------------------------------------------------------------------------
if __name__ == "__main__":
    # Module config: CNN(n_classes=10, input_size=1024)
    INPUT_SIZE = 1024          # hidden sizes: 512, 256, 128 (lane-dense)
    N_CLASSES = 10
    B = 64                     # small batch, multiple of 8 sublanes

    dims = [INPUT_SIZE, INPUT_SIZE // 2, INPUT_SIZE // 4, INPUT_SIZE // 8, N_CLASSES]

    key = jax.random.PRNGKey(0)
    keys = jax.random.split(key, 1 + 4 * 4)
    feature = jax.random.normal(keys[0], (B, INPUT_SIZE), jnp.float32)

    # Deterministic synthetic parameters.  Weights are stored pre-transposed as
    # (D_in, D_out) so the kernel does plain row-major matmuls.
    params = []
    kidx = 1
    for layer in range(4):
        d_in, d_out = dims[layer], dims[layer + 1]
        w = 0.02 * jax.random.normal(keys[kidx + 0], (d_in, d_out), jnp.float32)
        b = 0.01 * jax.random.normal(keys[kidx + 1], (1, d_out), jnp.float32)
        if layer < 3:
            g = 1.0 + 0.1 * jax.random.normal(keys[kidx + 2], (1, d_out), jnp.float32)
            be = 0.1 * jax.random.normal(keys[kidx + 3], (1, d_out), jnp.float32)
            params.append((w, b, g, be))
        else:
            params.append((w, b))
        kidx += 4

    out = jax.block_until_ready(cnn_forward(feature, params))
    assert out.shape == (B, N_CLASSES), out.shape

    ref = jax.block_until_ready(ref_forward(feature, params))
    max_err = float(jnp.max(jnp.abs(out - ref)))
    assert max_err < 1e-3, f"max abs error too large: {max_err}"
    # probabilities should sum to 1
    assert float(jnp.max(jnp.abs(jnp.sum(out, axis=-1) - 1.0))) < 1e-4

    print("KERNEL_OK")
</pallas_src>

<mosaic_0001>
module attributes {stable_mosaic.version = 11 : i64} {
  func.func @cnn_kernel(%arg0: i32, %arg1: memref<64x1024xf32, #tpu.memory_space<vmem>>, %arg2: memref<1024x512xf32, #tpu.memory_space<vmem>>, %arg3: memref<1x512xf32, #tpu.memory_space<vmem>>, %arg4: memref<1x512xf32, #tpu.memory_space<vmem>>, %arg5: memref<1x512xf32, #tpu.memory_space<vmem>>, %arg6: memref<512x256xf32, #tpu.memory_space<vmem>>, %arg7: memref<1x256xf32, #tpu.memory_space<vmem>>, %arg8: memref<1x256xf32, #tpu.memory_space<vmem>>, %arg9: memref<1x256xf32, #tpu.memory_space<vmem>>, %arg10: memref<256x128xf32, #tpu.memory_space<vmem>>, %arg11: memref<1x128xf32, #tpu.memory_space<vmem>>, %arg12: memref<1x128xf32, #tpu.memory_space<vmem>>, %arg13: memref<1x128xf32, #tpu.memory_space<vmem>>, %arg14: memref<128x10xf32, #tpu.memory_space<vmem>>, %arg15: memref<1x10xf32, #tpu.memory_space<vmem>>, %arg16: memref<64x10xf32, #tpu.memory_space<vmem>>) attributes {dimension_semantics = [#tpu.dimension_semantics<arbitrary>], iteration_bounds = array<i64: 1>, scalar_prefetch = 0 : i64, scratch_operands = 0 : i64, tpu.core_type = #tpu.core_type<tc>, window_params = [{pipeline_mode = #tpu.pipeline_mode<synchronous>, transform_indices = @transform_0, window_bounds = array<i64: 64, 1024>}, {pipeline_mode = #tpu.pipeline_mode<synchronous>, transform_indices = @transform_1, window_bounds = array<i64: 1024, 512>}, {pipeline_mode = #tpu.pipeline_mode<synchronous>, transform_indices = @transform_2, window_bounds = array<i64: 1, 512>}, {pipeline_mode = #tpu.pipeline_mode<synchronous>, transform_indices = @transform_3, window_bounds = array<i64: 1, 512>}, {pipeline_mode = #tpu.pipeline_mode<synchronous>, transform_indices = @transform_4, window_bounds = array<i64: 1, 512>}, {pipeline_mode = #tpu.pipeline_mode<synchronous>, transform_indices = @transform_5, window_bounds = array<i64: 512, 256>}, {pipeline_mode = #tpu.pipeline_mode<synchronous>, transform_indices = @transform_6, window_bounds = array<i64: 1, 256>}, {pipeline_mode = #tpu.pipeline_mode<synchronous>, transform_indices = @transform_7, window_bounds = array<i64: 1, 256>}, {pipeline_mode = #tpu.pipeline_mode<synchronous>, transform_indices = @transform_8, window_bounds = array<i64: 1, 256>}, {pipeline_mode = #tpu.pipeline_mode<synchronous>, transform_indices = @transform_9, window_bounds = array<i64: 256, 128>}, {pipeline_mode = #tpu.pipeline_mode<synchronous>, transform_indices = @transform_10, window_bounds = array<i64: 1, 128>}, {pipeline_mode = #tpu.pipeline_mode<synchronous>, transform_indices = @transform_11, window_bounds = array<i64: 1, 128>}, {pipeline_mode = #tpu.pipeline_mode<synchronous>, transform_indices = @transform_12, window_bounds = array<i64: 1, 128>}, {pipeline_mode = #tpu.pipeline_mode<synchronous>, transform_indices = @transform_13, window_bounds = array<i64: 128, 10>}, {pipeline_mode = #tpu.pipeline_mode<synchronous>, transform_indices = @transform_14, window_bounds = array<i64: 1, 10>}, {pipeline_mode = #tpu.pipeline_mode<synchronous>, transform_indices = @transform_15, window_bounds = array<i64: 64, 10>}]} {
    %c0 = arith.constant 0 : index
    %c0_0 = arith.constant 0 : index
    %0 = vector.load %arg1[%c0, %c0_0] : memref<64x1024xf32, #tpu.memory_space<vmem>>, vector<64x1024xf32>
    %c0_1 = arith.constant 0 : index
    %c0_2 = arith.constant 0 : index
    %1 = vector.load %arg2[%c0_1, %c0_2] : memref<1024x512xf32, #tpu.memory_space<vmem>>, vector<1024x512xf32>
    %cst = arith.constant dense<0.000000e+00> : vector<64x512xf32>
    %2 = tpu.matmul %0, %1, %cst {dimension_numbers = #tpu.dot_dimension_numbers<[1], [0], [0], [1], [0, 0, 1, 1], [], []>} : vector<64x1024xf32>, vector<1024x512xf32>, vector<64x512xf32> -> vector<64x512xf32>
    %c0_3 = arith.constant 0 : index
    %c0_4 = arith.constant 0 : index
    %3 = vector.load %arg3[%c0_3, %c0_4] : memref<1x512xf32, #tpu.memory_space<vmem>>, vector<1x512xf32>
    %4 = vector.broadcast %3 : vector<1x512xf32> to vector<64x512xf32>
    %5 = arith.addf %2, %4 : vector<64x512xf32>
    %cst_5 = arith.constant dense<0.000000e+00> : vector<512xf32>
    %6 = vector.multi_reduction <add>, %5, %cst_5 [0] : vector<64x512xf32> to vector<512xf32>
    %7 = vector.shape_cast %6 : vector<512xf32> to vector<1x512xf32>
    %cst_6 = arith.constant 6.400000e+01 : f32
    %8 = vector.broadcast %cst_6 : f32 to vector<1x512xf32>
    %9 = arith.divf %7, %8 : vector<1x512xf32>
    %10 = vector.broadcast %9 : vector<1x512xf32> to vector<64x512xf32>
    %11 = arith.subf %5, %10 : vector<64x512xf32>
    %12 = arith.mulf %11, %11 : vector<64x512xf32>
    %cst_7 = arith.constant dense<0.000000e+00> : vector<512xf32>
    %13 = vector.multi_reduction <add>, %12, %cst_7 [0] : vector<64x512xf32> to vector<512xf32>
    %14 = vector.shape_cast %13 : vector<512xf32> to vector<1x512xf32>
    %cst_8 = arith.constant 6.400000e+01 : f32
    %15 = vector.broadcast %cst_8 : f32 to vector<1x512xf32>
    %16 = arith.divf %14, %15 : vector<1x512xf32>
    %17 = vector.broadcast %9 : vector<1x512xf32> to vector<64x512xf32>
    %18 = arith.subf %5, %17 : vector<64x512xf32>
    %cst_9 = arith.constant 9.99999974E-6 : f32
    %19 = vector.broadcast %cst_9 : f32 to vector<1x512xf32>
    %20 = arith.addf %16, %19 : vector<1x512xf32>
    %21 = math.rsqrt %20 : vector<1x512xf32>
    %22 = vector.broadcast %21 : vector<1x512xf32> to vector<64x512xf32>
    %23 = arith.mulf %18, %22 : vector<64x512xf32>
    %c0_10 = arith.constant 0 : index
    %c0_11 = arith.constant 0 : index
    %24 = vector.load %arg4[%c0_10, %c0_11] : memref<1x512xf32, #tpu.memory_space<vmem>>, vector<1x512xf32>
    %25 = vector.broadcast %24 : vector<1x512xf32> to vector<64x512xf32>
    %26 = arith.mulf %23, %25 : vector<64x512xf32>
    %c0_12 = arith.constant 0 : index
    %c0_13 = arith.constant 0 : index
    %27 = vector.load %arg5[%c0_12, %c0_13] : memref<1x512xf32, #tpu.memory_space<vmem>>, vector<1x512xf32>
    %28 = vector.broadcast %27 : vector<1x512xf32> to vector<64x512xf32>
    %29 = arith.addf %26, %28 : vector<64x512xf32>
    %cst_14 = arith.constant 0.000000e+00 : f32
    %30 = vector.broadcast %cst_14 : f32 to vector<64x512xf32>
    %31 = arith.cmpf oge, %29, %30 : vector<64x512xf32>
    %cst_15 = arith.constant 0.00999999977 : f32
    %32 = vector.broadcast %cst_15 : f32 to vector<64x512xf32>
    %33 = arith.mulf %32, %29 : vector<64x512xf32>
    %34 = arith.select %31, %29, %33 : vector<64x512xi1>, vector<64x512xf32>
    %c0_16 = arith.constant 0 : index
    %c0_17 = arith.constant 0 : index
    %35 = vector.load %arg6[%c0_16, %c0_17] : memref<512x256xf32, #tpu.memory_space<vmem>>, vector<512x256xf32>
    %cst_18 = arith.constant dense<0.000000e+00> : vector<64x256xf32>
    %36 = tpu.matmul %34, %35, %cst_18 {dimension_numbers = #tpu.dot_dimension_numbers<[1], [0], [0], [1], [0, 0, 1, 1], [], []>} : vector<64x512xf32>, vector<512x256xf32>, vector<64x256xf32> -> vector<64x256xf32>
    %c0_19 = arith.constant 0 : index
    %c0_20 = arith.constant 0 : index
    %37 = vector.load %arg7[%c0_19, %c0_20] : memref<1x256xf32, #tpu.memory_space<vmem>>, vector<1x256xf32>
    %38 = vector.broadcast %37 : vector<1x256xf32> to vector<64x256xf32>
    %39 = arith.addf %36, %38 : vector<64x256xf32>
    %cst_21 = arith.constant dense<0.000000e+00> : vector<256xf32>
    %40 = vector.multi_reduction <add>, %39, %cst_21 [0] : vector<64x256xf32> to vector<256xf32>
    %41 = vector.shape_cast %40 : vector<256xf32> to vector<1x256xf32>
    %cst_22 = arith.constant 6.400000e+01 : f32
    %42 = vector.broadcast %cst_22 : f32 to vector<1x256xf32>
    %43 = arith.divf %41, %42 : vector<1x256xf32>
    %44 = vector.broadcast %43 : vector<1x256xf32> to vector<64x256xf32>
    %45 = arith.subf %39, %44 : vector<64x256xf32>
    %46 = arith.mulf %45, %45 : vector<64x256xf32>
    %cst_23 = arith.constant dense<0.000000e+00> : vector<256xf32>
    %47 = vector.multi_reduction <add>, %46, %cst_23 [0] : vector<64x256xf32> to vector<256xf32>
    %48 = vector.shape_cast %47 : vector<256xf32> to vector<1x256xf32>
    %cst_24 = arith.constant 6.400000e+01 : f32
    %49 = vector.broadcast %cst_24 : f32 to vector<1x256xf32>
    %50 = arith.divf %48, %49 : vector<1x256xf32>
    %51 = vector.broadcast %43 : vector<1x256xf32> to vector<64x256xf32>
    %52 = arith.subf %39, %51 : vector<64x256xf32>
    %cst_25 = arith.constant 9.99999974E-6 : f32
    %53 = vector.broadcast %cst_25 : f32 to vector<1x256xf32>
    %54 = arith.addf %50, %53 : vector<1x256xf32>
    %55 = math.rsqrt %54 : vector<1x256xf32>
    %56 = vector.broadcast %55 : vector<1x256xf32> to vector<64x256xf32>
    %57 = arith.mulf %52, %56 : vector<64x256xf32>
    %c0_26 = arith.constant 0 : index
    %c0_27 = arith.constant 0 : index
    %58 = vector.load %arg8[%c0_26, %c0_27] : memref<1x256xf32, #tpu.memory_space<vmem>>, vector<1x256xf32>
    %59 = vector.broadcast %58 : vector<1x256xf32> to vector<64x256xf32>
    %60 = arith.mulf %57, %59 : vector<64x256xf32>
    %c0_28 = arith.constant 0 : index
    %c0_29 = arith.constant 0 : index
    %61 = vector.load %arg9[%c0_28, %c0_29] : memref<1x256xf32, #tpu.memory_space<vmem>>, vector<1x256xf32>
    %62 = vector.broadcast %61 : vector<1x256xf32> to vector<64x256xf32>
    %63 = arith.addf %60, %62 : vector<64x256xf32>
    %cst_30 = arith.constant 0.000000e+00 : f32
    %64 = vector.broadcast %cst_30 : f32 to vector<64x256xf32>
    %65 = arith.cmpf oge, %63, %64 : vector<64x256xf32>
    %cst_31 = arith.constant 0.00999999977 : f32
    %66 = vector.broadcast %cst_31 : f32 to vector<64x256xf32>
    %67 = arith.mulf %66, %63 : vector<64x256xf32>
    %68 = arith.select %65, %63, %67 : vector<64x256xi1>, vector<64x256xf32>
    %c0_32 = arith.constant 0 : index
    %c0_33 = arith.constant 0 : index
    %69 = vector.load %arg10[%c0_32, %c0_33] : memref<256x128xf32, #tpu.memory_space<vmem>>, vector<256x128xf32>
    %cst_34 = arith.constant dense<0.000000e+00> : vector<64x128xf32>
    %70 = tpu.matmul %68, %69, %cst_34 {dimension_numbers = #tpu.dot_dimension_numbers<[1], [0], [0], [1], [0, 0, 1, 1], [], []>} : vector<64x256xf32>, vector<256x128xf32>, vector<64x128xf32> -> vector<64x128xf32>
    %c0_35 = arith.constant 0 : index
    %c0_36 = arith.constant 0 : index
    %71 = vector.load %arg11[%c0_35, %c0_36] : memref<1x128xf32, #tpu.memory_space<vmem>>, vector<1x128xf32>
    %72 = vector.broadcast %71 : vector<1x128xf32> to vector<64x128xf32>
    %73 = arith.addf %70, %72 : vector<64x128xf32>
    %cst_37 = arith.constant dense<0.000000e+00> : vector<128xf32>
    %74 = vector.multi_reduction <add>, %73, %cst_37 [0] : vector<64x128xf32> to vector<128xf32>
    %75 = vector.shape_cast %74 : vector<128xf32> to vector<1x128xf32>
    %cst_38 = arith.constant 6.400000e+01 : f32
    %76 = vector.broadcast %cst_38 : f32 to vector<1x128xf32>
    %77 = arith.divf %75, %76 : vector<1x128xf32>
    %78 = vector.broadcast %77 : vector<1x128xf32> to vector<64x128xf32>
    %79 = arith.subf %73, %78 : vector<64x128xf32>
    %80 = arith.mulf %79, %79 : vector<64x128xf32>
    %cst_39 = arith.constant dense<0.000000e+00> : vector<128xf32>
    %81 = vector.multi_reduction <add>, %80, %cst_39 [0] : vector<64x128xf32> to vector<128xf32>
    %82 = vector.shape_cast %81 : vector<128xf32> to vector<1x128xf32>
    %cst_40 = arith.constant 6.400000e+01 : f32
    %83 = vector.broadcast %cst_40 : f32 to vector<1x128xf32>
    %84 = arith.divf %82, %83 : vector<1x128xf32>
    %85 = vector.broadcast %77 : vector<1x128xf32> to vector<64x128xf32>
    %86 = arith.subf %73, %85 : vector<64x128xf32>
    %cst_41 = arith.constant 9.99999974E-6 : f32
    %87 = vector.broadcast %cst_41 : f32 to vector<1x128xf32>
    %88 = arith.addf %84, %87 : vector<1x128xf32>
    %89 = math.rsqrt %88 : vector<1x128xf32>
    %90 = vector.broadcast %89 : vector<1x128xf32> to vector<64x128xf32>
    %91 = arith.mulf %86, %90 : vector<64x128xf32>
    %c0_42 = arith.constant 0 : index
    %c0_43 = arith.constant 0 : index
    %92 = vector.load %arg12[%c0_42, %c0_43] : memref<1x128xf32, #tpu.memory_space<vmem>>, vector<1x128xf32>
    %93 = vector.broadcast %92 : vector<1x128xf32> to vector<64x128xf32>
    %94 = arith.mulf %91, %93 : vector<64x128xf32>
    %c0_44 = arith.constant 0 : index
    %c0_45 = arith.constant 0 : index
    %95 = vector.load %arg13[%c0_44, %c0_45] : memref<1x128xf32, #tpu.memory_space<vmem>>, vector<1x128xf32>
    %96 = vector.broadcast %95 : vector<1x128xf32> to vector<64x128xf32>
    %97 = arith.addf %94, %96 : vector<64x128xf32>
    %cst_46 = arith.constant 0.000000e+00 : f32
    %98 = vector.broadcast %cst_46 : f32 to vector<64x128xf32>
    %99 = arith.cmpf oge, %97, %98 : vector<64x128xf32>
    %cst_47 = arith.constant 0.00999999977 : f32
    %100 = vector.broadcast %cst_47 : f32 to vector<64x128xf32>
    %101 = arith.mulf %100, %97 : vector<64x128xf32>
    %102 = arith.select %99, %97, %101 : vector<64x128xi1>, vector<64x128xf32>
    %c0_48 = arith.constant 0 : index
    %c0_49 = arith.constant 0 : index
    %103 = vector.load %arg14[%c0_48, %c0_49] : memref<128x10xf32, #tpu.memory_space<vmem>>, vector<128x10xf32>
    %cst_50 = arith.constant dense<0.000000e+00> : vector<64x10xf32>
    %104 = tpu.matmul %102, %103, %cst_50 {dimension_numbers = #tpu.dot_dimension_numbers<[1], [0], [0], [1], [0, 0, 1, 1], [], []>} : vector<64x128xf32>, vector<128x10xf32>, vector<64x10xf32> -> vector<64x10xf32>
    %c0_51 = arith.constant 0 : index
    %c0_52 = arith.constant 0 : index
    %105 = vector.load %arg15[%c0_51, %c0_52] : memref<1x10xf32, #tpu.memory_space<vmem>>, vector<1x10xf32>
    %106 = vector.broadcast %105 : vector<1x10xf32> to vector<64x10xf32>
    %107 = arith.addf %104, %106 : vector<64x10xf32>
    %cst_53 = arith.constant dense<0xFF800000> : vector<64xf32>
    %108 = vector.multi_reduction <maximumf>, %107, %cst_53 [1] : vector<64x10xf32> to vector<64xf32>
    %109 = vector.shape_cast %108 : vector<64xf32> to vector<64x1xf32>
    %110 = vector.broadcast %109 : vector<64x1xf32> to vector<64x10xf32>
    %111 = arith.subf %107, %110 : vector<64x10xf32>
    %112 = math.exp %111 : vector<64x10xf32>
    %cst_54 = arith.constant dense<0.000000e+00> : vector<64xf32>
    %113 = vector.multi_reduction <add>, %112, %cst_54 [1] : vector<64x10xf32> to vector<64xf32>
    %114 = vector.shape_cast %113 : vector<64xf32> to vector<64x1xf32>
    %115 = vector.broadcast %114 : vector<64x1xf32> to vector<64x10xf32>
    %116 = arith.divf %112, %115 : vector<64x10xf32>
    %c0_55 = arith.constant 0 : index
    %c0_56 = arith.constant 0 : index
    %117 = vector.load %arg16[%c0_55, %c0_56] : memref<64x10xf32, #tpu.memory_space<vmem>>, vector<64x10xf32>
    tpu.vector_store %arg16[%c0_55, %c0_56], %116 {strides = array<i32>} : memref<64x10xf32, #tpu.memory_space<vmem>>, vector<64x10xf32>,
    return
  }
  func.func @transform_0(%arg0: i32) -> (i32, i32) {
    %c0_i32 = arith.constant 0 : i32
    %c0_i32_0 = arith.constant 0 : i32
    %c0_i32_1 = arith.constant 0 : i32
    return %c0_i32, %c0_i32_0 : i32, i32
  }
  func.func @transform_1(%arg0: i32) -> (i32, i32) {
    %c0_i32 = arith.constant 0 : i32
    %c0_i32_0 = arith.constant 0 : i32
    %c0_i32_1 = arith.constant 0 : i32
    return %c0_i32, %c0_i32_0 : i32, i32
  }
  func.func @transform_2(%arg0: i32) -> (i32, i32) {
    %c0_i32 = arith.constant 0 : i32
    %c0_i32_0 = arith.constant 0 : i32
    %c0_i32_1 = arith.constant 0 : i32
    return %c0_i32, %c0_i32_0 : i32, i32
  }
  func.func @transform_3(%arg0: i32) -> (i32, i32) {
    %c0_i32 = arith.constant 0 : i32
    %c0_i32_0 = arith.constant 0 : i32
    %c0_i32_1 = arith.constant 0 : i32
    return %c0_i32, %c0_i32_0 : i32, i32
  }
  func.func @transform_4(%arg0: i32) -> (i32, i32) {
    %c0_i32 = arith.constant 0 : i32
    %c0_i32_0 = arith.constant 0 : i32
    %c0_i32_1 = arith.constant 0 : i32
    return %c0_i32, %c0_i32_0 : i32, i32
  }
  func.func @transform_5(%arg0: i32) -> (i32, i32) {
    %c0_i32 = arith.constant 0 : i32
    %c0_i32_0 = arith.constant 0 : i32
    %c0_i32_1 = arith.constant 0 : i32
    return %c0_i32, %c0_i32_0 : i32, i32
  }
  func.func @transform_6(%arg0: i32) -> (i32, i32) {
    %c0_i32 = arith.constant 0 : i32
    %c0_i32_0 = arith.constant 0 : i32
    %c0_i32_1 = arith.constant 0 : i32
    return %c0_i32, %c0_i32_0 : i32, i32
  }
  func.func @transform_7(%arg0: i32) -> (i32, i32) {
    %c0_i32 = arith.constant 0 : i32
    %c0_i32_0 = arith.constant 0 : i32
    %c0_i32_1 = arith.constant 0 : i32
    return %c0_i32, %c0_i32_0 : i32, i32
  }
  func.func @transform_8(%arg0: i32) -> (i32, i32) {
    %c0_i32 = arith.constant 0 : i32
    %c0_i32_0 = arith.constant 0 : i32
    %c0_i32_1 = arith.constant 0 : i32
    return %c0_i32, %c0_i32_0 : i32, i32
  }
  func.func @transform_9(%arg0: i32) -> (i32, i32) {
    %c0_i32 = arith.constant 0 : i32
    %c0_i32_0 = arith.constant 0 : i32
    %c0_i32_1 = arith.constant 0 : i32
    return %c0_i32, %c0_i32_0 : i32, i32
  }
  func.func @transform_10(%arg0: i32) -> (i32, i32) {
    %c0_i32 = arith.constant 0 : i32
    %c0_i32_0 = arith.constant 0 : i32
    %c0_i32_1 = arith.constant 0 : i32
    return %c0_i32, %c0_i32_0 : i32, i32
  }
  func.func @transform_11(%arg0: i32) -> (i32, i32) {
    %c0_i32 = arith.constant 0 : i32
    %c0_i32_0 = arith.constant 0 : i32
    %c0_i32_1 = arith.constant 0 : i32
    return %c0_i32, %c0_i32_0 : i32, i32
  }
  func.func @transform_12(%arg0: i32) -> (i32, i32) {
    %c0_i32 = arith.constant 0 : i32
    %c0_i32_0 = arith.constant 0 : i32
    %c0_i32_1 = arith.constant 0 : i32
    return %c0_i32, %c0_i32_0 : i32, i32
  }
  func.func @transform_13(%arg0: i32) -> (i32, i32) {
    %c0_i32 = arith.constant 0 : i32
    %c0_i32_0 = arith.constant 0 : i32
    %c0_i32_1 = arith.constant 0 : i32
    return %c0_i32, %c0_i32_0 : i32, i32
  }
  func.func @transform_14(%arg0: i32) -> (i32, i32) {
    %c0_i32 = arith.constant 0 : i32
    %c0_i32_0 = arith.constant 0 : i32
    %c0_i32_1 = arith.constant 0 : i32
    return %c0_i32, %c0_i32_0 : i32, i32
  }
  func.func @transform_15(%arg0: i32) -> (i32, i32) {
    %c0_i32 = arith.constant 0 : i32
    %c0_i32_0 = arith.constant 0 : i32
    %c0_i32_1 = arith.constant 0 : i32
    return %c0_i32, %c0_i32_0 : i32, i32
  }
}

</mosaic_0001>

<bundles_post_ra>
// kernel: tpu_custom_call.1
= control target key start
LH: loop header
LB: loop body
LE: loop exit
PB: predicated region body
PF: predicated region fallthrough
CT: control target
= control target key end

     0   :  { %20 = vsyncpa [#allocation3], 0  ;;  %s6447_s0 = inlined_call_operand.hbm [shape: f32[64,1024], index: 0, kind: input, shape index: {}]   ;;  %s6448_s1 = inlined_call_operand.hbm [shape: f32[1024,512], index: 1, kind: input, shape index: {}]   ;;  %s6449_s2 = inlined_call_operand.hbm [shape: f32[1,512], index: 2, kind: input, shape index: {}]   ;;  %s6450_s3 = inlined_call_operand.hbm [shape: f32[1,512], index: 3, kind: input, shape index: {}]   ;;  %s6451_s4 = inlined_call_operand.hbm [shape: f32[1,512], index: 4, kind: input, shape index: {}]   ;;  %s6452_s5 = inlined_call_operand.hbm [shape: f32[512,256], index: 5, kind: input, shape index: {}]   ;;  %s6453_s6 = inlined_call_operand.hbm [shape: f32[1,256], index: 6, kind: input, shape index: {}]   ;;  %s6454_s7 = inlined_call_operand.hbm [shape: f32[1,256], index: 7, kind: input, shape index: {}]   ;;  %s6455_s8 = inlined_call_operand.hbm [shape: f32[1,256], index: 8, kind: input, shape index: {}]   ;;  %s6456_s9 = inlined_call_operand.hbm [shape: f32[256,128], index: 9, kind: input, shape index: {}]   ;;  %s6457_s10 = inlined_call_operand.hbm [shape: f32[1,128], index: 10, kind: input, shape index: {}]   ;;  %s6458_s11 = inlined_call_operand.hbm [shape: f32[1,128], index: 11, kind: input, shape index: {}]   ;;  %s6459_s12 = inlined_call_operand.hbm [shape: f32[1,128], index: 12, kind: input, shape index: {}]   ;;  %s6460_s13 = inlined_call_operand.vmem [shape: f32[128,10], index: 13, kind: input, shape index: {}]   ;;  %s6461_s14 = inlined_call_operand.hbm [shape: f32[1,10], index: 14, kind: input, shape index: {}]   ;;  %s6462_s15 = inlined_call_operand.vmem [shape: f32[64,10], index: 15, kind: output, shape index: {}]  }
   0x1   :  { %21 = vsyncpa [#allocation5], 0 }
   0x2   :  { %22 = vsyncpa [#allocation8], 0 }
   0x3   :  { %23 = vsyncpa [#allocation11], 0 }
   0x4   :  { %24 = vsyncpa [#allocation14], 0 }
   0x5   :  { %25 = vsyncpa [#allocation17], 0 }
   0x6   :  { %26 = vsyncpa [#allocation20], 0  ;;  %s45_s20 = sshll.u32 %s6448_s1, 4  ;;  %s46_s20 = int_to_ptr.hbm [resolvable:$true] %s45_s20 }
   0x7   :  { %27 = vsyncpa [#allocation23], 0  ;;  %s4329_s21 = smov [#allocation4]   ;;  %s70_s25 = sshll.u32 %s6450_s3, 4  ;;  %s71_s25 = int_to_ptr.hbm [resolvable:$true] %s70_s25 }
   0x8   :  { %s47_s22 = sshll.u32 %s4329_s21, 4  ;;  %s4330_s26 = smov 512   ;;  %s48_s22 = int_to_ptr.vmem [resolvable:$true] %s47_s22 }
   0x9   :  { %s4331_s27 = smov 32   ;;  %s4332_s28 = smov [#allocation7]  }
   0xa   :  { %53 = dma.hbm_to_vmem [thread:$0]  %s46_s20, 65536, %s48_s22, [#allocation5], %s4330_s26, %s4330_s26, %s4331_s27  }
   0xb   :  { %s72_s29 = sshll.u32 %s4332_s28, 4  ;;  %s91_s17 = sshll.u32 %s6452_s5, 4  ;;  %s73_s29 = int_to_ptr.vmem [resolvable:$true] %s72_s29  ;;  %s92_s17 = int_to_ptr.hbm [resolvable:$true] %s91_s17 }
   0xc   :  { %75 = dma.hbm_to_vmem [thread:$0]  %s71_s25, 64, %s73_s29, [#allocation8]  }
   0xd   :  { %s4333_s1 = smov [#allocation10]   ;;  %s116_s3 = sshll.u32 %s6454_s7, 4  ;;  %s117_s3 = int_to_ptr.hbm [resolvable:$true] %s116_s3 }
   0xe   :  { %s93_s18 = sshll.u32 %s4333_s1, 4  ;;  %s4334_s23 = smov 256   ;;  %s94_s18 = int_to_ptr.vmem [resolvable:$true] %s93_s18 }
   0xf   :  { %s4335_s24 = smov 16   ;;  %s4336_s20 = smov [#allocation13]  }
  0x10   :  { %99 = dma.hbm_to_vmem [thread:$0]  %s92_s17, 16384, %s94_s18, [#allocation11], %s4334_s23, %s4334_s23, %s4335_s24  }
  0x11   :  { %s118_s22 = sshll.u32 %s4336_s20, 4  ;;  %s137_s5 = sshll.u32 %s6456_s9, 4  ;;  %s119_s22 = int_to_ptr.vmem [resolvable:$true] %s118_s22  ;;  %s138_s5 = int_to_ptr.hbm [resolvable:$true] %s137_s5 }
  0x12   :  { %121 = dma.hbm_to_vmem [thread:$0]  %s117_s3, 32, %s119_s22, [#allocation14]  }
  0x13   :  { %s4337_s25 = smov [#allocation16]   ;;  %s162_s7 = sshll.u32 %s6458_s11, 4  ;;  %s163_s7 = int_to_ptr.hbm [resolvable:$true] %s162_s7 }
  0x14   :  { %s139_s28 = sshll.u32 %s4337_s25, 4  ;;  %s4338_s16 = smov 128   ;;  %s140_s28 = int_to_ptr.vmem [resolvable:$true] %s139_s28 }
  0x15   :  { %s4339_s1 = smov 8   ;;  %s4340_s17 = smov [#allocation19]  }
  0x16   :  { %145 = dma.hbm_to_vmem [thread:$0]  %s138_s5, 4096, %s140_s28, [#allocation17], %s4338_s16, %s4338_s16, %s4339_s1  }
  0x17   :  { %s164_s18 = sshll.u32 %s4340_s17, 4  ;;  %s32_s9 = sshll.u32 %s6447_s0, 4  ;;  %s165_s18 = int_to_ptr.vmem [resolvable:$true] %s164_s18  ;;  %s33_s9 = int_to_ptr.hbm [resolvable:$true] %s32_s9 }
  0x18   :  { %167 = dma.hbm_to_vmem [thread:$0]  %s163_s7, 16, %s165_s18, [#allocation20]  }
  0x19   :  { %s4341_s3 = smov [#allocation2]   ;;  %s59_s11 = sshll.u32 %s6449_s2, 4  ;;  %s60_s11 = int_to_ptr.hbm [resolvable:$true] %s59_s11 }
  0x1a   :  { %s34_s23 = sshll.u32 %s4341_s3, 4  ;;  %s4342_s22 = smov 1024   ;;  %s35_s23 = int_to_ptr.vmem [resolvable:$true] %s34_s23 }
  0x1b   :  { %s4343_s26 = smov 64   ;;  %s4344_s27 = smov [#allocation6]  }
  0x1c   :  { %40 = dma.hbm_to_vmem [thread:$0]  %s33_s9, 8192, %s35_s23, [#allocation3], %s4342_s22, %s4342_s22, %s4343_s26  }
  0x1d   :  { %s61_s5 = sshll.u32 %s4344_s27, 4  ;;  %s81_s0 = sshll.u32 %s6451_s4, 4  ;;  %s62_s5 = int_to_ptr.vmem [resolvable:$true] %s61_s5  ;;  %s82_s0 = int_to_ptr.hbm [resolvable:$true] %s81_s0 }
  0x1e   :  { %64 = dma.hbm_to_vmem [thread:$0]  %s60_s11, 64, %s62_s5, [#allocation5]  }
  0x1f   :  { %s105_s7 = sshll.u32 %s6453_s6, 4  ;;  %s4345_s16 = smov [#allocation9]   ;;  %s106_s7 = int_to_ptr.hbm [resolvable:$true] %s105_s7 }
  0x20   :  { %s83_s1 = sshll.u32 %s4345_s16, 4  ;;  %s4346_s2 = smov [#allocation12]   ;;  %s84_s1 = int_to_ptr.vmem [resolvable:$true] %s83_s1 }
  0x21   :  { %86 = dma.hbm_to_vmem [thread:$0]  %s82_s0, 64, %s84_s1, [#allocation8]  }
  0x22   :  { %s107_s17 = sshll.u32 %s4346_s2, 4  ;;  %s127_s21 = sshll.u32 %s6455_s8, 4  ;;  %s108_s17 = int_to_ptr.vmem [resolvable:$true] %s107_s17  ;;  %s128_s21 = int_to_ptr.hbm [resolvable:$true] %s127_s21 }
  0x23   :  { %110 = dma.hbm_to_vmem [thread:$0]  %s106_s7, 32, %s108_s17, [#allocation11]  }
  0x24   :  { %s151_s3 = sshll.u32 %s6457_s10, 4  ;;  %s4347_s23 = smov [#allocation15]   ;;  %s152_s3 = int_to_ptr.hbm [resolvable:$true] %s151_s3 }
  0x25   :  { %s129_s6 = sshll.u32 %s4347_s23, 4  ;;  %s4348_s24 = smov [#allocation18]   ;;  %s130_s6 = int_to_ptr.vmem [resolvable:$true] %s129_s6 }
  0x26   :  { %132 = dma.hbm_to_vmem [thread:$0]  %s128_s21, 32, %s130_s6, [#allocation14]  }
  0x27   :  { %s153_s20 = sshll.u32 %s4348_s24, 4  ;;  %s173_s26 = sshll.u32 %s6459_s12, 4  ;;  %s154_s20 = int_to_ptr.vmem [resolvable:$true] %s153_s20  ;;  %s174_s26 = int_to_ptr.hbm [resolvable:$true] %s173_s26 }
  0x28   :  { %156 = dma.hbm_to_vmem [thread:$0]  %s152_s3, 16, %s154_s20, [#allocation17]  }
  0x29   :  { %s186_s5 = sshll.u32 %s6461_s14, 4  ;;  %s4349_s25 = smov [#allocation21]   ;;  %s187_s5 = int_to_ptr.hbm [resolvable:$true] %s186_s5 }
  0x2a   :  { %s175_s10 = sshll.u32 %s4349_s25, 4  ;;  %s4350_s28 = smov [#allocation22]   ;;  %s176_s10 = int_to_ptr.vmem [resolvable:$true] %s175_s10 }
  0x2b   :  { %178 = dma.hbm_to_vmem [thread:$0]  %s174_s26, 16, %s176_s10, [#allocation20]  }
  0x2c   :  { %s188_s0 = sshll.u32 %s4350_s28, 4  ;;  %s189_s0 = int_to_ptr.vmem [resolvable:$true] %s188_s0 }
  0x2d   :  { %191 = dma.hbm_to_vmem [thread:$0]  %s187_s5, 16, %s189_s0, [#allocation23]  }
  0x2e   :  { %4313 = dma.done.wait [#allocation3], 8192  }
  0x2f   :  { %4314 = vsyncadd [#allocation3], 4294959104 }
  0x30   :  { %4315 = dma.done.wait [#allocation5], 65600  }
  0x31   :  { %4316 = vsyncadd [#allocation5], 4294901696 }
  0x32   :  { %4317 = dma.done.wait [#allocation8], 128  }
  0x33   :  { %4318 = vsyncadd [#allocation8], 4294967168 }
  0x34   :  { %4319 = dma.done.wait [#allocation11], 16416  }
  0x35   :  { %4320 = vsyncadd [#allocation11], 4294950880 }
  0x36   :  { %4321 = dma.done.wait [#allocation14], 64  }
  0x37   :  { %4322 = vsyncadd [#allocation14], 4294967232 }
  0x38   :  { %4323 = dma.done.wait [#allocation17], 4112  }
  0x39   :  { %4324 = vsyncadd [#allocation17], 4294963184 }
  0x3a   :  { %4325 = dma.done.wait [#allocation20], 32  }
  0x3b   :  { %4326 = vsyncadd [#allocation20], 4294967264 }
  0x3c   :  { %4327 = dma.done.wait [#allocation23], 16  }
  0x3d   :  { %4328 = vsyncadd [#allocation23], 4294967280  ;;  %v372_v0 = vld [vmem:[#allocation4 + $0x1e0] sm:$0xff]  ;;  %v4478_v50 = vld [vmem:[#allocation2 + $0x8] sm:$0xff] }
  0x3e   :  { %v436_v1 = vld [vmem:[#allocation4 + $0x3e0] sm:$0xff]  ;;  %834 = vmatpush.msra.mxu0 %v372_v0  ;;  %3768 = vmatpush.msra.mxu3 %v372_v0  ;;  %v4480_v51 = vld [vmem:[#allocation2 + $0x10] sm:$0xff] }
  0x3f   :  { %v500_v2 = vld [vmem:[#allocation4 + $0x5e0] sm:$0xff]  ;;  %875 = vmatpush.msra.mxu1 %v436_v1  ;;  %v4490_v1 = vld [vmem:[#allocation2 + $0x48] sm:$0xff] }
  0x40   :  { %v368_v3 = vld [vmem:[#allocation4 + $0x1c0] sm:$0xff]  ;;  %916 = vmatpush.msra.mxu2 %v500_v2  ;;  %v4492_v2 = vld [vmem:[#allocation2 + $0x50] sm:$0xff] }
  0x41   :  { %v432_v4 = vld [vmem:[#allocation4 + $0x3c0] sm:$0xff]  ;;  %835 = vmatpush.msra.mxu0 %v368_v3  ;;  %3769 = vmatpush.msra.mxu3 %v368_v3 }
  0x42   :  { %v496_v5 = vld [vmem:[#allocation4 + $0x5c0] sm:$0xff]  ;;  %876 = vmatpush.msra.mxu1 %v432_v4 }
  0x43   :  { %v364_v6 = vld [vmem:[#allocation4 + $0x1a0] sm:$0xff]  ;;  %917 = vmatpush.msra.mxu2 %v496_v5 }
  0x44   :  { %v428_v7 = vld [vmem:[#allocation4 + $0x3a0] sm:$0xff]  ;;  %836 = vmatpush.msra.mxu0 %v364_v6  ;;  %3770 = vmatpush.msra.mxu3 %v364_v6 }
  0x45   :  { %v492_v8 = vld [vmem:[#allocation4 + $0x5a0] sm:$0xff]  ;;  %877 = vmatpush.msra.mxu1 %v428_v7 }
  0x46   :  { %v360_v9 = vld [vmem:[#allocation4 + $0x180] sm:$0xff]  ;;  %918 = vmatpush.msra.mxu2 %v492_v8 }
  0x47   :  { %v424_v10 = vld [vmem:[#allocation4 + $0x380] sm:$0xff]  ;;  %837 = vmatpush.msra.mxu0 %v360_v9  ;;  %3771 = vmatpush.msra.mxu3 %v360_v9 }
  0x48   :  { %v488_v11 = vld [vmem:[#allocation4 + $0x580] sm:$0xff]  ;;  %878 = vmatpush.msra.mxu1 %v424_v10 }
  0x49   :  { %v356_v12 = vld [vmem:[#allocation4 + $0x160] sm:$0xff]  ;;  %919 = vmatpush.msra.mxu2 %v488_v11 }
  0x4a   :  { %v420_v13 = vld [vmem:[#allocation4 + $0x360] sm:$0xff]  ;;  %838 = vmatpush.msra.mxu0 %v356_v12  ;;  %3772 = vmatpush.msra.mxu3 %v356_v12 }
  0x4b   :  { %v484_v14 = vld [vmem:[#allocation4 + $0x560] sm:$0xff]  ;;  %879 = vmatpush.msra.mxu1 %v420_v13 }
  0x4c   :  { %v352_v15 = vld [vmem:[#allocation4 + $0x140] sm:$0xff]  ;;  %920 = vmatpush.msra.mxu2 %v484_v14 }
  0x4d   :  { %v416_v16 = vld [vmem:[#allocation4 + $0x340] sm:$0xff]  ;;  %839 = vmatpush.msra.mxu0 %v352_v15  ;;  %3773 = vmatpush.msra.mxu3 %v352_v15 }
  0x4e   :  { %v480_v17 = vld [vmem:[#allocation4 + $0x540] sm:$0xff]  ;;  %880 = vmatpush.msra.mxu1 %v416_v16 }
  0x4f   :  { %v348_v18 = vld [vmem:[#allocation4 + $0x120] sm:$0xff]  ;;  %921 = vmatpush.msra.mxu2 %v480_v17 }
  0x50   :  { %v412_v19 = vld [vmem:[#allocation4 + $0x320] sm:$0xff]  ;;  %840 = vmatpush.msra.mxu0 %v348_v18  ;;  %3774 = vmatpush.msra.mxu3 %v348_v18 }
  0x51   :  { %v476_v20 = vld [vmem:[#allocation4 + $0x520] sm:$0xff]  ;;  %881 = vmatpush.msra.mxu1 %v412_v19  ;;  %v4502_v19 = vld [vmem:[#allocation2 + $0x88] sm:$0xff] }
  0x52   :  { %v344_v21 = vld [vmem:[#allocation4 + $0x100] sm:$0xff]  ;;  %922 = vmatpush.msra.mxu2 %v476_v20  ;;  %v4504_v20 = vld [vmem:[#allocation2 + $0x90] sm:$0xff] }
  0x53   :  { %v408_v22 = vld [vmem:[#allocation4 + $0x300] sm:$0xff]  ;;  %841 = vmatpush.msra.mxu0 %v344_v21  ;;  %3775 = vmatpush.msra.mxu3 %v344_v21 }
  0x54   :  { %v472_v23 = vld [vmem:[#allocation4 + $0x500] sm:$0xff]  ;;  %882 = vmatpush.msra.mxu1 %v408_v22 }
  0x55   :  { %v340_v24 = vld [vmem:[#allocation4 + $0xe0] sm:$0xff]  ;;  %923 = vmatpush.msra.mxu2 %v472_v23 }
  0x56   :  { %v404_v25 = vld [vmem:[#allocation4 + $0x2e0] sm:$0xff]  ;;  %842 = vmatpush.msra.mxu0 %v340_v24  ;;  %3776 = vmatpush.msra.mxu3 %v340_v24 }
  0x57   :  { %v468_v26 = vld [vmem:[#allocation4 + $0x4e0] sm:$0xff]  ;;  %883 = vmatpush.msra.mxu1 %v404_v25 }
  0x58   :  { %v336_v27 = vld [vmem:[#allocation4 + $0xc0] sm:$0xff]  ;;  %924 = vmatpush.msra.mxu2 %v468_v26 }
  0x59   :  { %v400_v28 = vld [vmem:[#allocation4 + $0x2c0] sm:$0xff]  ;;  %843 = vmatpush.msra.mxu0 %v336_v27  ;;  %3777 = vmatpush.msra.mxu3 %v336_v27 }
  0x5a   :  { %v464_v29 = vld [vmem:[#allocation4 + $0x4c0] sm:$0xff]  ;;  %884 = vmatpush.msra.mxu1 %v400_v28 }
  0x5b   :  { %v332_v30 = vld [vmem:[#allocation4 + $0xa0] sm:$0xff]  ;;  %925 = vmatpush.msra.mxu2 %v464_v29 }
  0x5c   :  { %v396_v31 = vld [vmem:[#allocation4 + $0x2a0] sm:$0xff]  ;;  %844 = vmatpush.msra.mxu0 %v332_v30  ;;  %3778 = vmatpush.msra.mxu3 %v332_v30 }
  0x5d   :  { %v460_v32 = vld [vmem:[#allocation4 + $0x4a0] sm:$0xff]  ;;  %885 = vmatpush.msra.mxu1 %v396_v31 }
  0x5e   :  { %v328_v33 = vld [vmem:[#allocation4 + $0x80] sm:$0xff]  ;;  %926 = vmatpush.msra.mxu2 %v460_v32 }
  0x5f   :  { %v392_v34 = vld [vmem:[#allocation4 + $0x280] sm:$0xff]  ;;  %845 = vmatpush.msra.mxu0 %v328_v33  ;;  %3779 = vmatpush.msra.mxu3 %v328_v33 }
  0x60   :  { %v456_v35 = vld [vmem:[#allocation4 + $0x480] sm:$0xff]  ;;  %886 = vmatpush.msra.mxu1 %v392_v34 }
  0x61   :  { %v324_v36 = vld [vmem:[#allocation4 + $0x60] sm:$0xff]  ;;  %927 = vmatpush.msra.mxu2 %v456_v35 }
  0x62   :  { %v388_v37 = vld [vmem:[#allocation4 + $0x260] sm:$0xff]  ;;  %846 = vmatpush.msra.mxu0 %v324_v36  ;;  %3780 = vmatpush.msra.mxu3 %v324_v36 }
  0x63   :  { %v452_v38 = vld [vmem:[#allocation4 + $0x460] sm:$0xff]  ;;  %887 = vmatpush.msra.mxu1 %v388_v37  ;;  %v4514_v37 = vld [vmem:[#allocation2 + $0xc8] sm:$0xff] }
  0x64   :  { %v320_v39 = vld [vmem:[#allocation4 + $0x40] sm:$0xff]  ;;  %928 = vmatpush.msra.mxu2 %v452_v38  ;;  %v4516_v38 = vld [vmem:[#allocation2 + $0xd0] sm:$0xff] }
  0x65   :  { %v384_v40 = vld [vmem:[#allocation4 + $0x240] sm:$0xff]  ;;  %847 = vmatpush.msra.mxu0 %v320_v39  ;;  %3781 = vmatpush.msra.mxu3 %v320_v39 }
  0x66   :  { %v448_v41 = vld [vmem:[#allocation4 + $0x440] sm:$0xff]  ;;  %888 = vmatpush.msra.mxu1 %v384_v40 }
  0x67   :  { %v316_v42 = vld [vmem:[#allocation4 + $0x20] sm:$0xff]  ;;  %929 = vmatpush.msra.mxu2 %v448_v41 }
  0x68   :  { %v380_v43 = vld [vmem:[#allocation4 + $0x220] sm:$0xff]  ;;  %848 = vmatpush.msra.mxu0 %v316_v42  ;;  %3782 = vmatpush.msra.mxu3 %v316_v42 }
  0x69   :  { %v444_v44 = vld [vmem:[#allocation4 + $0x420] sm:$0xff]  ;;  %889 = vmatpush.msra.mxu1 %v380_v43 }
  0x6a   :  { %v312_v45 = vld [vmem:[#allocation4] sm:$0xff]  ;;  %930 = vmatpush.msra.mxu2 %v444_v44 }
  0x6b   :  { %v376_v46 = vld [vmem:[#allocation4 + $0x200] sm:$0xff]  ;;  %849 = vmatpush.msra.mxu0 %v312_v45  ;;  %3783 = vmatpush.msra.mxu3 %v312_v45 }
  0x6c   :  { %v440_v47 = vld [vmem:[#allocation4 + $0x400] sm:$0xff]  ;;  %890 = vmatpush.msra.mxu1 %v376_v46 }
  0x6d   :  { %v4474_v48 = vld [vmem:[#allocation2] sm:$0xff]  ;;  %931 = vmatpush.msra.mxu2 %v440_v47  ;;  %891 = vmatmul.f32.vlgmr.msra.gmra.mxu1 %v4478_v50 }
  0x6e   :  { %v4476_v49 = vld [vmem:[#allocation2 + $0x100] sm:$0xff]  ;;  %850 = vmatmul.f32.vlgmr.msra.gmra.mxu0 %v4474_v48  ;;  %932 = vmatmul.f32.vlgmr.msra.gmra.mxu2 %v4480_v51 }
  0x6f   :  { %v564_v52 = vld [vmem:[#allocation4 + $0x7e0] sm:$0xff]  ;;  %862 = vmatmul.f32.vlgmr.msra.gmra.mxu3 %v4476_v49 }
  0x70   :  { %v628_v53 = vld [vmem:[#allocation4 + $0x9e0] sm:$0xff]  ;;  %957 = vmatpush.msrb.mxu3 %v564_v52 }
  0x71   :  { %v560_v54 = vld [vmem:[#allocation4 + $0x7c0] sm:$0xff]  ;;  %998 = vmatpush.msrb.mxu0 %v628_v53 }
  0x72   :  { %v624_v55 = vld [vmem:[#allocation4 + $0x9c0] sm:$0xff]  ;;  %958 = vmatpush.msrb.mxu3 %v560_v54 }
  0x73   :  { %v556_v56 = vld [vmem:[#allocation4 + $0x7a0] sm:$0xff]  ;;  %999 = vmatpush.msrb.mxu0 %v624_v55 }
  0x74   :  { %v620_v57 = vld [vmem:[#allocation4 + $0x9a0] sm:$0xff]  ;;  %959 = vmatpush.msrb.mxu3 %v556_v56 }
  0x75   :  { %v756_v58 = vld [vmem:[#allocation4 + $0xde0] sm:$0xff]  ;;  %1000 = vmatpush.msrb.mxu0 %v620_v57  ;;  %894 = vmatmul.f32.gmra.mxu1 %v4490_v1  ;;  %v4522_v57 = vld [vmem:[#allocation2 + $0x108] sm:$0xff] }
  0x76   :  { %v552_v59 = vld [vmem:[#allocation4 + $0x780] sm:$0xff]  ;;  %1080 = vmatpush.msrb.mxu2 %v756_v58  ;;  %v4524_v58 = vld [vmem:[#allocation2 + $0x110] sm:$0xff] }
  0x77   :  { %v616_v60 = vld [vmem:[#allocation4 + $0x980] sm:$0xff]  ;;  %960 = vmatpush.msrb.mxu3 %v552_v59  ;;  %935 = vmatmul.f32.gmra.mxu2 %v4492_v2  ;;  %v4526_v59 = vld [vmem:[#allocation2 + $0x18] sm:$0xff] }
  0x78   :  { %v692_v61 = vld [vmem:[#allocation4 + $0xbe0] sm:$0xff]  ;;  %1001 = vmatpush.msrb.mxu0 %v616_v60 }
  0x79   :  { %v4486_v62 = vld [vmem:[#allocation2 + $0x40] sm:$0xff]  ;;  %1039 = vmatpush.msrb.mxu1 %v692_v61 }
  0x7a   :  { %v4488_v63 = vld [vmem:[#allocation2 + $0x140] sm:$0xff]  ;;  %853 = vmatmul.f32.gmra.mxu0 %v4486_v62 }
  0x7b   :  { %v752_v0 = vld [vmem:[#allocation4 + $0xdc0] sm:$0xff]  ;;  %865 = vmatmul.f32.gmra.mxu3 %v4488_v63 }
  0x7c   :  { %1081 = vmatpush.msrb.mxu2 %v752_v0  ;;  %v548_v3 = vld [vmem:[#allocation4 + $0x760] sm:$0xff] }
  0x7d   :  { %v612_v4 = vld [vmem:[#allocation4 + $0x960] sm:$0xff]  ;;  %961 = vmatpush.msrb.mxu3 %v548_v3  ;;  %897 = vmatmul.f32.gmra.mxu1 %v4502_v19 }
  0x7e   :  { %v688_v5 = vld [vmem:[#allocation4 + $0xbc0] sm:$0xff]  ;;  %1002 = vmatpush.msrb.mxu0 %v612_v4 }
  0x7f   :  { %v748_v6 = vld [vmem:[#allocation4 + $0xda0] sm:$0xff]  ;;  %1040 = vmatpush.msrb.mxu1 %v688_v5  ;;  %938 = vmatmul.f32.gmra.mxu2 %v4504_v20 }
  0x80   :  { %v544_v7 = vld [vmem:[#allocation4 + $0x740] sm:$0xff]  ;;  %1082 = vmatpush.msrb.mxu2 %v748_v6  ;;  %v373_v6 = vld [vmem:[#allocation4 + $0x1e8] sm:$0xff] }
  0x81   :  { %v608_v8 = vld [vmem:[#allocation4 + $0x940] sm:$0xff]  ;;  %962 = vmatpush.msrb.mxu3 %v544_v7 }
  0x82   :  { %v684_v9 = vld [vmem:[#allocation4 + $0xba0] sm:$0xff]  ;;  %1003 = vmatpush.msrb.mxu0 %v608_v8  ;;  %v369_v8 = vld [vmem:[#allocation4 + $0x1c8] sm:$0xff] }
  0x83   :  { %v744_v10 = vld [vmem:[#allocation4 + $0xd80] sm:$0xff]  ;;  %1041 = vmatpush.msrb.mxu1 %v684_v9 }
  0x84   :  { %v540_v11 = vld [vmem:[#allocation4 + $0x720] sm:$0xff]  ;;  %1083 = vmatpush.msrb.mxu2 %v744_v10 }
  0x85   :  { %v604_v12 = vld [vmem:[#allocation4 + $0x920] sm:$0xff]  ;;  %963 = vmatpush.msrb.mxu3 %v540_v11  ;;  %900 = vmatmul.f32.gmra.mxu1 %v4514_v37 }
  0x86   :  { %v680_v13 = vld [vmem:[#allocation4 + $0xb80] sm:$0xff]  ;;  %1004 = vmatpush.msrb.mxu0 %v604_v12  ;;  %v365_v12 = vld [vmem:[#allocation4 + $0x1a8] sm:$0xff] }
  0x87   :  { %v740_v14 = vld [vmem:[#allocation4 + $0xd60] sm:$0xff]  ;;  %1042 = vmatpush.msrb.mxu1 %v680_v13  ;;  %941 = vmatmul.f32.gmra.mxu2 %v4516_v38  ;;  %v4534_v13 = vld [vmem:[#allocation2 + $0x148] sm:$0xff] }
  0x88   :  { %v536_v15 = vld [vmem:[#allocation4 + $0x700] sm:$0xff]  ;;  %1084 = vmatpush.msrb.mxu2 %v740_v14  ;;  %v4536_v14 = vld [vmem:[#allocation2 + $0x150] sm:$0xff] }
  0x89   :  { %v600_v16 = vld [vmem:[#allocation4 + $0x900] sm:$0xff]  ;;  %964 = vmatpush.msrb.mxu3 %v536_v15  ;;  %v4538_v15 = vld [vmem:[#allocation2 + $0x58] sm:$0xff] }
  0x8a   :  { %v4498_v17 = vld [vmem:[#allocation2 + $0x80] sm:$0xff]  ;;  %1005 = vmatpush.msrb.mxu0 %v600_v16 }
  0x8b   :  { %v4500_v18 = vld [vmem:[#allocation2 + $0x180] sm:$0xff]  ;;  %856 = vmatmul.f32.gmra.mxu0 %v4498_v17 }
  0x8c   :  { %v532_v21 = vld [vmem:[#allocation4 + $0x6e0] sm:$0xff]  ;;  %868 = vmatmul.f32.gmra.mxu3 %v4500_v18 }
  0x8d   :  { %v596_v22 = vld [vmem:[#allocation4 + $0x8e0] sm:$0xff]  ;;  %965 = vmatpush.msrb.mxu3 %v532_v21  ;;  %903 = vmatmul.f32.gmra.mxu1 %v4522_v57 }
  0x8e   :  { %v676_v23 = vld [vmem:[#allocation4 + $0xb60] sm:$0xff]  ;;  %1006 = vmatpush.msrb.mxu0 %v596_v22 }
  0x8f   :  { %v736_v24 = vld [vmem:[#allocation4 + $0xd40] sm:$0xff]  ;;  %1043 = vmatpush.msrb.mxu1 %v676_v23  ;;  %944 = vmatmul.f32.gmra.mxu2 %v4524_v58 }
  0x90   :  { %v528_v25 = vld [vmem:[#allocation4 + $0x6c0] sm:$0xff]  ;;  %1085 = vmatpush.msrb.mxu2 %v736_v24  ;;  %v361_v24 = vld [vmem:[#allocation4 + $0x188] sm:$0xff] }
  0x91   :  { %v592_v26 = vld [vmem:[#allocation4 + $0x8c0] sm:$0xff]  ;;  %966 = vmatpush.msrb.mxu3 %v528_v25 }
  0x92   :  { %v672_v27 = vld [vmem:[#allocation4 + $0xb40] sm:$0xff]  ;;  %1007 = vmatpush.msrb.mxu0 %v592_v26 }
  0x93   :  { %v732_v28 = vld [vmem:[#allocation4 + $0xd20] sm:$0xff]  ;;  %1044 = vmatpush.msrb.mxu1 %v672_v27 }
  0x94   :  { %v524_v29 = vld [vmem:[#allocation4 + $0x6a0] sm:$0xff]  ;;  %1086 = vmatpush.msrb.mxu2 %v732_v28  ;;  %v357_v28 = vld [vmem:[#allocation4 + $0x168] sm:$0xff] }
  0x95   :  { %v588_v30 = vld [vmem:[#allocation4 + $0x8a0] sm:$0xff]  ;;  %967 = vmatpush.msrb.mxu3 %v524_v29  ;;  %906 = vmatmul.f32.gmra.mxu1 %v4534_v13 }
  0x96   :  { %v668_v31 = vld [vmem:[#allocation4 + $0xb20] sm:$0xff]  ;;  %1008 = vmatpush.msrb.mxu0 %v588_v30 }
  0x97   :  { %v728_v32 = vld [vmem:[#allocation4 + $0xd00] sm:$0xff]  ;;  %1045 = vmatpush.msrb.mxu1 %v668_v31  ;;  %947 = vmatmul.f32.gmra.mxu2 %v4536_v14  ;;  %v353_v31 = vld [vmem:[#allocation4 + $0x148] sm:$0xff] }
  0x98   :  { %v520_v33 = vld [vmem:[#allocation4 + $0x680] sm:$0xff]  ;;  %1087 = vmatpush.msrb.mxu2 %v728_v32  ;;  %v4546_v32 = vld [vmem:[#allocation2 + $0x188] sm:$0xff] }
  0x99   :  { %v584_v34 = vld [vmem:[#allocation4 + $0x880] sm:$0xff]  ;;  %968 = vmatpush.msrb.mxu3 %v520_v33  ;;  %v4548_v33 = vld [vmem:[#allocation2 + $0x190] sm:$0xff] }
  0x9a   :  { %v4510_v35 = vld [vmem:[#allocation2 + $0xc0] sm:$0xff]  ;;  %1009 = vmatpush.msrb.mxu0 %v584_v34  ;;  %v4550_v34 = vld [vmem:[#allocation2 + $0x98] sm:$0xff] }
  0x9b   :  { %v4512_v36 = vld [vmem:[#allocation2 + $0x1c0] sm:$0xff]  ;;  %859 = vmatmul.f32.gmra.mxu0 %v4510_v35 }
  0x9c   :  { %v516_v39 = vld [vmem:[#allocation4 + $0x660] sm:$0xff]  ;;  %871 = vmatmul.f32.gmra.mxu3 %v4512_v36 }
  0x9d   :  { %v580_v40 = vld [vmem:[#allocation4 + $0x860] sm:$0xff]  ;;  %969 = vmatpush.msrb.mxu3 %v516_v39  ;;  %909 = vmatmul.f32.gmra.mxu1 %v4546_v32 }
  0x9e   :  { %v664_v41 = vld [vmem:[#allocation4 + $0xb00] sm:$0xff]  ;;  %1010 = vmatpush.msrb.mxu0 %v580_v40 }
  0x9f   :  { %v724_v42 = vld [vmem:[#allocation4 + $0xce0] sm:$0xff]  ;;  %1046 = vmatpush.msrb.mxu1 %v664_v41  ;;  %v349_v41 = vld [vmem:[#allocation4 + $0x128] sm:$0xff]  ;;  %950 = vmatmul.f32.gmra.mxu2 %v4548_v33 }
  0xa0   :  { %v512_v43 = vld [vmem:[#allocation4 + $0x640] sm:$0xff]  ;;  %1088 = vmatpush.msrb.mxu2 %v724_v42 }
  0xa1   :  { %v576_v44 = vld [vmem:[#allocation4 + $0x840] sm:$0xff]  ;;  %970 = vmatpush.msrb.mxu3 %v512_v43  ;;  %v345_v43 = vld [vmem:[#allocation4 + $0x108] sm:$0xff] }
  0xa2   :  { %v660_v45 = vld [vmem:[#allocation4 + $0xae0] sm:$0xff]  ;;  %1011 = vmatpush.msrb.mxu0 %v576_v44 }
  0xa3   :  { %v720_v46 = vld [vmem:[#allocation4 + $0xcc0] sm:$0xff]  ;;  %1047 = vmatpush.msrb.mxu1 %v660_v45  ;;  %v341_v45 = vld [vmem:[#allocation4 + $0xe8] sm:$0xff] }
  0xa4   :  { %v508_v47 = vld [vmem:[#allocation4 + $0x620] sm:$0xff]  ;;  %1089 = vmatpush.msrb.mxu2 %v720_v46  ;;  %v4558_v46 = vld [vmem:[#allocation2 + $0x1c8] sm:$0xff] }
  0xa5   :  { %v572_v52 = vld [vmem:[#allocation4 + $0x820] sm:$0xff]  ;;  %971 = vmatpush.msrb.mxu3 %v508_v47  ;;  %v4560_v47 = vld [vmem:[#allocation2 + $0x1d0] sm:$0xff]  ;;  %912 = vmatmul.f32.gmra.mxu1 %v4558_v46 }
  0xa6   :  { %v656_v53 = vld [vmem:[#allocation4 + $0xac0] sm:$0xff]  ;;  %1012 = vmatpush.msrb.mxu0 %v572_v52  ;;  %v4562_v52 = vld [vmem:[#allocation2 + $0xd8] sm:$0xff] }
  0xa7   :  { %v716_v54 = vld [vmem:[#allocation4 + $0xca0] sm:$0xff]  ;;  %1048 = vmatpush.msrb.mxu1 %v656_v53  ;;  %953 = vmatmul.f32.gmra.mxu2 %v4560_v47 }
  0xa8   :  { %v504_v55 = vld [vmem:[#allocation4 + $0x600] sm:$0xff]  ;;  %1090 = vmatpush.msrb.mxu2 %v716_v54 }
  0xa9   :  { %v568_v56 = vld [vmem:[#allocation4 + $0x800] sm:$0xff]  ;;  %972 = vmatpush.msrb.mxu3 %v504_v55  ;;  %v337_v55 = vld [vmem:[#allocation4 + $0xc8] sm:$0xff] }
  0xaa   :  { %v4528_v60 = vld [vmem:[#allocation2 + $0x20] sm:$0xff]  ;;  %1013 = vmatpush.msrb.mxu0 %v568_v56  ;;  %973 = vmatmul.f32.vlgmr.msrb.gmra.mxu3 %v4526_v59 }
  0xab   :  { %v820_v61 = vld [vmem:[#allocation4 + $0xfe0] sm:$0xff]  ;;  %1014 = vmatmul.f32.vlgmr.msrb.gmra.mxu0 %v4528_v60 }
  0xac   :  { %v652_v0 = vld [vmem:[#allocation4 + $0xaa0] sm:$0xff]  ;;  %1121 = vmatpush.msra.mxu3 %v820_v61  ;;  %1162 = vmatpush.msra.mxu0 %v373_v6  ;;  %v333_v61 = vld [vmem:[#allocation4 + $0xa8] sm:$0xff]  ;;  %v4572_v6 = vld [vmem:[#allocation2 + $0x30] sm:$0xff] }
  0xad   :  { %v712_v3 = vld [vmem:[#allocation4 + $0xc80] sm:$0xff]  ;;  %1049 = vmatpush.msrb.mxu1 %v652_v0  ;;  %v501_v0 = vld [vmem:[#allocation4 + $0x5e8] sm:$0xff] }
  0xae   :  { %v816_v4 = vld [vmem:[#allocation4 + $0xfc0] sm:$0xff]  ;;  %1091 = vmatpush.msrb.mxu2 %v712_v3  ;;  %1163 = vmatpush.msra.mxu0 %v369_v8 }
  0xaf   :  { %v648_v5 = vld [vmem:[#allocation4 + $0xa80] sm:$0xff]  ;;  %1122 = vmatpush.msra.mxu3 %v816_v4  ;;  %v329_v4 = vld [vmem:[#allocation4 + $0x88] sm:$0xff] }
  0xb0   :  { %v708_v7 = vld [vmem:[#allocation4 + $0xc60] sm:$0xff]  ;;  %1050 = vmatpush.msrb.mxu1 %v648_v5  ;;  %1164 = vmatpush.msra.mxu0 %v365_v12  ;;  %v4570_v5 = vld [vmem:[#allocation2 + $0x28] sm:$0xff] }
  0xb1   :  { %v812_v9 = vld [vmem:[#allocation4 + $0xfa0] sm:$0xff]  ;;  %1092 = vmatpush.msrb.mxu2 %v708_v7  ;;  %v4574_v7 = vld [vmem:[#allocation2 + $0x118] sm:$0xff]  ;;  %v321_v12 = vld [vmem:[#allocation4 + $0x48] sm:$0xff] }
  0xb2   :  { %v644_v10 = vld [vmem:[#allocation4 + $0xa60] sm:$0xff]  ;;  %1123 = vmatpush.msra.mxu3 %v812_v9  ;;  %1165 = vmatpush.msra.mxu0 %v361_v24 }
  0xb3   :  { %v704_v11 = vld [vmem:[#allocation4 + $0xc40] sm:$0xff]  ;;  %1051 = vmatpush.msrb.mxu1 %v644_v10  ;;  %976 = vmatmul.f32.gmra.mxu3 %v4538_v15  ;;  %v325_v10 = vld [vmem:[#allocation4 + $0x68] sm:$0xff] }
  0xb4   :  { %v4540_v16 = vld [vmem:[#allocation2 + $0x60] sm:$0xff]  ;;  %1093 = vmatpush.msrb.mxu2 %v704_v11  ;;  %1166 = vmatpush.msra.mxu0 %v357_v28  ;;  %v489_v28 = vld [vmem:[#allocation4 + $0x588] sm:$0xff] }
  0xb5   :  { %v808_v21 = vld [vmem:[#allocation4 + $0xf80] sm:$0xff]  ;;  %1017 = vmatmul.f32.gmra.mxu0 %v4540_v16 }
  0xb6   :  { %v640_v22 = vld [vmem:[#allocation4 + $0xa40] sm:$0xff]  ;;  %1124 = vmatpush.msra.mxu3 %v808_v21  ;;  %1167 = vmatpush.msra.mxu0 %v353_v31  ;;  %v437_v21 = vld [vmem:[#allocation4 + $0x3e8] sm:$0xff]  ;;  %v4586_v31 = vld [vmem:[#allocation2 + $0x158] sm:$0xff] }
  0xb7   :  { %v700_v23 = vld [vmem:[#allocation4 + $0xc20] sm:$0xff]  ;;  %1052 = vmatpush.msrb.mxu1 %v640_v22  ;;  %v497_v22 = vld [vmem:[#allocation4 + $0x5c8] sm:$0xff] }
  0xb8   :  { %v804_v25 = vld [vmem:[#allocation4 + $0xf60] sm:$0xff]  ;;  %1094 = vmatpush.msrb.mxu2 %v700_v23  ;;  %1168 = vmatpush.msra.mxu0 %v349_v41  ;;  %v433_v23 = vld [vmem:[#allocation4 + $0x3c8] sm:$0xff] }
  0xb9   :  { %v636_v26 = vld [vmem:[#allocation4 + $0xa20] sm:$0xff]  ;;  %1125 = vmatpush.msra.mxu3 %v804_v25  ;;  %v317_v25 = vld [vmem:[#allocation4 + $0x28] sm:$0xff] }
  0xba   :  { %v696_v27 = vld [vmem:[#allocation4 + $0xc00] sm:$0xff]  ;;  %1053 = vmatpush.msrb.mxu1 %v636_v26  ;;  %1169 = vmatpush.msra.mxu0 %v345_v43  ;;  %v493_v26 = vld [vmem:[#allocation4 + $0x5a8] sm:$0xff] }
  0xbb   :  { %v800_v29 = vld [vmem:[#allocation4 + $0xf40] sm:$0xff]  ;;  %1095 = vmatpush.msrb.mxu2 %v696_v27  ;;  %979 = vmatmul.f32.gmra.mxu3 %v4550_v34  ;;  %v429_v27 = vld [vmem:[#allocation4 + $0x3a8] sm:$0xff] }
  0xbc   :  { %v632_v30 = vld [vmem:[#allocation4 + $0xa00] sm:$0xff]  ;;  %1126 = vmatpush.msra.mxu3 %v800_v29  ;;  %1170 = vmatpush.msra.mxu0 %v341_v45  ;;  %v4582_v29 = vld [vmem:[#allocation2 + $0x68] sm:$0xff] }
  0xbd   :  { %v4552_v39 = vld [vmem:[#allocation2 + $0xa0] sm:$0xff]  ;;  %1054 = vmatpush.msrb.mxu1 %v632_v30  ;;  %1244 = vmatpush.msra.mxu2 %v501_v0  ;;  %v4584_v30 = vld [vmem:[#allocation2 + $0x70] sm:$0xff]  ;;  %v565_v43 = vld [vmem:[#allocation4 + $0x7e8] sm:$0xff] }
  0xbe   :  { %v796_v40 = vld [vmem:[#allocation4 + $0xf20] sm:$0xff]  ;;  %1020 = vmatmul.f32.gmra.mxu0 %v4552_v39  ;;  %1055 = vmatmul.f32.vlgmr.msrb.gmra.mxu1 %v4570_v5  ;;  %v485_v45 = vld [vmem:[#allocation4 + $0x568] sm:$0xff] }
  0xbf   :  { %v792_v42 = vld [vmem:[#allocation4 + $0xf00] sm:$0xff]  ;;  %1127 = vmatpush.msra.mxu3 %v796_v40  ;;  %1171 = vmatpush.msra.mxu0 %v337_v55  ;;  %v421_v55 = vld [vmem:[#allocation4 + $0x368] sm:$0xff] }
  0xc0   :  { %v788_v44 = vld [vmem:[#allocation4 + $0xee0] sm:$0xff]  ;;  %1096 = vmatmul.f32.vlgmr.msrb.gmra.mxu2 %v4572_v6  ;;  %1203 = vmatpush.msra.mxu1 %v437_v21  ;;  %v417_v0 = vld [vmem:[#allocation4 + $0x348] sm:$0xff] }
  0xc1   :  { %1128 = vmatpush.msra.mxu3 %v792_v42  ;;  %v4564_v53 = vld [vmem:[#allocation2 + $0xe0] sm:$0xff]  ;;  %1172 = vmatpush.msra.mxu0 %v333_v61  ;;  %v313_v42 = vld [vmem:[#allocation4 + $0x8] sm:$0xff] }
  0xc2   :  { %v784_v54 = vld [vmem:[#allocation4 + $0xec0] sm:$0xff]  ;;  %1245 = vmatpush.msra.mxu2 %v497_v22  ;;  %1204 = vmatpush.msra.mxu1 %v433_v23  ;;  %v557_v61 = vld [vmem:[#allocation4 + $0x7a8] sm:$0xff] }
  0xc3   :  { %1129 = vmatpush.msra.mxu3 %v788_v44  ;;  %v780_v56 = vld [vmem:[#allocation4 + $0xea0] sm:$0xff]  ;;  %1173 = vmatpush.msra.mxu0 %v329_v4  ;;  %v425_v44 = vld [vmem:[#allocation4 + $0x388] sm:$0xff]  ;;  %v4596_v4 = vld [vmem:[#allocation2 + $0xb0] sm:$0xff] }
  0xc4   :  { %982 = vmatmul.f32.gmra.mxu3 %v4562_v52  ;;  %v776_v3 = vld [vmem:[#allocation4 + $0xe80] sm:$0xff]  ;;  %1246 = vmatpush.msra.mxu2 %v493_v26  ;;  %v477_v21 = vld [vmem:[#allocation4 + $0x528] sm:$0xff] }
  0xc5   :  { %1130 = vmatpush.msra.mxu3 %v784_v54  ;;  %v4576_v8 = vld [vmem:[#allocation2 + $0x120] sm:$0xff]  ;;  %1174 = vmatpush.msra.mxu0 %v325_v10  ;;  %v561_v54 = vld [vmem:[#allocation4 + $0x7c8] sm:$0xff] }
  0xc6   :  { %1023 = vmatmul.f32.gmra.mxu0 %v4564_v53  ;;  %v772_v9 = vld [vmem:[#allocation4 + $0xe60] sm:$0xff]  ;;  %1205 = vmatpush.msra.mxu1 %v429_v27  ;;  %v409_v22 = vld [vmem:[#allocation4 + $0x308] sm:$0xff] }
  0xc7   :  { %1131 = vmatpush.msra.mxu3 %v780_v56  ;;  %v768_v11 = vld [vmem:[#allocation4 + $0xe40] sm:$0xff]  ;;  %1175 = vmatpush.msra.mxu0 %v321_v12  ;;  %v481_v56 = vld [vmem:[#allocation4 + $0x548] sm:$0xff] }
  0xc8   :  { %v764_v24 = vld [vmem:[#allocation4 + $0xe20] sm:$0xff]  ;;  %1247 = vmatpush.msra.mxu2 %v489_v28  ;;  %1058 = vmatmul.f32.gmra.mxu1 %v4582_v29  ;;  %v413_v12 = vld [vmem:[#allocation4 + $0x328] sm:$0xff] }
  0xc9   :  { %1132 = vmatpush.msra.mxu3 %v776_v3  ;;  %v4588_v40 = vld [vmem:[#allocation2 + $0x160] sm:$0xff]  ;;  %1176 = vmatpush.msra.mxu0 %v317_v25  ;;  %v4594_v3 = vld [vmem:[#allocation2 + $0xa8] sm:$0xff] }
  0xca   :  { %v760_v41 = vld [vmem:[#allocation4 + $0xe00] sm:$0xff]  ;;  %1099 = vmatmul.f32.gmra.mxu2 %v4584_v30  ;;  %1206 = vmatpush.msra.mxu1 %v425_v44  ;;  %v549_v23 = vld [vmem:[#allocation4 + $0x768] sm:$0xff] }
  0xcb   :  { %1133 = vmatpush.msra.mxu3 %v772_v9  ;;  %1177 = vmatpush.msra.mxu0 %v313_v42  ;;  %v4598_v9 = vld [vmem:[#allocation2 + $0x198] sm:$0xff]  ;;  %v4600_v10 = vld [vmem:[#allocation2 + $0x1a0] sm:$0xff]  ;;  %v405_v25 = vld [vmem:[#allocation4 + $0x2e8] sm:$0xff] }
  0xcc   :  { %985 = vmatmul.f32.gmra.mxu3 %v4574_v7  ;;  %1248 = vmatpush.msra.mxu2 %v485_v45  ;;  %v545_v26 = vld [vmem:[#allocation4 + $0x748] sm:$0xff]  ;;  %v4610_v42 = vld [vmem:[#allocation2 + $0x1d8] sm:$0xff] }
  0xcd   :  { %1134 = vmatpush.msra.mxu3 %v768_v11  ;;  %1207 = vmatpush.msra.mxu1 %v421_v55  ;;  %v553_v11 = vld [vmem:[#allocation4 + $0x788] sm:$0xff] }
  0xce   :  { %1026 = vmatmul.f32.gmra.mxu0 %v4576_v8  ;;  %1249 = vmatpush.msra.mxu2 %v481_v56  ;;  %v469_v27 = vld [vmem:[#allocation4 + $0x4e8] sm:$0xff] }
  0xcf   :  { %1135 = vmatpush.msra.mxu3 %v764_v24  ;;  %1208 = vmatpush.msra.mxu1 %v417_v0  ;;  %v473_v24 = vld [vmem:[#allocation4 + $0x508] sm:$0xff] }
  0xd0   :  { %1061 = vmatmul.f32.gmra.mxu1 %v4594_v3  ;;  %1250 = vmatpush.msra.mxu2 %v477_v21  ;;  %v4606_v28 = vld [vmem:[#allocation2 + $0xe8] sm:$0xff]  ;;  %v4620_v21 = vld [vmem:[#allocation2 + $0x130] sm:$0xff] }
  0xd1   :  { %1136 = vmatpush.msra.mxu3 %v760_v41  ;;  %1209 = vmatpush.msra.mxu1 %v413_v12  ;;  %v4608_v41 = vld [vmem:[#allocation2 + $0xf0] sm:$0xff]  ;;  %v401_v44 = vld [vmem:[#allocation4 + $0x2c8] sm:$0xff]  ;;  %6505 = vst [vmem:[#allocation32_spill] sm:$0xff] %v4620_v21 }
  0xd2   :  { %1102 = vmatmul.f32.gmra.mxu2 %v4596_v4  ;;  %v465_v45 = vld [vmem:[#allocation4 + $0x4c8] sm:$0xff] }
  0xd3   :  { %1285 = vmatpush.msrb.mxu3 %v565_v43  ;;  %1210 = vmatpush.msra.mxu1 %v409_v22  ;;  %v4612_v43 = vld [vmem:[#allocation2 + $0x1e0] sm:$0xff]  ;;  %v461_v55 = vld [vmem:[#allocation4 + $0x4a8] sm:$0xff]  ;;  %v4622_v22 = vld [vmem:[#allocation2 + $0x38] sm:$0xff] }
  0xd4   :  { %988 = vmatmul.f32.gmra.mxu3 %v4586_v31  ;;  %1251 = vmatpush.msra.mxu2 %v473_v24  ;;  %v541_v56 = vld [vmem:[#allocation4 + $0x728] sm:$0xff]  ;;  %6506 = vst [vmem:[#allocation33_spill] sm:$0xff] %v4622_v22 }
  0xd5   :  { %1286 = vmatpush.msrb.mxu3 %v561_v54  ;;  %1211 = vmatpush.msra.mxu1 %v405_v25  ;;  %v397_v54 = vld [vmem:[#allocation4 + $0x2a8] sm:$0xff] }
  0xd6   :  { %1029 = vmatmul.f32.gmra.mxu0 %v4588_v40  ;;  %1252 = vmatpush.msra.mxu2 %v469_v27  ;;  %v393_v0 = vld [vmem:[#allocation4 + $0x288] sm:$0xff] }
  0xd7   :  { %1287 = vmatpush.msrb.mxu3 %v557_v61  ;;  %1212 = vmatpush.msra.mxu1 %v401_v44  ;;  %v537_v61 = vld [vmem:[#allocation4 + $0x708] sm:$0xff] }
  0xd8   :  { %1064 = vmatmul.f32.gmra.mxu1 %v4606_v28  ;;  %1253 = vmatpush.msra.mxu2 %v465_v45  ;;  %v4618_v12 = vld [vmem:[#allocation2 + $0x128] sm:$0xff] }
  0xd9   :  { %1288 = vmatpush.msrb.mxu3 %v553_v11  ;;  %v457_v11 = vld [vmem:[#allocation4 + $0x488] sm:$0xff]  ;;  %1213 = vmatpush.msra.mxu1 %v397_v54 }
  0xda   :  { %1105 = vmatmul.f32.gmra.mxu2 %v4608_v41  ;;  %v453_v24 = vld [vmem:[#allocation4 + $0x468] sm:$0xff] }
  0xdb   :  { %1289 = vmatpush.msrb.mxu3 %v549_v23  ;;  %1254 = vmatpush.msra.mxu2 %v461_v55  ;;  %v389_v23 = vld [vmem:[#allocation4 + $0x268] sm:$0xff] }
  0xdc   :  { %991 = vmatmul.f32.gmra.mxu3 %v4598_v9  ;;  %1214 = vmatpush.msra.mxu1 %v393_v0  ;;  %v385_v25 = vld [vmem:[#allocation4 + $0x248] sm:$0xff]  ;;  %v4630_v0 = vld [vmem:[#allocation2 + $0x170] sm:$0xff] }
  0xdd   :  { %1290 = vmatpush.msrb.mxu3 %v545_v26  ;;  %1255 = vmatpush.msra.mxu2 %v457_v11  ;;  %v449_v26 = vld [vmem:[#allocation4 + $0x448] sm:$0xff]  ;;  %6508 = vst [vmem:[#allocation35_spill] sm:$0xff] %v4630_v0  ;;  %v4632_v11 = vld [vmem:[#allocation2 + $0x78] sm:$0xff] }
  0xde   :  { %1032 = vmatmul.f32.gmra.mxu0 %v4600_v10  ;;  %v533_v27 = vld [vmem:[#allocation4 + $0x6e8] sm:$0xff]  ;;  %1215 = vmatpush.msra.mxu1 %v389_v23  ;;  %6509 = vst [vmem:[#allocation36_spill] sm:$0xff] %v4632_v11 }
  0xdf   :  { %1291 = vmatpush.msrb.mxu3 %v541_v56  ;;  %v629_v44 = vld [vmem:[#allocation4 + $0x9e8] sm:$0xff]  ;;  %1256 = vmatpush.msra.mxu2 %v453_v24 }
  0xe0   :  { %1067 = vmatmul.f32.gmra.mxu1 %v4618_v12  ;;  %v625_v45 = vld [vmem:[#allocation4 + $0x9c8] sm:$0xff]  ;;  %1326 = vmatpush.msrb.mxu0 %v629_v44 }
  0xe1   :  { %1292 = vmatpush.msrb.mxu3 %v537_v61  ;;  %v529_v54 = vld [vmem:[#allocation4 + $0x6c8] sm:$0xff]  ;;  %1216 = vmatpush.msra.mxu1 %v385_v25 }
  0xe2   :  { %1108 = vmatmul.f32.gmra.mxu2 %v4620_v21  ;;  %v381_v55 = vld [vmem:[#allocation4 + $0x228] sm:$0xff]  ;;  %1327 = vmatpush.msrb.mxu0 %v625_v45 }
  0xe3   :  { %v445_v56 = vld [vmem:[#allocation4 + $0x428] sm:$0xff]  ;;  %1293 = vmatpush.msrb.mxu3 %v533_v27  ;;  %1257 = vmatpush.msra.mxu2 %v449_v26 }
  0xe4   :  { %994 = vmatmul.f32.gmra.mxu3 %v4610_v42  ;;  %v4628_v61 = vld [vmem:[#allocation2 + $0x168] sm:$0xff]  ;;  %1217 = vmatpush.msra.mxu1 %v381_v55  ;;  %v4640_v55 = vld [vmem:[#allocation2 + $0x1b0] sm:$0xff] }
  0xe5   :  { %6507 = vst [vmem:[#allocation34_spill] sm:$0xff] %v4628_v61  ;;  %1294 = vmatpush.msrb.mxu3 %v529_v54  ;;  %1258 = vmatpush.msra.mxu2 %v445_v56  ;;  %v377_v23 = vld [vmem:[#allocation4 + $0x208] sm:$0xff]  ;;  %v4642_v56 = vld [vmem:[#allocation2 + $0xb8] sm:$0xff] }
  0xe6   :  { %1035 = vmatmul.f32.gmra.mxu0 %v4612_v43  ;;  %v441_v24 = vld [vmem:[#allocation4 + $0x408] sm:$0xff]  ;;  %1218 = vmatpush.msra.mxu1 %v377_v23  ;;  %6511 = vst [vmem:[#allocation38_spill] sm:$0xff] %v4640_v55 }
  0xe7   :  { %v617_v25 = vld [vmem:[#allocation4 + $0x988] sm:$0xff]  ;;  %1259 = vmatpush.msra.mxu2 %v441_v24  ;;  %6512 = vst [vmem:[#allocation39_spill] sm:$0xff] %v4642_v56 }
  0xe8   :  { %1070 = vmatmul.f32.gmra.mxu1 %v4628_v61  ;;  %v525_v26 = vld [vmem:[#allocation4 + $0x6a8] sm:$0xff] }
  0xe9   :  { %v613_v27 = vld [vmem:[#allocation4 + $0x968] sm:$0xff]  ;;  %1295 = vmatpush.msrb.mxu3 %v525_v26 }
  0xea   :  { %1111 = vmatmul.f32.gmra.mxu2 %v4630_v0  ;;  %v521_v44 = vld [vmem:[#allocation4 + $0x688] sm:$0xff] }
  0xeb   :  { %v609_v45 = vld [vmem:[#allocation4 + $0x948] sm:$0xff]  ;;  %1296 = vmatpush.msrb.mxu3 %v521_v44  ;;  %v4652_v44 = vld [vmem:[#allocation2 + $0xf8] sm:$0xff] }
  0xec   :  { %1137 = vmatmul.f32.vlgmr.msra.gmra.mxu3 %v4622_v22  ;;  %v4638_v54 = vld [vmem:[#allocation2 + $0x1a8] sm:$0xff]  ;;  %6515 = vst [vmem:[#allocation42_spill] sm:$0xff] %v4652_v44 }
  0xed   :  { %6510 = vst [vmem:[#allocation37_spill] sm:$0xff] %v4638_v54  ;;  %v517_v23 = vld [vmem:[#allocation4 + $0x668] sm:$0xff] }
  0xee   :  { %1178 = vmatmul.f32.vlgmr.msra.gmra.mxu0 %v4474_v48  ;;  %v621_v48 = vld [vmem:[#allocation4 + $0x9a8] sm:$0xff]  ;;  %1297 = vmatpush.msrb.mxu3 %v517_v23  ;;  %v4660_v23 = vpop.f32.mrf.mxu1 }
  0xef   :  { %1328 = vmatpush.msrb.mxu0 %v621_v48  ;;  %v605_v48 = vld [vmem:[#allocation4 + $0x928] sm:$0xff] }
  0xf0   :  { %1073 = vmatmul.f32.gmra.mxu1 %v4638_v54  ;;  %v597_v24 = vld [vmem:[#allocation4 + $0x8e8] sm:$0xff] }
  0xf1   :  { %1329 = vmatpush.msrb.mxu0 %v617_v25  ;;  %v513_v25 = vld [vmem:[#allocation4 + $0x648] sm:$0xff] }
  0xf2   :  { %1114 = vmatmul.f32.gmra.mxu2 %v4640_v55  ;;  %1298 = vmatpush.msrb.mxu3 %v513_v25  ;;  %v4648_v26 = vld [vmem:[#allocation2 + $0x1e8] sm:$0xff] }
  0xf3   :  { %1330 = vmatpush.msrb.mxu0 %v613_v27  ;;  %6513 = vst [vmem:[#allocation40_spill] sm:$0xff] %v4648_v26  ;;  %v4650_v27 = vld [vmem:[#allocation2 + $0x1f0] sm:$0xff]  ;;  %v585_v25 = vld [vmem:[#allocation4 + $0x888] sm:$0xff] }
  0xf4   :  { %1140 = vmatmul.f32.gmra.mxu3 %v4632_v11  ;;  %6514 = vst [vmem:[#allocation41_spill] sm:$0xff] %v4650_v27  ;;  %v685_v54 = vld [vmem:[#allocation4 + $0xba8] sm:$0xff]  ;;  %v4676_v11 = vld [vmem:[#allocation2 + $0x178] sm:$0xff] }
  0xf5   :  { %1331 = vmatpush.msrb.mxu0 %v609_v45  ;;  %v593_v45 = vld [vmem:[#allocation4 + $0x8c8] sm:$0xff]  ;;  %6517 = vst [vmem:[#allocation44_spill] sm:$0xff] %v4676_v11 }
  0xf6   :  { %1181 = vmatmul.f32.gmra.mxu0 %v4486_v62  ;;  %v601_v62 = vld [vmem:[#allocation4 + $0x908] sm:$0xff]  ;;  %v4674_v55 = vpop.f32.mrf.mxu1 }
  0xf7   :  { %1332 = vmatpush.msrb.mxu0 %v605_v48  ;;  %v589_v48 = vld [vmem:[#allocation4 + $0x8a8] sm:$0xff] }
  0xf8   :  { %1076 = vmatmul.f32.gmra.mxu1 %v4648_v26  ;;  %v4664_v26 = vpop.f32.mrf.mxu3  ;;  %v645_v61 = vld [vmem:[#allocation4 + $0xa68] sm:$0xff] }
  0xf9   :  { %1333 = vmatpush.msrb.mxu0 %v601_v62  ;;  %v509_v62 = vld [vmem:[#allocation4 + $0x628] sm:$0xff] }
  0xfa   :  { %1117 = vmatmul.f32.gmra.mxu2 %v4650_v27  ;;  %1299 = vmatpush.msrb.mxu3 %v509_v62  ;;  %v757_v27 = vld [vmem:[#allocation4 + $0xde8] sm:$0xff] }
  0xfb   :  { %1334 = vmatpush.msrb.mxu0 %v597_v24  ;;  %v505_v24 = vld [vmem:[#allocation4 + $0x608] sm:$0xff]  ;;  %1408 = vmatpush.msrb.mxu2 %v757_v27 }
  0xfc   :  { %1143 = vmatmul.f32.gmra.mxu3 %v4642_v56  ;;  %v4662_v56 = vld [vmem:[#allocation2 + $0x138] sm:$0xff]  ;;  %v693_v62 = vld [vmem:[#allocation4 + $0xbe8] sm:$0xff] }
  0xfd   :  { %1335 = vmatpush.msrb.mxu0 %v593_v45  ;;  %1300 = vmatpush.msrb.mxu3 %v505_v24  ;;  %6516 = vst [vmem:[#allocation43_spill] sm:$0xff] %v4662_v56  ;;  %v577_v45 = vld [vmem:[#allocation4 + $0x848] sm:$0xff] }
  0xfe   :  { %1184 = vmatmul.f32.gmra.mxu0 %v4498_v17  ;;  %v4658_v17 = vpop.f32.mrf.mxu0  ;;  %v753_v24 = vld [vmem:[#allocation4 + $0xdc8] sm:$0xff]  ;;  %1367 = vmatpush.msrb.mxu1 %v693_v62 }
  0xff   :  { %1336 = vmatpush.msrb.mxu0 %v589_v48  ;;  %v821_v48 = vld [vmem:[#allocation4 + $0xfe8] sm:$0xff]  ;;  %1409 = vmatpush.msrb.mxu2 %v753_v24 }
 0x100   :  { %1219 = vmatmul.f32.vlgmr.msra.gmra.mxu1 %v4478_v50  ;;  %1449 = vmatpush.msra.mxu3 %v821_v48  ;;  %v573_v27 = vld [vmem:[#allocation4 + $0x828] sm:$0xff]  ;;  %v4680_v48 = vpop.f32.mrf.mxu3 }
 0x101   :  { %1337 = vmatpush.msrb.mxu0 %v585_v25  ;;  %v689_v50 = vld [vmem:[#allocation4 + $0xbc8] sm:$0xff] }
 0x102   :  { %1260 = vmatmul.f32.vlgmr.msra.gmra.mxu2 %v4480_v51  ;;  %1368 = vmatpush.msrb.mxu1 %v689_v50  ;;  %v817_v51 = vld [vmem:[#allocation4 + $0xfc8] sm:$0xff] }
 0x103   :  { %1450 = vmatpush.msra.mxu3 %v817_v51  ;;  %v745_v62 = vld [vmem:[#allocation4 + $0xd88] sm:$0xff] }
 0x104   :  { %1146 = vmatmul.f32.gmra.mxu3 %v4652_v44  ;;  %v581_v44 = vld [vmem:[#allocation4 + $0x868] sm:$0xff]  ;;  %1369 = vmatpush.msrb.mxu1 %v685_v54 }
 0x105   :  { %1338 = vmatpush.msrb.mxu0 %v581_v44  ;;  %v681_v44 = vld [vmem:[#allocation4 + $0xb88] sm:$0xff] }
 0x106   :  { %1187 = vmatmul.f32.gmra.mxu0 %v4510_v35  ;;  %v4668_v35 = vpop.f32.mrf.mxu2  ;;  %v4672_v25 = vpop.f32.mrf.mxu0  ;;  %v813_v24 = vld [vmem:[#allocation4 + $0xfa8] sm:$0xff]  ;;  %1370 = vmatpush.msrb.mxu1 %v681_v44 }
 0x107   :  { %1339 = vmatpush.msrb.mxu0 %v577_v45  ;;  %v741_v54 = vld [vmem:[#allocation4 + $0xd68] sm:$0xff]  ;;  %1451 = vmatpush.msra.mxu3 %v813_v24 }
 0x108   :  { %1222 = vmatmul.f32.gmra.mxu1 %v4490_v1  ;;  %v673_v1 = vld [vmem:[#allocation4 + $0xb48] sm:$0xff] }
 0x109   :  { %1340 = vmatpush.msrb.mxu0 %v573_v27  ;;  %v677_v27 = vld [vmem:[#allocation4 + $0xb68] sm:$0xff] }
 0x10a   :  { %1263 = vmatmul.f32.gmra.mxu2 %v4492_v2  ;;  %v4688_v2 = vpop.f32.mrf.mxu1  ;;  %1371 = vmatpush.msrb.mxu1 %v677_v27  ;;  %v737_v50 = vld [vmem:[#allocation4 + $0xd48] sm:$0xff] }
 0x10b   :  { %v809_v51 = vld [vmem:[#allocation4 + $0xf88] sm:$0xff] }
 0x10c   :  { %1149 = vmatmul.f32.gmra.mxu3 %v4662_v56  ;;  %v749_v56 = vld [vmem:[#allocation4 + $0xda8] sm:$0xff]  ;;  %1372 = vmatpush.msrb.mxu1 %v673_v1 }
 0x10d   :  { %1410 = vmatpush.msrb.mxu2 %v749_v56  ;;  %1452 = vmatpush.msra.mxu3 %v809_v51  ;;  %v729_v24 = vld [vmem:[#allocation4 + $0xd08] sm:$0xff]  ;;  %v4700_v51 = vld [vmem:[#allocation6] sm:$0xf] }
 0x10e   :  { %1190 = vmatmul.f32.gmra.mxu0 %v4476_v49  ;;  %v569_v49 = vld [vmem:[#allocation4 + $0x808] sm:$0xff]  ;;  %v4684_v45 = vpop.f32.mrf.mxu2  ;;  %v4686_v56 = vpop.f32.mrf.mxu0  ;;  %6519 = vst [vmem:[#allocation46_spill] sm:$0xff] %v4700_v51  ;;  %v4709_v0 = vperm.slane %v4700_v51, 0 }
 0x10f   :  { %1341 = vmatpush.msrb.mxu0 %v569_v49  ;;  %1411 = vmatpush.msrb.mxu2 %v745_v62  ;;  %v733_v49 = vld [vmem:[#allocation4 + $0xd28] sm:$0xff]  ;;  %v4696_v44 = vpop.f32.mrf.mxu3 }
 0x110   :  { %1225 = vmatmul.f32.gmra.mxu1 %v4502_v19  ;;  %v665_v62 = vld [vmem:[#allocation4 + $0xb08] sm:$0xff] }
 0x111   :  { %1412 = vmatpush.msrb.mxu2 %v741_v54  ;;  %v805_v27 = vld [vmem:[#allocation4 + $0xf68] sm:$0xff] }
 0x112   :  { %1266 = vmatmul.f32.gmra.mxu2 %v4504_v20  ;;  %1453 = vmatpush.msra.mxu3 %v805_v27  ;;  %v661_v1 = vld [vmem:[#allocation4 + $0xae8] sm:$0xff]  ;;  %v4704_v20 = vpop.f32.mrf.mxu1 }
 0x113   :  { %1413 = vmatpush.msrb.mxu2 %v737_v50  ;;  %v725_v50 = vld [vmem:[#allocation4 + $0xce8] sm:$0xff] }
 0x114   :  { %1152 = vmatmul.f32.gmra.mxu3 %v4676_v11  ;;  %v4690_v11 = vld [vmem:[#allocation2 + $0x1b8] sm:$0xff]  ;;  %v717_v27 = vld [vmem:[#allocation4 + $0xca8] sm:$0xff] }
 0x115   :  { %6518 = vst [vmem:[#allocation45_spill] sm:$0xff] %v4690_v11  ;;  %1414 = vmatpush.msrb.mxu2 %v733_v49  ;;  %v721_v49 = vld [vmem:[#allocation4 + $0xcc8] sm:$0xff] }
 0x116   :  { %1193 = vmatmul.f32.gmra.mxu0 %v4488_v63  ;;  %v669_v63 = vld [vmem:[#allocation4 + $0xb28] sm:$0xff]  ;;  %v4698_v54 = vpop.f32.mrf.mxu2 }
 0x117   :  { %1373 = vmatpush.msrb.mxu1 %v669_v63  ;;  %1415 = vmatpush.msrb.mxu2 %v729_v24  ;;  %v657_v63 = vld [vmem:[#allocation4 + $0xac8] sm:$0xff] }
 0x118   :  { %v4702_v19 = vpop.f32.mrf.mxu0  ;;  %1228 = vmatmul.f32.gmra.mxu1 %v4514_v37  ;;  %v653_v24 = vld [vmem:[#allocation4 + $0xaa8] sm:$0xff] }
 0x119   :  { %1374 = vmatpush.msrb.mxu1 %v665_v62  ;;  %1416 = vmatpush.msrb.mxu2 %v725_v50  ;;  %v852_v62 = vadd.f32 %v4658_v17, %v4709_v0  ;;  %v713_v37 = vld [vmem:[#allocation4 + $0xc88] sm:$0xff] }
 0x11a   :  { %1269 = vmatmul.f32.gmra.mxu2 %v4516_v38  ;;  %v4722_v17 = vpop.f32.mrf.mxu1  ;;  %v709_v22 = vld [vmem:[#allocation4 + $0xc68] sm:$0xff] }
 0x11b   :  { %1375 = vmatpush.msrb.mxu1 %v661_v1  ;;  %v797_v1 = vld [vmem:[#allocation4 + $0xf28] sm:$0xff]  ;;  %1417 = vmatpush.msrb.mxu2 %v721_v49  ;;  %v893_v38 = vadd.f32 %v4660_v23, %v852_v62 }
 0x11c   :  { %1155 = vmatmul.f32.gmra.mxu3 %v4690_v11  ;;  %v4706_v11 = vld [vmem:[#allocation2 + $0x1f8] sm:$0xff]  ;;  %v705_v23 = vld [vmem:[#allocation4 + $0xc48] sm:$0xff] }
 0x11d   :  { %6520 = vst [vmem:[#allocation47_spill] sm:$0xff] %v4706_v11  ;;  %1376 = vmatpush.msrb.mxu1 %v657_v63  ;;  %1418 = vmatpush.msrb.mxu2 %v717_v27  ;;  %v641_v63 = vld [vmem:[#allocation4 + $0xa48] sm:$0xff]  ;;  %v934_v49 = vadd.f32 %v4668_v35, %v893_v38  ;;  %v374_v27 = vld [vmem:[#allocation4 + $0x1f0] sm:$0xff] }
 0x11e   :  { %1196 = vmatmul.f32.gmra.mxu0 %v4500_v18  ;;  %v801_v18 = vld [vmem:[#allocation4 + $0xf48] sm:$0xff]  ;;  %v4719_v51 = vpop.f32.mrf.mxu2 }
 0x11f   :  { %1454 = vmatpush.msra.mxu3 %v801_v18  ;;  %v4717_v50 = vpop.f32.mrf.mxu3  ;;  %v649_v18 = vld [vmem:[#allocation4 + $0xa88] sm:$0xff]  ;;  %1377 = vmatpush.msrb.mxu1 %v653_v24  ;;  %v855_v24 = vadd.f32 %v4672_v25, %v4709_v0 }
 0x120   :  { %1419 = vmatpush.msrb.mxu2 %v713_v37  ;;  %1231 = vmatmul.f32.gmra.mxu1 %v4522_v57  ;;  %v789_v62 = vld [vmem:[#allocation4 + $0xee8] sm:$0xff]  ;;  %v366_v37 = vld [vmem:[#allocation4 + $0x1b0] sm:$0xff] }
 0x121   :  { %1455 = vmatpush.msra.mxu3 %v797_v1  ;;  %1378 = vmatpush.msrb.mxu1 %v649_v18  ;;  %v637_v57 = vld [vmem:[#allocation4 + $0xa28] sm:$0xff]  ;;  %v896_v25 = vadd.f32 %v4674_v55, %v855_v24  ;;  %v362_v55 = vld [vmem:[#allocation4 + $0x190] sm:$0xff]  ;;  %v858_v24 = vadd.f32 %v4686_v56, %v4709_v0 }
 0x122   :  { %1272 = vmatmul.f32.gmra.mxu2 %v4524_v58  ;;  %v701_v1 = vld [vmem:[#allocation4 + $0xc28] sm:$0xff]  ;;  %1490 = vmatpush.msra.mxu0 %v374_v27  ;;  %v370_v58 = vld [vmem:[#allocation4 + $0x1d0] sm:$0xff]  ;;  %v907_v18 = vpop.f32.mrf.mxu1 }
 0x123   :  { %1379 = vmatpush.msrb.mxu1 %v645_v61  ;;  %1420 = vmatpush.msrb.mxu2 %v709_v22  ;;  %v633_v61 = vld [vmem:[#allocation4 + $0xa08] sm:$0xff]  ;;  %v354_v27 = vld [vmem:[#allocation4 + $0x150] sm:$0xff] }
 0x124   :  { %1158 = vmatmul.f32.gmra.mxu3 %v4706_v11  ;;  %v793_v11 = vld [vmem:[#allocation4 + $0xf08] sm:$0xff]  ;;  %1491 = vmatpush.msra.mxu0 %v370_v58  ;;  %v870_v58 = vadd.f32 %v4696_v44, %v4709_v0  ;;  %v342_v44 = vld [vmem:[#allocation4 + $0xf0] sm:$0xff] }
 0x125   :  { %1456 = vmatpush.msra.mxu3 %v793_v11  ;;  %1380 = vmatpush.msrb.mxu1 %v641_v63  ;;  %v697_v21 = vld [vmem:[#allocation4 + $0xc08] sm:$0xff]  ;;  %v867_v63 = vadd.f32 %v4680_v48, %v4709_v0 }
 0x126   :  { %1199 = vmatmul.f32.gmra.mxu0 %v4512_v36  ;;  %v4731_v11 = vpop.f32.mrf.mxu2  ;;  %1421 = vmatpush.msrb.mxu2 %v705_v23 }
 0x127   :  { %1457 = vmatpush.msra.mxu3 %v789_v62  ;;  %1381 = vmatpush.msrb.mxu1 %v637_v57  ;;  %v908_v23 = vadd.f32 %v907_v18, %v867_v63  ;;  %v358_v62 = vld [vmem:[#allocation4 + $0x170] sm:$0xff]  ;;  %v873_v63 = vadd.f32 %v4717_v50, %v4709_v0 }
 0x128   :  { %v1015_v36 = vpop.f32.mrf.mxu0  ;;  %1422 = vmatpush.msrb.mxu2 %v701_v1  ;;  %1492 = vmatpush.msra.mxu0 %v366_v37 }
 0x129   :  { %1234 = vmatmul.f32.gmra.mxu1 %v4534_v13 }
 0x12a   :  { %1275 = vmatmul.f32.gmra.mxu2 %v4536_v14  ;;  %1382 = vmatpush.msrb.mxu1 %v633_v61  ;;  %v910_v56 = vpop.f32.mrf.mxu1 }
 0x12b   :  { %1423 = vmatpush.msrb.mxu2 %v697_v21  ;;  %1493 = vmatpush.msra.mxu0 %v362_v55  ;;  %v350_v21 = vld [vmem:[#allocation4 + $0x130] sm:$0xff]  ;;  %v911_v18 = vadd.f32 %v910_v56, %v870_v58 }
 0x12c   :  { %1301 = vmatmul.f32.vlgmr.msrb.gmra.mxu3 %v4526_v59  ;;  %v566_v56 = vld [vmem:[#allocation4 + $0x7f0] sm:$0xff] }
 0x12d   :  { %v974_v35 = vpop.f32.mrf.mxu3  ;;  %1494 = vmatpush.msra.mxu0 %v358_v62 }
 0x12e   :  { %1342 = vmatmul.f32.vlgmr.msrb.gmra.mxu0 %v4528_v60  ;;  %v975_v59 = vadd.f32 %v974_v35, %v934_v49  ;;  %v785_v60 = vld [vmem:[#allocation4 + $0xec8] sm:$0xff]  ;;  %v937_v49 = vadd.f32 %v4684_v45, %v896_v25  ;;  %v948_v48 = vpop.f32.mrf.mxu2  ;;  %v899_v45 = vadd.f32 %v4688_v2, %v858_v24  ;;  %v861_v2 = vadd.f32 %v4702_v19, %v4709_v0  ;;  %v346_v25 = vld [vmem:[#allocation4 + $0x110] sm:$0xff] }
 0x12f   :  { %1458 = vmatpush.msra.mxu3 %v785_v60  ;;  %v4745_v13 = vadd.f32 %v948_v48, %v908_v23  ;;  %1495 = vmatpush.msra.mxu0 %v354_v27  ;;  %v769_v19 = vld [vmem:[#allocation4 + $0xe48] sm:$0xff]  ;;  %v330_v23 = vld [vmem:[#allocation4 + $0x90] sm:$0xff] }
 0x130   :  { %v4734_v22 = vadd.f32 %v1015_v36, %v975_v59  ;;  %v781_v36 = vld [vmem:[#allocation4 + $0xea8] sm:$0xff]  ;;  %v940_v35 = vadd.f32 %v4698_v54, %v899_v45  ;;  %v502_v27 = vld [vmem:[#allocation4 + $0x5f0] sm:$0xff] }
 0x131   :  { %1459 = vmatpush.msra.mxu3 %v781_v36  ;;  %1237 = vmatmul.f32.gmra.mxu1 %v4546_v32  ;;  %v773_v59 = vld [vmem:[#allocation4 + $0xe68] sm:$0xff]  ;;  %v322_v45 = vld [vmem:[#allocation4 + $0x50] sm:$0xff] }
 0x132   :  { %v1018_v38 = vpop.f32.mrf.mxu0  ;;  %1278 = vmatmul.f32.gmra.mxu2 %v4548_v33  ;;  %1496 = vmatpush.msra.mxu0 %v350_v21  ;;  %v902_v33 = vadd.f32 %v4704_v20, %v861_v2  ;;  %v334_v20 = vld [vmem:[#allocation4 + $0xb0] sm:$0xff] }
 0x133   :  { %1572 = vmatpush.msra.mxu2 %v502_v27  ;;  %v430_v2 = vld [vmem:[#allocation4 + $0x3b0] sm:$0xff] }
 0x134   :  { %1304 = vmatmul.f32.gmra.mxu3 %v4538_v15  ;;  %v777_v15 = vld [vmem:[#allocation4 + $0xe88] sm:$0xff]  ;;  %1497 = vmatpush.msra.mxu0 %v346_v25  ;;  %v943_v55 = vadd.f32 %v4719_v51, %v902_v33  ;;  %v326_v51 = vld [vmem:[#allocation4 + $0x70] sm:$0xff] }
 0x135   :  { %1460 = vmatpush.msra.mxu3 %v777_v15  ;;  %v438_v15 = vld [vmem:[#allocation4 + $0x3f0] sm:$0xff] }
 0x136   :  { %1345 = vmatmul.f32.gmra.mxu0 %v4540_v16  ;;  %v977_v14 = vpop.f32.mrf.mxu3  ;;  %v951_v60 = vpop.f32.mrf.mxu2  ;;  %1531 = vmatpush.msra.mxu1 %v438_v15  ;;  %v458_v15 = vld [vmem:[#allocation4 + $0x490] sm:$0xff] }
 0x137   :  { %v978_v57 = vadd.f32 %v977_v14, %v937_v49  ;;  %1461 = vmatpush.msra.mxu3 %v773_v59  ;;  %v4759_v37 = vadd.f32 %v951_v60, %v911_v18  ;;  %1498 = vmatpush.msra.mxu0 %v342_v44  ;;  %v765_v49 = vld [vmem:[#allocation4 + $0xe28] sm:$0xff]  ;;  %v314_v59 = vld [vmem:[#allocation4 + $0x10] sm:$0xff] }
 0x138   :  { %v426_v18 = vld [vmem:[#allocation4 + $0x390] sm:$0xff] }
 0x139   :  { %v4748_v16 = vadd.f32 %v1018_v38, %v978_v57  ;;  %v913_v38 = vpop.f32.mrf.mxu1  ;;  %1462 = vmatpush.msra.mxu3 %v769_v19  ;;  %1240 = vmatmul.f32.gmra.mxu1 %v4558_v46  ;;  %v490_v60 = vld [vmem:[#allocation4 + $0x590] sm:$0xff] }
 0x13a   :  { %1281 = vmatmul.f32.gmra.mxu2 %v4560_v47  ;;  %v914_v24 = vadd.f32 %v913_v38, %v873_v63  ;;  %v761_v47 = vld [vmem:[#allocation4 + $0xe08] sm:$0xff]  ;;  %v558_v44 = vld [vmem:[#allocation4 + $0x7b0] sm:$0xff] }
 0x13b   :  { %v1021_v1 = vpop.f32.mrf.mxu0  ;;  %1463 = vmatpush.msra.mxu3 %v765_v49  ;;  %v418_v19 = vld [vmem:[#allocation4 + $0x350] sm:$0xff] }
 0x13c   :  { %1307 = vmatmul.f32.gmra.mxu3 %v4550_v34  ;;  %v410_v49 = vld [vmem:[#allocation4 + $0x310] sm:$0xff] }
 0x13d   :  { %1464 = vmatpush.msra.mxu3 %v761_v47 }
 0x13e   :  { %1348 = vmatmul.f32.gmra.mxu0 %v4552_v39  ;;  %v980_v32 = vpop.f32.mrf.mxu3  ;;  %v338_v39 = vld [vmem:[#allocation4 + $0xd0] sm:$0xff]  ;;  %v954_v36 = vpop.f32.mrf.mxu2 }
 0x13f   :  { %v981_v54 = vadd.f32 %v980_v32, %v940_v35  ;;  %1499 = vmatpush.msra.mxu0 %v338_v39  ;;  %v4771_v62 = vadd.f32 %v954_v36, %v914_v24  ;;  %1613 = vmatpush.msrb.mxu3 %v566_v56  ;;  %v562_v35 = vld [vmem:[#allocation4 + $0x7d0] sm:$0xff] }
 0x140   :  { %v422_v32 = vld [vmem:[#allocation4 + $0x370] sm:$0xff] }
 0x141   :  { %v4762_v34 = vadd.f32 %v1021_v1, %v981_v54  ;;  %1500 = vmatpush.msra.mxu0 %v334_v20  ;;  %v1056_v48 = vpop.f32.mrf.mxu1  ;;  %1383 = vmatmul.f32.vlgmr.msrb.gmra.mxu1 %v4570_v5  ;;  %v498_v1 = vld [vmem:[#allocation4 + $0x5d0] sm:$0xff] }
 0x142   :  { %1424 = vmatmul.f32.vlgmr.msrb.gmra.mxu2 %v4572_v6  ;;  %v318_v5 = vld [vmem:[#allocation4 + $0x30] sm:$0xff]  ;;  %1614 = vmatpush.msrb.mxu3 %v562_v35 }
 0x143   :  { %v1024_v61 = vpop.f32.mrf.mxu0  ;;  %1501 = vmatpush.msra.mxu0 %v330_v23  ;;  %v434_v6 = vld [vmem:[#allocation4 + $0x3d0] sm:$0xff]  ;;  %1573 = vmatpush.msra.mxu2 %v498_v1 }
 0x144   :  { %1310 = vmatmul.f32.gmra.mxu3 %v4562_v52  ;;  %v864_v52 = vadd.f32 %v4664_v26, %v4709_v0  ;;  %v1057_v0 = vadd.f32 %v1056_v48, %v4734_v22  ;;  %1532 = vmatpush.msra.mxu1 %v434_v6  ;;  %v494_v22 = vld [vmem:[#allocation4 + $0x5b0] sm:$0xff]  ;;  %v6522_v6 = vld [vmem:[#allocation33_spill] sm:$0xff] }
 0x145   :  { %1502 = vmatpush.msra.mxu0 %v326_v51  ;;  %1574 = vmatpush.msra.mxu2 %v494_v22  ;;  %v486_v54 = vld [vmem:[#allocation4 + $0x570] sm:$0xff] }
 0x146   :  { %1351 = vmatmul.f32.gmra.mxu0 %v4564_v53  ;;  %v905_v57 = vadd.f32 %v4722_v17, %v864_v52  ;;  %v1097_v21 = vpop.f32.mrf.mxu2  ;;  %1533 = vmatpush.msra.mxu1 %v430_v2  ;;  %v478_v20 = vld [vmem:[#allocation4 + $0x530] sm:$0xff] }
 0x147   :  { %v983_v50 = vpop.f32.mrf.mxu3  ;;  %v4784_v17 = vadd.f32 %v1097_v21, %v1057_v0  ;;  %1503 = vmatpush.msra.mxu0 %v322_v45  ;;  %1575 = vmatpush.msra.mxu2 %v490_v60  ;;  %v474_v36 = vld [vmem:[#allocation4 + $0x510] sm:$0xff]  ;;  %v6521_v21 = vld [vmem:[#allocation32_spill] sm:$0xff] }
 0x148   :  { %v984_v46 = vadd.f32 %v983_v50, %v943_v55  ;;  %v946_v26 = vadd.f32 %v4731_v11, %v905_v57  ;;  %1534 = vmatpush.msra.mxu1 %v426_v18  ;;  %1615 = vmatpush.msrb.mxu3 %v558_v44  ;;  %v414_v55 = vld [vmem:[#allocation4 + $0x330] sm:$0xff] }
 0x149   :  { %1504 = vmatpush.msra.mxu0 %v318_v5  ;;  %1386 = vmatmul.f32.gmra.mxu1 %v4582_v29  ;;  %v406_v50 = vld [vmem:[#allocation4 + $0x2f0] sm:$0xff] }
 0x14a   :  { %v4775_v53 = vadd.f32 %v1024_v61, %v984_v46  ;;  %1427 = vmatmul.f32.gmra.mxu2 %v4584_v30  ;;  %1535 = vmatpush.msra.mxu1 %v422_v32  ;;  %v482_v30 = vld [vmem:[#allocation4 + $0x550] sm:$0xff] }
 0x14b   :  { %v1027_v14 = vpop.f32.mrf.mxu0  ;;  %1505 = vmatpush.msra.mxu0 %v314_v59  ;;  %1576 = vmatpush.msra.mxu2 %v486_v54  ;;  %v546_v52 = vld [vmem:[#allocation4 + $0x750] sm:$0xff] }
 0x14c   :  { %1313 = vmatmul.f32.gmra.mxu3 %v4574_v7  ;;  %1536 = vmatpush.msra.mxu1 %v418_v19  ;;  %v398_v51 = vld [vmem:[#allocation4 + $0x2b0] sm:$0xff] }
 0x14d   :  { %1577 = vmatpush.msra.mxu2 %v482_v30  ;;  %v542_v45 = vld [vmem:[#allocation4 + $0x730] sm:$0xff] }
 0x14e   :  { %1354 = vmatmul.f32.gmra.mxu0 %v4576_v8  ;;  %v1059_v8 = vpop.f32.mrf.mxu1  ;;  %v1100_v38 = vpop.f32.mrf.mxu2  ;;  %1537 = vmatpush.msra.mxu1 %v414_v55  ;;  %v394_v56 = vld [vmem:[#allocation4 + $0x290] sm:$0xff] }
 0x14f   :  { %v986_v58 = vpop.f32.mrf.mxu3  ;;  %v1060_v33 = vadd.f32 %v1059_v8, %v4748_v16  ;;  %v554_v16 = vld [vmem:[#allocation4 + $0x790] sm:$0xff]  ;;  %1578 = vmatpush.msra.mxu2 %v478_v20 }
 0x150   :  { %v987_v7 = vadd.f32 %v986_v58, %v946_v26  ;;  %1616 = vmatpush.msrb.mxu3 %v554_v16  ;;  %1538 = vmatpush.msra.mxu1 %v410_v49  ;;  %v390_v0 = vld [vmem:[#allocation4 + $0x270] sm:$0xff]  ;;  %v4823_v58 = vld [vmem:[#allocation2] sm:$0xff] }
 0x151   :  { %v4793_v29 = vadd.f32 %v1100_v38, %v1060_v33  ;;  %1389 = vmatmul.f32.gmra.mxu1 %v4594_v3  ;;  %v470_v3 = vld [vmem:[#allocation4 + $0x4f0] sm:$0xff]  ;;  %1579 = vmatpush.msra.mxu2 %v474_v36 }
 0x152   :  { %v4786_v11 = vadd.f32 %v1027_v14, %v987_v7  ;;  %1430 = vmatmul.f32.gmra.mxu2 %v4596_v4  ;;  %1539 = vmatpush.msra.mxu1 %v406_v50  ;;  %v466_v14 = vld [vmem:[#allocation4 + $0x4d0] sm:$0xff] }
 0x153   :  { %v1030_v25 = vpop.f32.mrf.mxu0  ;;  %1580 = vmatpush.msra.mxu2 %v470_v3  ;;  %v454_v26 = vld [vmem:[#allocation4 + $0x470] sm:$0xff] }
 0x154   :  { %1316 = vmatmul.f32.gmra.mxu3 %v4586_v31  ;;  %v538_v5 = vld [vmem:[#allocation4 + $0x710] sm:$0xff] }
 0x155   :  { %1581 = vmatpush.msra.mxu2 %v466_v14  ;;  %v450_v7 = vld [vmem:[#allocation4 + $0x450] sm:$0xff] }
 0x156   :  { %1357 = vmatmul.f32.gmra.mxu0 %v4588_v40  ;;  %v1062_v39 = vpop.f32.mrf.mxu1  ;;  %v1103_v23 = vpop.f32.mrf.mxu2  ;;  %v630_v8 = vld [vmem:[#allocation4 + $0x9f0] sm:$0xff] }
 0x157   :  { %v989_v61 = vpop.f32.mrf.mxu3  ;;  %v1063_v24 = vadd.f32 %v1062_v39, %v4762_v34  ;;  %v402_v34 = vld [vmem:[#allocation4 + $0x2d0] sm:$0xff]  ;;  %1654 = vmatpush.msrb.mxu0 %v630_v8  ;;  %v6525_v39 = vld [vmem:[#allocation36_spill] sm:$0xff] }
 0x158   :  { %v990_v31 = vadd.f32 %v989_v61, %v4745_v13  ;;  %v550_v13 = vld [vmem:[#allocation4 + $0x770] sm:$0xff]  ;;  %1540 = vmatpush.msra.mxu1 %v402_v34  ;;  %v3893_v34 = vld [vmem:[#allocation2 + $0x80] sm:$0xff] }
 0x159   :  { %v4803_v48 = vadd.f32 %v1103_v23, %v1063_v24  ;;  %1617 = vmatpush.msrb.mxu3 %v550_v13  ;;  %1392 = vmatmul.f32.gmra.mxu1 %v4606_v28  ;;  %v534_v2 = vld [vmem:[#allocation4 + $0x6f0] sm:$0xff] }
 0x15a   :  { %v4796_v63 = vadd.f32 %v1030_v25, %v990_v31  ;;  %1433 = vmatmul.f32.gmra.mxu2 %v4608_v41  ;;  %1541 = vmatpush.msra.mxu1 %v398_v51  ;;  %v446_v25 = vld [vmem:[#allocation4 + $0x430] sm:$0xff] }
 0x15b   :  { %v1033_v40 = vpop.f32.mrf.mxu0  ;;  %1618 = vmatpush.msrb.mxu3 %v546_v52  ;;  %v626_v59 = vld [vmem:[#allocation4 + $0x9d0] sm:$0xff] }
 0x15c   :  { %1319 = vmatmul.f32.gmra.mxu3 %v4598_v9  ;;  %1542 = vmatpush.msra.mxu1 %v394_v56  ;;  %v378_v54 = vld [vmem:[#allocation4 + $0x210] sm:$0xff] }
 0x15d   :  { %1619 = vmatpush.msrb.mxu3 %v542_v45  ;;  %1655 = vmatpush.msrb.mxu0 %v626_v59  ;;  %v442_v38 = vld [vmem:[#allocation4 + $0x410] sm:$0xff]  ;;  %v3895_v59 = vld [vmem:[#allocation2 + $0x8] sm:$0xff] }
 0x15e   :  { %1360 = vmatmul.f32.gmra.mxu0 %v4600_v10  ;;  %v1065_v9 = vpop.f32.mrf.mxu1  ;;  %v1106_v57 = vpop.f32.mrf.mxu2  ;;  %1543 = vmatpush.msra.mxu1 %v390_v0  ;;  %v6523_v19 = vld [vmem:[#allocation34_spill] sm:$0xff]  ;;  %v6524_v61 = vld [vmem:[#allocation35_spill] sm:$0xff]  ;;  %v6530_v0 = vld [vmem:[#allocation41_spill] sm:$0xff] }
 0x15f   :  { %v992_v46 = vpop.f32.mrf.mxu3  ;;  %v1066_v27 = vadd.f32 %v1065_v9, %v4775_v53  ;;  %1620 = vmatpush.msrb.mxu3 %v538_v5  ;;  %v530_v30 = vld [vmem:[#allocation4 + $0x6d0] sm:$0xff] }
 0x160   :  { %v993_v4 = vadd.f32 %v992_v46, %v4759_v37  ;;  %v462_v37 = vld [vmem:[#allocation4 + $0x4b0] sm:$0xff] }
 0x161   :  { %v4813_v28 = vadd.f32 %v1106_v57, %v1066_v27  ;;  %1582 = vmatpush.msra.mxu2 %v462_v37  ;;  %1395 = vmatmul.f32.gmra.mxu1 %v4618_v12  ;;  %v382_v12 = vld [vmem:[#allocation4 + $0x230] sm:$0xff] }
 0x162   :  { %v4806_v47 = vadd.f32 %v1033_v40, %v993_v4  ;;  %1436 = vmatmul.f32.gmra.mxu2 %v6521_v21  ;;  %1621 = vmatpush.msrb.mxu3 %v534_v2  ;;  %v618_v31 = vld [vmem:[#allocation4 + $0x990] sm:$0xff]  ;;  %v6526_v4 = vld [vmem:[#allocation37_spill] sm:$0xff] }
 0x163   :  { %v1036_v10 = vpop.f32.mrf.mxu0  ;;  %1583 = vmatpush.msra.mxu2 %v458_v15  ;;  %v526_v16 = vld [vmem:[#allocation4 + $0x6b0] sm:$0xff]  ;;  %v3894_v21 = vld [vmem:[#allocation2 + $0xc0] sm:$0xff] }
 0x164   :  { %1322 = vmatmul.f32.gmra.mxu3 %v4610_v42  ;;  %v614_v55 = vld [vmem:[#allocation4 + $0x970] sm:$0xff] }
 0x165   :  { %1584 = vmatpush.msra.mxu2 %v454_v26  ;;  %1622 = vmatpush.msrb.mxu3 %v530_v30  ;;  %v610_v24 = vld [vmem:[#allocation4 + $0x950] sm:$0xff] }
 0x166   :  { %1363 = vmatmul.f32.gmra.mxu0 %v4612_v43  ;;  %v1068_v42 = vpop.f32.mrf.mxu1  ;;  %v1109_v22 = vpop.f32.mrf.mxu2  ;;  %v522_v46 = vld [vmem:[#allocation4 + $0x690] sm:$0xff] }
 0x167   :  { %v995_v1 = vpop.f32.mrf.mxu3  ;;  %v1069_v35 = vadd.f32 %v1068_v42, %v4786_v11  ;;  %1585 = vmatpush.msra.mxu2 %v450_v7  ;;  %v622_v11 = vld [vmem:[#allocation4 + $0x9b0] sm:$0xff]  ;;  %1623 = vmatpush.msrb.mxu3 %v526_v16  ;;  %v6529_v42 = vld [vmem:[#allocation40_spill] sm:$0xff] }
 0x168   :  { %v996_v41 = vadd.f32 %v995_v1, %v4771_v62  ;;  %v386_v62 = vld [vmem:[#allocation4 + $0x250] sm:$0xff]  ;;  %1656 = vmatpush.msrb.mxu0 %v622_v11 }
 0x169   :  { %v4827_v18 = vadd.f32 %v1109_v22, %v1069_v35  ;;  %1544 = vmatpush.msra.mxu1 %v386_v62  ;;  %1586 = vmatpush.msra.mxu2 %v446_v25  ;;  %v606_v3 = vld [vmem:[#allocation4 + $0x930] sm:$0xff] }
 0x16a   :  { %v4818_v53 = vadd.f32 %v1036_v10, %v996_v41  ;;  %1398 = vmatmul.f32.gmra.mxu1 %v6523_v19  ;;  %1439 = vmatmul.f32.gmra.mxu2 %v6524_v61  ;;  %v6527_v9 = vld [vmem:[#allocation38_spill] sm:$0xff]  ;;  %v6528_v10 = vld [vmem:[#allocation39_spill] sm:$0xff] }
 0x16b   :  { %v4816_v43 = vpop.f32.mrf.mxu0  ;;  %1545 = vmatpush.msra.mxu1 %v382_v12  ;;  %1587 = vmatpush.msra.mxu2 %v442_v38  ;;  %v518_v14 = vld [vmem:[#allocation4 + $0x670] sm:$0xff] }
 0x16c   :  { %1465 = vmatmul.f32.vlgmr.msra.gmra.mxu3 %v6522_v6  ;;  %1657 = vmatpush.msrb.mxu0 %v618_v31  ;;  %v598_v37 = vld [vmem:[#allocation4 + $0x8f0] sm:$0xff] }
 0x16d   :  { %1546 = vmatpush.msra.mxu1 %v378_v54  ;;  %1624 = vmatpush.msrb.mxu3 %v522_v46  ;;  %v594_v41 = vld [vmem:[#allocation4 + $0x8d0] sm:$0xff]  ;;  %v3897_v54 = vld [vmem:[#allocation2 + $0x100] sm:$0xff]  ;;  %v4887_v46 = vld [vmem:[#allocation2 + $0x48] sm:$0xff] }
 0x16e   :  { %1506 = vmatmul.f32.vlgmr.msra.gmra.mxu0 %v4823_v58  ;;  %v1071_v32 = vpop.f32.mrf.mxu1  ;;  %v1112_v20 = vpop.f32.mrf.mxu2  ;;  %v6531_v26 = vld [vmem:[#allocation42_spill] sm:$0xff]  ;;  %v6532_v11 = vld [vmem:[#allocation43_spill] sm:$0xff] }
 0x16f   :  { %v1138_v60 = vpop.f32.mrf.mxu3  ;;  %v1072_v40 = vadd.f32 %v1071_v32, %v4796_v63  ;;  %1658 = vmatpush.msrb.mxu0 %v614_v55  ;;  %1625 = vmatpush.msrb.mxu3 %v518_v14  ;;  %v590_v5 = vld [vmem:[#allocation4 + $0x8b0] sm:$0xff] }
 0x170   :  { %v4830_v44 = vadd.f32 %v1138_v60, %v4784_v17  ;;  %v4837_v17 = vld [vmem:[#allocation2 + $0x40] sm:$0xff]  ;;  %v510_v6 = vld [vmem:[#allocation4 + $0x630] sm:$0xff] }
 0x171   :  { %v4841_v49 = vadd.f32 %v1112_v20, %v1072_v40  ;;  %1659 = vmatpush.msrb.mxu0 %v610_v24  ;;  %v586_v7 = vld [vmem:[#allocation4 + $0x890] sm:$0xff] }
 0x172   :  { %1401 = vmatmul.f32.gmra.mxu1 %v6526_v4  ;;  %1442 = vmatmul.f32.gmra.mxu2 %v6527_v9  ;;  %v3896_v60 = vld [vmem:[#allocation2 + $0x10] sm:$0xff]  ;;  %v6533_v9 = vld [vmem:[#allocation44_spill] sm:$0xff] }
 0x173   :  { %v4832_v33 = vpop.f32.mrf.mxu0  ;;  %1660 = vmatpush.msrb.mxu0 %v606_v3  ;;  %v506_v32 = vld [vmem:[#allocation4 + $0x610] sm:$0xff] }
 0x174   :  { %1468 = vmatmul.f32.gmra.mxu3 %v6525_v39  ;;  %v578_v38 = vld [vmem:[#allocation4 + $0x850] sm:$0xff] }
 0x175   :  { %v694_v19 = vld [vmem:[#allocation4 + $0xbf0] sm:$0xff] }
 0x176   :  { %1509 = vmatmul.f32.gmra.mxu0 %v4837_v17  ;;  %v1074_v23 = vpop.f32.mrf.mxu1  ;;  %v1115_v51 = vpop.f32.mrf.mxu2  ;;  %v574_v30 = vld [vmem:[#allocation4 + $0x830] sm:$0xff]  ;;  %1695 = vmatpush.msrb.mxu1 %v694_v19 }
 0x177   :  { %v1141_v13 = vpop.f32.mrf.mxu3  ;;  %v1075_v52 = vadd.f32 %v1074_v23, %v4806_v47  ;;  %v514_v47 = vld [vmem:[#allocation4 + $0x650] sm:$0xff] }
 0x178   :  { %v4844_v36 = vadd.f32 %v1141_v13, %v4793_v29  ;;  %v602_v29 = vld [vmem:[#allocation4 + $0x910] sm:$0xff]  ;;  %1626 = vmatpush.msrb.mxu3 %v514_v47 }
 0x179   :  { %v4854_v27 = vadd.f32 %v1115_v51, %v1075_v52  ;;  %1661 = vmatpush.msrb.mxu0 %v602_v29  ;;  %v754_v39 = vld [vmem:[#allocation4 + $0xdd0] sm:$0xff] }
 0x17a   :  { %v2146_v63 = vadd.f32 %v4844_v36, %v4830_v44  ;;  %1404 = vmatmul.f32.gmra.mxu1 %v6529_v42  ;;  %1445 = vmatmul.f32.gmra.mxu2 %v6530_v0  ;;  %v690_v40 = vld [vmem:[#allocation4 + $0xbd0] sm:$0xff]  ;;  %v4904_v0 = vld [vmem:[#allocation2 + $0x88] sm:$0xff] }
 0x17b   :  { %v4846_v50 = vpop.f32.mrf.mxu0  ;;  %1662 = vmatpush.msrb.mxu0 %v598_v37  ;;  %1627 = vmatpush.msrb.mxu3 %v510_v6  ;;  %v686_v13 = vld [vmem:[#allocation4 + $0xbb0] sm:$0xff] }
 0x17c   :  { %1471 = vmatmul.f32.gmra.mxu3 %v6528_v10  ;;  %1696 = vmatpush.msrb.mxu1 %v690_v40  ;;  %v750_v24 = vld [vmem:[#allocation4 + $0xdb0] sm:$0xff]  ;;  %v3900_v10 = vld [vmem:[#allocation2 + $0x140] sm:$0xff] }
 0x17d   :  { %1663 = vmatpush.msrb.mxu0 %v594_v41  ;;  %1628 = vmatpush.msrb.mxu3 %v506_v32  ;;  %v682_v3 = vld [vmem:[#allocation4 + $0xb90] sm:$0xff]  ;;  %v3906_v40 = vld [vmem:[#allocation2 + $0x1c0] sm:$0xff] }
 0x17e   :  { %1512 = vmatmul.f32.gmra.mxu0 %v3893_v34  ;;  %v1077_v56 = vpop.f32.mrf.mxu1  ;;  %v1118_v62 = vpop.f32.mrf.mxu2  ;;  %1697 = vmatpush.msrb.mxu1 %v686_v13  ;;  %v746_v4 = vld [vmem:[#allocation4 + $0xd90] sm:$0xff] }
 0x17f   :  { %v1144_v45 = vpop.f32.mrf.mxu3  ;;  %1664 = vmatpush.msrb.mxu0 %v590_v5  ;;  %v678_v34 = vld [vmem:[#allocation4 + $0xb70] sm:$0xff]  ;;  %v4351_v5 = vmov 64.0  }
 0x180   :  { %v4857_v57 = vadd.f32 %v1144_v45, %v4803_v48  ;;  %v1078_v48 = vadd.f32 %v1077_v56, %v4818_v53  ;;  %v582_v53 = vld [vmem:[#allocation4 + $0x870] sm:$0xff]  ;;  %1698 = vmatpush.msrb.mxu1 %v682_v3  ;;  %3843 = vrcp.f32 %v4351_v5 }
 0x181   :  { %1665 = vmatpush.msrb.mxu0 %v586_v7  ;;  %v742_v29 = vld [vmem:[#allocation4 + $0xd70] sm:$0xff] }
 0x182   :  { %v2147_v1 = vadd.f32 %v2146_v63, %v4857_v57  ;;  %v4866_v8 = vadd.f32 %v1118_v62, %v1078_v48  ;;  %1547 = vmatmul.f32.vlgmr.msra.gmra.mxu1 %v3895_v59  ;;  %1588 = vmatmul.f32.vlgmr.msra.gmra.mxu2 %v3896_v60  ;;  %v570_v63 = vld [vmem:[#allocation4 + $0x810] sm:$0xff] }
 0x183   :  { %v4859_v15 = vpop.f32.mrf.mxu0  ;;  %1666 = vmatpush.msrb.mxu0 %v582_v53  ;;  %1699 = vmatpush.msrb.mxu1 %v678_v34  ;;  %v674_v51 = vld [vmem:[#allocation4 + $0xb50] sm:$0xff] }
 0x184   :  { %1474 = vmatmul.f32.gmra.mxu3 %v6531_v26  ;;  %v738_v37 = vld [vmem:[#allocation4 + $0xd50] sm:$0xff] }
 0x185   :  { %1667 = vmatpush.msrb.mxu0 %v578_v38  ;;  %1700 = vmatpush.msrb.mxu1 %v674_v51  ;;  %v670_v47 = vld [vmem:[#allocation4 + $0xb30] sm:$0xff] }
 0x186   :  { %1515 = vmatmul.f32.gmra.mxu0 %v3894_v21  ;;  %v4871_v22 = vpop.f32.mrf.mxu1  ;;  %v4877_v61 = vpop.f32.mrf.mxu2  ;;  %v734_v42 = vld [vmem:[#allocation4 + $0xd30] sm:$0xff]  ;;  %v6534_v21 = vld [vmem:[#allocation45_spill] sm:$0xff] }
 0x187   :  { %v1147_v35 = vpop.f32.mrf.mxu3  ;;  %1668 = vmatpush.msrb.mxu0 %v574_v30  ;;  %v3902_v26 = vld [vmem:[#allocation2 + $0x90] sm:$0xff]  ;;  %1701 = vmatpush.msrb.mxu1 %v670_v47  ;;  %v3904_v30 = vld [vmem:[#allocation2 + $0xc8] sm:$0xff] }
 0x188   :  { %v4869_v2 = vadd.f32 %v1147_v35, %v4813_v28  ;;  %v758_v28 = vld [vmem:[#allocation4 + $0xdf0] sm:$0xff] }
 0x189   :  { %1736 = vmatpush.msrb.mxu2 %v758_v28  ;;  %1669 = vmatpush.msrb.mxu0 %v570_v63  ;;  %v666_v6 = vld [vmem:[#allocation4 + $0xb10] sm:$0xff] }
 0x18a   :  { %v2148_v25 = vadd.f32 %v2147_v1, %v4869_v2  ;;  %1550 = vmatmul.f32.gmra.mxu1 %v4887_v46  ;;  %v730_v48 = vld [vmem:[#allocation4 + $0xd10] sm:$0xff] }
 0x18b   :  { %v4873_v12 = vpop.f32.mrf.mxu0  ;;  %1737 = vmatpush.msrb.mxu2 %v754_v39  ;;  %v662_v7 = vld [vmem:[#allocation4 + $0xaf0] sm:$0xff]  ;;  %1702 = vmatpush.msrb.mxu1 %v666_v6 }
 0x18c   :  { %1477 = vmatmul.f32.gmra.mxu3 %v6532_v11  ;;  %v726_v35 = vld [vmem:[#allocation4 + $0xcf0] sm:$0xff] }
 0x18d   :  { %1738 = vmatpush.msrb.mxu2 %v750_v24  ;;  %v6535_v53 = vld [vmem:[#allocation46_spill] sm:$0xff]  ;;  %1703 = vmatpush.msrb.mxu1 %v662_v7  ;;  %v6536_v39 = vld [vmem:[#allocation47_spill] sm:$0xff] }
 0x18e   :  { %1518 = vmatmul.f32.gmra.mxu0 %v3897_v54  ;;  %v4882_v55 = vpop.f32.mrf.mxu1  ;;  %v4894_v14 = vpop.f32.mrf.mxu2  ;;  %v4911_v59 = vperm.slane %v6535_v53, 1  ;;  %v658_v28 = vld [vmem:[#allocation4 + $0xad0] sm:$0xff] }
 0x18f   :  { %v1150_v31 = vpop.f32.mrf.mxu3  ;;  %1739 = vmatpush.msrb.mxu2 %v746_v4  ;;  %v4920_v54 = vpop.eup %3843  ;;  %v722_v19 = vld [vmem:[#allocation4 + $0xcd0] sm:$0xff]  ;;  %1704 = vmatpush.msrb.mxu1 %v658_v28  ;;  %v375_v28 = vld [vmem:[#allocation4 + $0x1f8] sm:$0xff] }
 0x190   :  { %v4880_v16 = vadd.f32 %v1150_v31, %v4827_v18  ;;  %v4890_v18 = vld [vmem:[#allocation2 + $0x50] sm:$0xff]  ;;  %1818 = vmatpush.msra.mxu0 %v375_v28  ;;  %vm2203_vm0 = vweird.f32 %v4920_v54 }
 0x191   :  { %1591 = vmatmul.f32.gmra.mxu2 %v4890_v18  ;;  %v3905_v31 = vld [vmem:[#allocation2 + $0xd0] sm:$0xff] }
 0x192   :  { %v2149_v23 = vadd.f32 %v2148_v25, %v4880_v16  ;;  %1740 = vmatpush.msrb.mxu2 %v742_v29  ;;  %1553 = vmatmul.f32.gmra.mxu1 %v4904_v0  ;;  %v654_v13 = vld [vmem:[#allocation4 + $0xab0] sm:$0xff]  ;;  %v1192_v29 = vadd.f32 %v4873_v12, %v4911_v59  ;;  %v3909_v12 = vld [vmem:[#allocation2 + $0x18] sm:$0xff] }
 0x193   :  { %v4884_v20 = vpop.f32.mrf.mxu0  ;;  %v718_v24 = vld [vmem:[#allocation4 + $0xcb0] sm:$0xff]  ;;  %1705 = vmatpush.msrb.mxu1 %v654_v13  ;;  %v371_v13 = vld [vmem:[#allocation4 + $0x1d8] sm:$0xff] }
 0x194   :  { %1480 = vmatmul.f32.gmra.mxu3 %v6533_v9  ;;  %1741 = vmatpush.msrb.mxu2 %v738_v37  ;;  %v650_v3 = vld [vmem:[#allocation4 + $0xa90] sm:$0xff] }
 0x195   :  { %v714_v4 = vld [vmem:[#allocation4 + $0xc90] sm:$0xff]  ;;  %1706 = vmatpush.msrb.mxu1 %v650_v3  ;;  %1819 = vmatpush.msra.mxu0 %v371_v13 }
 0x196   :  { %1521 = vmatmul.f32.gmra.mxu0 %v3900_v10  ;;  %v4899_v56 = vpop.f32.mrf.mxu1  ;;  %1742 = vmatpush.msrb.mxu2 %v734_v42  ;;  %v4908_v62 = vpop.f32.mrf.mxu2  ;;  %v710_v47 = vld [vmem:[#allocation4 + $0xc70] sm:$0xff]  ;;  %v3907_v42 = vld [vmem:[#allocation2 + $0x108] sm:$0xff] }
 0x197   :  { %v1153_v52 = vpop.f32.mrf.mxu3  ;;  %v642_v5 = vld [vmem:[#allocation4 + $0xa50] sm:$0xff] }
 0x198   :  { %v4897_v45 = vadd.f32 %v1153_v52, %v4841_v49  ;;  %v3903_v49 = vld [vmem:[#allocation2 + $0x180] sm:$0xff]  ;;  %1743 = vmatpush.msrb.mxu2 %v730_v48  ;;  %v706_v6 = vld [vmem:[#allocation4 + $0xc50] sm:$0xff] }
 0x199   :  { %1594 = vmatmul.f32.gmra.mxu2 %v3902_v26  ;;  %v3908_v26 = vld [vmem:[#allocation2 + $0x110] sm:$0xff] }
 0x19a   :  { %v2150_v41 = vadd.f32 %v2149_v23, %v4897_v45  ;;  %1744 = vmatpush.msrb.mxu2 %v726_v35  ;;  %1556 = vmatmul.f32.gmra.mxu1 %v3904_v30  ;;  %v2199_v23 = vmul.f32 64.0, %v4920_v54  ;;  %v822_v35 = vld [vmem:[#allocation4 + $0xff0] sm:$0xff] }
 0x19b   :  { %v4901_v1 = vpop.f32.mrf.mxu0  ;;  %1777 = vmatpush.msra.mxu3 %v822_v35  ;;  %v818_v30 = vld [vmem:[#allocation4 + $0xfd0] sm:$0xff] }
 0x19c   :  { %1483 = vmatmul.f32.gmra.mxu3 %v6534_v21  ;;  %1745 = vmatpush.msrb.mxu2 %v722_v19  ;;  %v2200_v52 = vsub.f32 1.0, %v2199_v23  ;;  %v802_v35 = vld [vmem:[#allocation4 + $0xf50] sm:$0xff] }
 0x19d   :  { %1778 = vmatpush.msra.mxu3 %v818_v30 }
 0x19e   :  { %1524 = vmatmul.f32.gmra.mxu0 %v3903_v49  ;;  %v4916_v32 = vpop.f32.mrf.mxu1  ;;  %v4927_v63 = vpop.f32.mrf.mxu2  ;;  %1746 = vmatpush.msrb.mxu2 %v718_v24  ;;  %v3910_v49 = vld [vmem:[#allocation2 + $0x20] sm:$0xff]  ;;  %v2201_v48 = vmul.f32 %v4920_v54, %v2200_v52  ;;  %v1195_v24 = vadd.f32 %v4884_v20, %v4911_v59  ;;  %v810_v20 = vld [vmem:[#allocation4 + $0xf90] sm:$0xff]  ;;  %v1186_v52 = vadd.f32 %v4846_v50, %v4911_v59  ;;  %v363_v50 = vld [vmem:[#allocation4 + $0x198] sm:$0xff] }
 0x19f   :  { %v1156_v25 = vpop.f32.mrf.mxu3 }
 0x1a0   :  { %v4914_v60 = vadd.f32 %v1156_v25, %v4854_v27  ;;  %v1180_v27 = vadd.f32 %v4816_v43, %v4911_v59  ;;  %1747 = vmatpush.msrb.mxu2 %v714_v4  ;;  %v2202_v23 = vadd.f32 %v4920_v54, %v2201_v48  ;;  %v814_v4 = vld [vmem:[#allocation4 + $0xfb0] sm:$0xff] }
 0x1a1   :  { %1597 = vmatmul.f32.gmra.mxu2 %v3905_v31  ;;  %1779 = vmatpush.msra.mxu3 %v814_v4 }
 0x1a2   :  { %v2151_v38 = vadd.f32 %v2150_v41, %v4914_v60  ;;  %v1221_v10 = vadd.f32 %v4871_v22, %v1180_v27  ;;  %v646_v41 = vld [vmem:[#allocation4 + $0xa70] sm:$0xff]  ;;  %1559 = vmatmul.f32.gmra.mxu1 %v3907_v42  ;;  %1748 = vmatpush.msrb.mxu2 %v710_v47  ;;  %v3913_v47 = vld [vmem:[#allocation2 + $0x58] sm:$0xff]  ;;  %v3914_v42 = vld [vmem:[#allocation2 + $0x60] sm:$0xff] }
 0x1a3   :  { %v4918_v11 = vpop.f32.mrf.mxu0  ;;  %1707 = vmatpush.msrb.mxu1 %v646_v41  ;;  %1780 = vmatpush.msra.mxu3 %v810_v20  ;;  %v790_v20 = vld [vmem:[#allocation4 + $0xef0] sm:$0xff] }
 0x1a4   :  { %1486 = vmatmul.f32.gmra.mxu3 %v6536_v39  ;;  %v1262_v22 = vadd.f32 %v4877_v61, %v1221_v10  ;;  %1749 = vmatpush.msrb.mxu2 %v706_v6  ;;  %v4953_v10 = vld [vmem:[#allocation2 + $0x148] sm:$0xff]  ;;  %v1227_v6 = vadd.f32 %v4899_v56, %v1186_v52 }
 0x1a5   :  { %1708 = vmatpush.msrb.mxu1 %v642_v5 }
 0x1a6   :  { %1527 = vmatmul.f32.gmra.mxu0 %v3906_v40  ;;  %v1232_v34 = vpop.f32.mrf.mxu1  ;;  %v1273_v53 = vpop.f32.mrf.mxu2 }
 0x1a7   :  { %v1159_v9 = vpop.f32.mrf.mxu3  ;;  %v1233_v7 = vadd.f32 %v1232_v34, %v1192_v29  ;;  %v3912_v34 = vld [vmem:[#allocation2 + $0x150] sm:$0xff] }
 0x1a8   :  { %v4931_v43 = vadd.f32 %v1159_v9, %v4866_v8  ;;  %v1183_v8 = vadd.f32 %v4832_v33, %v4911_v59  ;;  %v702_v33 = vld [vmem:[#allocation4 + $0xc30] sm:$0xff] }
 0x1a9   :  { %1600 = vmatmul.f32.gmra.mxu2 %v3908_v26  ;;  %v4942_v61 = vadd.f32 %v1273_v53, %v1233_v7  ;;  %v698_v29 = vld [vmem:[#allocation4 + $0xc10] sm:$0xff]  ;;  %v367_v26 = vld [vmem:[#allocation4 + $0x1b8] sm:$0xff]  ;;  %v1189_v53 = vadd.f32 %v4859_v15, %v4911_v59 }
 0x1aa   :  { %v2152_v37 = vadd.f32 %v2151_v38, %v4931_v43  ;;  %v638_v38 = vld [vmem:[#allocation4 + $0xa30] sm:$0xff]  ;;  %v1224_v31 = vadd.f32 %v4882_v55, %v1183_v8  ;;  %1750 = vmatpush.msrb.mxu2 %v702_v33  ;;  %1562 = vmatmul.f32.gmra.mxu1 %v4953_v10  ;;  %v4962_v8 = vsel %vm2203_vm0, %v4920_v54, %v2202_v23  ;;  %v5016_v23 = vld [vmem:[#allocation2 + $0xa0] sm:$0xff] }
 0x1ab   :  { %v4935_v51 = vpop.f32.mrf.mxu0  ;;  %1709 = vmatpush.msrb.mxu1 %v638_v38  ;;  %v634_v55 = vld [vmem:[#allocation4 + $0xa10] sm:$0xff]  ;;  %6537 = vst [vmem:[#allocation32_spill] sm:$0xff] %v4962_v8  ;;  %1820 = vmatpush.msra.mxu0 %v367_v26  ;;  %v1198_v38 = vadd.f32 %v4901_v1, %v4911_v59 }
 0x1ac   :  { %v2153_v21 = vrot.slane %v2152_v37, 4  ;;  %1629 = vmatmul.f32.vlgmr.msrb.gmra.mxu3 %v3909_v12  ;;  %1751 = vmatpush.msrb.mxu2 %v698_v29 }
 0x1ad   :  { %1710 = vmatpush.msrb.mxu1 %v634_v55  ;;  %1821 = vmatpush.msra.mxu0 %v363_v50  ;;  %v1230_v55 = vadd.f32 %v4916_v32, %v1189_v53  ;;  %v1201_v32 = vadd.f32 %v4918_v11, %v4911_v59  ;;  %v5032_v50 = vld [vmem:[#allocation2 + $0x1c8] sm:$0xff]  ;;  %v782_v59 = vld [vmem:[#allocation4 + $0xeb0] sm:$0xff]  ;;  %v339_v11 = vld [vmem:[#allocation4 + $0xd8] sm:$0xff] }
 0x1ae   :  { %1670 = vmatmul.f32.vlgmr.msrb.gmra.mxu0 %v3910_v49  ;;  %v2154_v25 = vadd.f32 %v2153_v21, %v2152_v37  ;;  %v1235_v40 = vpop.f32.mrf.mxu1  ;;  %v1265_v37 = vadd.f32 %v4894_v14, %v1224_v31  ;;  %v1276_v12 = vpop.f32.mrf.mxu2  ;;  %v806_v49 = vld [vmem:[#allocation4 + $0xf70] sm:$0xff] }
 0x1af   :  { %v1302_v19 = vpop.f32.mrf.mxu3  ;;  %1781 = vmatpush.msra.mxu3 %v806_v49  ;;  %v343_v49 = vld [vmem:[#allocation4 + $0xf8] sm:$0xff] }
 0x1b0   :  { %v2155_v27 = vrot.slane %v2154_v25, 2  ;;  %v4945_v39 = vadd.f32 %v1302_v19, %v1262_v22  ;;  %v1236_v22 = vadd.f32 %v1235_v40, %v1195_v24  ;;  %v794_v40 = vld [vmem:[#allocation4 + $0xf10] sm:$0xff] }
 0x1b1   :  { %1603 = vmatmul.f32.gmra.mxu2 %v3912_v34  ;;  %1782 = vmatpush.msra.mxu3 %v802_v35  ;;  %v5041_v35 = vld [vmem:[#allocation2 + $0xd8] sm:$0xff] }
 0x1b2   :  { %v2156_v9 = vadd.f32 %v2155_v27, %v2154_v25  ;;  %v4964_v14 = vadd.f32 %v1276_v12, %v1236_v22  ;;  %v359_v25 = vld [vmem:[#allocation4 + $0x178] sm:$0xff]  ;;  %v5008_v27 = vld [vmem:[#allocation2 + $0x190] sm:$0xff] }
 0x1b3   :  { %v4950_v3 = vpop.f32.mrf.mxu0  ;;  %1822 = vmatpush.msra.mxu0 %v359_v25  ;;  %v786_v22 = vld [vmem:[#allocation4 + $0xed0] sm:$0xff] }
 0x1b4   :  { %v2157_v41 = vrot.slane %v2156_v9, 1  ;;  %1632 = vmatmul.f32.gmra.mxu3 %v3913_v47 }
 0x1b6   :  { %1673 = vmatmul.f32.gmra.mxu0 %v3914_v42  ;;  %v2158_v21 = vadd.f32 %v2157_v41, %v2156_v9  ;;  %v1238_v54 = vpop.f32.mrf.mxu1  ;;  %v1279_v4 = vpop.f32.mrf.mxu2  ;;  %v351_v9 = vld [vmem:[#allocation4 + $0x138] sm:$0xff] }
 0x1b7   :  { %v1305_v5 = vpop.f32.mrf.mxu3  ;;  %v1239_v24 = vadd.f32 %v1238_v54, %v1198_v38  ;;  %v347_v42 = vld [vmem:[#allocation4 + $0x118] sm:$0xff]  ;;  %v5038_v54 = vld [vmem:[#allocation2 + $0x1d0] sm:$0xff] }
 0x1b8   :  { %v2205_v48 = vmul.f32 %v4962_v8, %v2158_v21  ;;  %v4968_v7 = vadd.f32 %v1305_v5, %v1265_v37 }
 0x1b9   :  { %1606 = vmatmul.f32.gmra.mxu2 %v5008_v27  ;;  %v5022_v37 = vadd.f32 %v1279_v4, %v1239_v24  ;;  %v774_v4 = vld [vmem:[#allocation4 + $0xe70] sm:$0xff] }
 0x1ba   :  { %v4977_v28 = vsub.f32 %v4830_v44, %v2205_v48  ;;  %v4980_v56 = vsub.f32 %v4844_v36, %v2205_v48  ;;  %v4983_v19 = vsub.f32 %v4857_v57, %v2205_v48  ;;  %v4986_v30 = vsub.f32 %v4869_v2, %v2205_v48  ;;  %v5000_v36 = vld [vmem:[#allocation2 + $0x188] sm:$0xff]  ;;  %v798_v57 = vld [vmem:[#allocation4 + $0xf30] sm:$0xff] }
 0x1bb   :  { %v4974_v33 = vpop.f32.mrf.mxu0  ;;  %v4989_v15 = vsub.f32 %v4880_v16, %v2205_v48  ;;  %v4992_v1 = vsub.f32 %v4897_v45, %v2205_v48  ;;  %v4995_v31 = vsub.f32 %v4914_v60, %v2205_v48  ;;  %v4998_v44 = vsub.f32 %v4931_v43, %v2205_v48  ;;  %1565 = vmatmul.f32.gmra.mxu1 %v5000_v36  ;;  %v355_v60 = vld [vmem:[#allocation4 + $0x158] sm:$0xff] }
 0x1bc   :  { %v1268_v2 = vadd.f32 %v4908_v62, %v1227_v6  ;;  %v2241_v16 = vmul.f32 %v4977_v28, %v4977_v28  ;;  %v2245_v45 = vmul.f32 %v4980_v56, %v4980_v56  ;;  %v5011_v43 = vld [vmem:[#allocation2 + $0x98] sm:$0xff]  ;;  %v2249_v13 = vmul.f32 %v4983_v19, %v4983_v19  ;;  %1783 = vmatpush.msra.mxu3 %v798_v57  ;;  %v5046_v57 = vld [vmem:[#allocation2 + $0xe0] sm:$0xff] }
 0x1bd   :  { %1635 = vmatmul.f32.gmra.mxu3 %v5011_v43  ;;  %1823 = vmatpush.msra.mxu0 %v355_v60  ;;  %v2253_v29 = vmul.f32 %v4986_v30, %v4986_v30  ;;  %v2257_v21 = vmul.f32 %v4989_v15, %v4989_v15  ;;  %v2261_v5 = vmul.f32 %v4992_v1, %v4992_v1 }
 0x1be   :  { %v2273_v62 = vadd.f32 %v2245_v45, %v2241_v16  ;;  %1676 = vmatmul.f32.gmra.mxu0 %v5016_v23  ;;  %v1241_v47 = vpop.f32.mrf.mxu1  ;;  %1784 = vmatpush.msra.mxu3 %v794_v40  ;;  %v1271_v48 = vadd.f32 %v4927_v63, %v1230_v55  ;;  %v2265_v25 = vmul.f32 %v4995_v31, %v4995_v31  ;;  %v1282_v63 = vpop.f32.mrf.mxu2  ;;  %v335_v16 = vld [vmem:[#allocation4 + $0xb8] sm:$0xff] }
 0x1bf   :  { %v1308_v34 = vpop.f32.mrf.mxu3  ;;  %1824 = vmatpush.msra.mxu0 %v351_v9  ;;  %v1242_v38 = vadd.f32 %v1241_v47, %v1201_v32  ;;  %6538 = vst [vmem:[#allocation33_spill] sm:$0xff] %v5046_v57  ;;  %v2269_v60 = vmul.f32 %v4998_v44, %v4998_v44  ;;  %v331_v9 = vld [vmem:[#allocation4 + $0x98] sm:$0xff] }
 0x1c0   :  { %v2274_v52 = vadd.f32 %v2273_v62, %v2249_v13  ;;  %v5024_v41 = vadd.f32 %v1308_v34, %v1268_v2  ;;  %1785 = vmatpush.msra.mxu3 %v790_v20  ;;  %v778_v2 = vld [vmem:[#allocation4 + $0xe90] sm:$0xff]  ;;  %v323_v32 = vld [vmem:[#allocation4 + $0x58] sm:$0xff] }
 0x1c1   :  { %1825 = vmatpush.msra.mxu0 %v347_v42  ;;  %1609 = vmatmul.f32.gmra.mxu2 %v5038_v54  ;;  %v5051_v13 = vadd.f32 %v1282_v63, %v1242_v38  ;;  %v770_v20 = vld [vmem:[#allocation4 + $0xe50] sm:$0xff]  ;;  %v503_v63 = vld [vmem:[#allocation4 + $0x5f8] sm:$0xff] }
 0x1c2   :  { %v2275_v12 = vadd.f32 %v2274_v52, %v2253_v29  ;;  %1786 = vmatpush.msra.mxu3 %v786_v22  ;;  %v327_v29 = vld [vmem:[#allocation4 + $0x78] sm:$0xff]  ;;  %v5059_v52 = vld [vmem:[#allocation2 + $0x28] sm:$0xff]  ;;  %v5062_v42 = vld [vmem:[#allocation2 + $0x30] sm:$0xff]  ;;  %1900 = vmatpush.msra.mxu2 %v503_v63 }
 0x1c3   :  { %v5026_v26 = vpop.f32.mrf.mxu0  ;;  %1568 = vmatmul.f32.gmra.mxu1 %v5032_v50  ;;  %1826 = vmatpush.msra.mxu0 %v343_v49  ;;  %6539 = vst [vmem:[#allocation34_spill] sm:$0xff] %v5059_v52  ;;  %v766_v22 = vld [vmem:[#allocation4 + $0xe30] sm:$0xff]  ;;  %v5068_v49 = vld [vmem:[#allocation2 + $0x120] sm:$0xff] }
 0x1c4   :  { %v2276_v6 = vadd.f32 %v2275_v12, %v2257_v21  ;;  %1787 = vmatpush.msra.mxu3 %v782_v59  ;;  %6540 = vst [vmem:[#allocation35_spill] sm:$0xff] %v5062_v42  ;;  %v5065_v21 = vld [vmem:[#allocation2 + $0x118] sm:$0xff] }
 0x1c5   :  { %1638 = vmatmul.f32.gmra.mxu3 %v5041_v35  ;;  %1827 = vmatpush.msra.mxu0 %v339_v11  ;;  %6541 = vst [vmem:[#allocation36_spill] sm:$0xff] %v5065_v21  ;;  %v315_v11 = vld [vmem:[#allocation4 + $0x18] sm:$0xff] }
 0x1c6   :  { %v2277_v53 = vadd.f32 %v2276_v6, %v2261_v5  ;;  %1679 = vmatmul.f32.gmra.mxu0 %v5046_v57  ;;  %v5055_v24 = vpop.f32.mrf.mxu1  ;;  %1788 = vmatpush.msra.mxu3 %v778_v2  ;;  %6542 = vst [vmem:[#allocation37_spill] sm:$0xff] %v5068_v49  ;;  %v5071_v5 = vpop.f32.mrf.mxu2  ;;  %v762_v6 = vld [vmem:[#allocation4 + $0xe10] sm:$0xff]  ;;  %v567_v2 = vld [vmem:[#allocation4 + $0x7f8] sm:$0xff] }
 0x1c7   :  { %v1311_v45 = vpop.f32.mrf.mxu3  ;;  %1828 = vmatpush.msra.mxu0 %v335_v16  ;;  %v439_v16 = vld [vmem:[#allocation4 + $0x3f8] sm:$0xff] }
 0x1c8   :  { %v2278_v40 = vadd.f32 %v2277_v53, %v2265_v25  ;;  %v5053_v62 = vadd.f32 %v1311_v45, %v1271_v48  ;;  %1789 = vmatpush.msra.mxu3 %v774_v4  ;;  %v319_v48 = vld [vmem:[#allocation4 + $0x38] sm:$0xff]  ;;  %1859 = vmatpush.msra.mxu1 %v439_v16 }
 0x1c9   :  { %1829 = vmatpush.msra.mxu0 %v331_v9  ;;  %1752 = vmatmul.f32.vlgmr.msrb.gmra.mxu2 %v5062_v42  ;;  %v499_v4 = vld [vmem:[#allocation4 + $0x5d8] sm:$0xff]  ;;  %v5080_v9 = vld [vmem:[#allocation2 + $0x68] sm:$0xff] }
 0x1ca   :  { %v2279_v34 = vadd.f32 %v2278_v40, %v2269_v60  ;;  %1790 = vmatpush.msra.mxu3 %v770_v20  ;;  %v435_v60 = vld [vmem:[#allocation4 + $0x3d8] sm:$0xff]  ;;  %6543 = vst [vmem:[#allocation38_spill] sm:$0xff] %v5080_v9  ;;  %v5083_v20 = vld [vmem:[#allocation2 + $0x70] sm:$0xff]  ;;  %1901 = vmatpush.msra.mxu2 %v499_v4 }
 0x1cb   :  { %v5057_v55 = vpop.f32.mrf.mxu0  ;;  %1711 = vmatmul.f32.vlgmr.msrb.gmra.mxu1 %v5059_v52  ;;  %1830 = vmatpush.msra.mxu0 %v327_v29  ;;  %6544 = vst [vmem:[#allocation39_spill] sm:$0xff] %v5083_v20  ;;  %v431_v29 = vld [vmem:[#allocation4 + $0x3b8] sm:$0xff] }
 0x1cc   :  { %v2280_v47 = vrot.slane %v2279_v34, 4  ;;  %1791 = vmatpush.msra.mxu3 %v766_v22  ;;  %1860 = vmatpush.msra.mxu1 %v435_v60  ;;  %v5086_v22 = vld [vmem:[#allocation2 + $0x158] sm:$0xff] }
 0x1cd   :  { %1641 = vmatmul.f32.gmra.mxu3 %v5065_v21  ;;  %1831 = vmatpush.msra.mxu0 %v323_v32  ;;  %6545 = vst [vmem:[#allocation40_spill] sm:$0xff] %v5086_v22  ;;  %v487_v60 = vld [vmem:[#allocation4 + $0x578] sm:$0xff] }
 0x1ce   :  { %v2281_v12 = vadd.f32 %v2280_v47, %v2279_v34  ;;  %1682 = vmatmul.f32.gmra.mxu0 %v5068_v49  ;;  %v5076_v38 = vpop.f32.mrf.mxu1  ;;  %1792 = vmatpush.msra.mxu3 %v762_v6  ;;  %v495_v47 = vld [vmem:[#allocation4 + $0x5b8] sm:$0xff]  ;;  %v5092_v6 = vpop.f32.mrf.mxu2  ;;  %v5136_v49 = vld [vmem:[#allocation2 + $0x1e0] sm:$0xff] }
 0x1cf   :  { %v1314_v59 = vpop.f32.mrf.mxu3  ;;  %1832 = vmatpush.msra.mxu0 %v319_v48  ;;  %v427_v48 = vld [vmem:[#allocation4 + $0x398] sm:$0xff]  ;;  %1861 = vmatpush.msra.mxu1 %v431_v29  ;;  %6554 = vst [vmem:[#allocation49_spill] sm:$0xff] %v5136_v49 }
 0x1d0   :  { %v2282_v25 = vrot.slane %v2281_v12, 2  ;;  %v5074_v53 = vadd.f32 %v1314_v59, %v4942_v61  ;;  %1941 = vmatpush.msrb.mxu3 %v567_v2  ;;  %v563_v61 = vld [vmem:[#allocation4 + $0x7d8] sm:$0xff]  ;;  %1902 = vmatpush.msra.mxu2 %v495_v47 }
 0x1d1   :  { %1833 = vmatpush.msra.mxu0 %v315_v11  ;;  %1755 = vmatmul.f32.gmra.mxu2 %v5083_v20  ;;  %v491_v59 = vld [vmem:[#allocation4 + $0x598] sm:$0xff] }
 0x1d2   :  { %v2283_v40 = vadd.f32 %v2282_v25, %v2281_v12  ;;  %v5089_v12 = vld [vmem:[#allocation2 + $0x160] sm:$0xff]  ;;  %1942 = vmatpush.msrb.mxu3 %v563_v61  ;;  %v559_v11 = vld [vmem:[#allocation4 + $0x7b8] sm:$0xff]  ;;  %1862 = vmatpush.msra.mxu1 %v427_v48 }
 0x1d3   :  { %v5078_v45 = vpop.f32.mrf.mxu0  ;;  %1714 = vmatmul.f32.gmra.mxu1 %v5080_v9  ;;  %6546 = vst [vmem:[#allocation41_spill] sm:$0xff] %v5089_v12  ;;  %1903 = vmatpush.msra.mxu2 %v491_v59  ;;  %v423_v4 = vld [vmem:[#allocation4 + $0x378] sm:$0xff] }
 0x1d4   :  { %v2284_v34 = vrot.slane %v2283_v40, 1  ;;  %1943 = vmatpush.msrb.mxu3 %v559_v11  ;;  %v419_v29 = vld [vmem:[#allocation4 + $0x358] sm:$0xff]  ;;  %1863 = vmatpush.msra.mxu1 %v423_v4  ;;  %v5114_v11 = vld [vmem:[#allocation2 + $0x1a0] sm:$0xff] }
 0x1d5   :  { %1644 = vmatmul.f32.gmra.mxu3 %v5086_v22  ;;  %1904 = vmatpush.msra.mxu2 %v487_v60  ;;  %v555_v47 = vld [vmem:[#allocation4 + $0x798] sm:$0xff]  ;;  %6550 = vst [vmem:[#allocation45_spill] sm:$0xff] %v5114_v11 }
 0x1d6   :  { %v2285_v32 = vadd.f32 %v2284_v34, %v2283_v40  ;;  %1685 = vmatmul.f32.gmra.mxu0 %v5089_v12  ;;  %v5098_v16 = vpop.f32.mrf.mxu1  ;;  %v483_v34 = vld [vmem:[#allocation4 + $0x558] sm:$0xff]  ;;  %v5104_v12 = vld [vmem:[#allocation2 + $0xa8] sm:$0xff]  ;;  %1864 = vmatpush.msra.mxu1 %v419_v29 }
 0x1d7   :  { %v1317_v25 = vpop.f32.mrf.mxu3  ;;  %6547 = vst [vmem:[#allocation42_spill] sm:$0xff] %v5104_v12  ;;  %v5111_v48 = vld [vmem:[#allocation2 + $0x198] sm:$0xff]  ;;  %1905 = vmatpush.msra.mxu2 %v483_v34  ;;  %1944 = vmatpush.msrb.mxu3 %v555_v47  ;;  %v5127_v47 = vld [vmem:[#allocation2 + $0xe8] sm:$0xff] }
 0x1d8   :  { %v2325_v63 = vmul.f32 %v2285_v32, %v4962_v8  ;;  %v5096_v2 = vadd.f32 %v1317_v25, %v4964_v14  ;;  %v5108_v14 = vld [vmem:[#allocation2 + $0xb0] sm:$0xff]  ;;  %v479_v32 = vld [vmem:[#allocation4 + $0x538] sm:$0xff]  ;;  %6549 = vst [vmem:[#allocation44_spill] sm:$0xff] %v5111_v48  ;;  %v5117_v25 = vpop.f32.mrf.mxu2 }
 0x1d9   :  { %6548 = vst [vmem:[#allocation43_spill] sm:$0xff] %v5108_v14  ;;  %1758 = vmatmul.f32.gmra.mxu2 %v5108_v14  ;;  %v415_v59 = vld [vmem:[#allocation4 + $0x338] sm:$0xff] }
 0x1da   :  { %v5102_v61 = vadd.f32 1e-05, %v2325_v63  ;;  %v475_v63 = vld [vmem:[#allocation4 + $0x518] sm:$0xff]  ;;  %1906 = vmatpush.msra.mxu2 %v479_v32  ;;  %1865 = vmatpush.msra.mxu1 %v415_v59  ;;  %6551 = vst [vmem:[#allocation46_spill] sm:$0xff] %v5127_v47 }
 0x1db   :  { %v5100_v40 = vpop.f32.mrf.mxu0  ;;  %1717 = vmatmul.f32.gmra.mxu1 %v5104_v12  ;;  %v551_v60 = vld [vmem:[#allocation4 + $0x778] sm:$0xff] }
 0x1dc   :  { %3845 = vrsqrt.f32 %v5102_v61  ;;  %v411_v4 = vld [vmem:[#allocation4 + $0x318] sm:$0xff]  ;;  %1907 = vmatpush.msra.mxu2 %v475_v63  ;;  %1945 = vmatpush.msrb.mxu3 %v551_v60  ;;  %vm2339_vm2 = vweird.f32 %v5102_v61 }
 0x1dd   :  { %1647 = vmatmul.f32.gmra.mxu3 %v5111_v48  ;;  %v471_v34 = vld [vmem:[#allocation4 + $0x4f8] sm:$0xff]  ;;  %1866 = vmatpush.msra.mxu1 %v411_v4 }
 0x1de   :  { %1688 = vmatmul.f32.gmra.mxu0 %v5114_v11  ;;  %v5122_v22 = vpop.f32.mrf.mxu1  ;;  %v407_v11 = vld [vmem:[#allocation4 + $0x2f8] sm:$0xff]  ;;  %1908 = vmatpush.msra.mxu2 %v471_v34 }
 0x1df   :  { %v1320_v12 = vpop.f32.mrf.mxu3  ;;  %v467_v29 = vld [vmem:[#allocation4 + $0x4d8] sm:$0xff]  ;;  %1867 = vmatpush.msra.mxu1 %v407_v11 }
 0x1e0   :  { %v5120_v14 = vadd.f32 %v1320_v12, %v5022_v37  ;;  %v403_v37 = vld [vmem:[#allocation4 + $0x2d8] sm:$0xff]  ;;  %v5130_v12 = vld [vmem:[#allocation2 + $0xf0] sm:$0xff]  ;;  %1909 = vmatpush.msra.mxu2 %v467_v29  ;;  %v5139_v34 = vpop.f32.mrf.mxu2 }
 0x1e1   :  { %6552 = vst [vmem:[#allocation47_spill] sm:$0xff] %v5130_v12  ;;  %1761 = vmatmul.f32.gmra.mxu2 %v5130_v12  ;;  %v547_v32 = vld [vmem:[#allocation4 + $0x758] sm:$0xff]  ;;  %1868 = vmatpush.msra.mxu1 %v403_v37 }
 0x1e2   :  { %v3846_v20 = vpop.eup %3845  ;;  %v463_v59 = vld [vmem:[#allocation4 + $0x4b8] sm:$0xff]  ;;  %1946 = vmatpush.msrb.mxu3 %v547_v32 }
 0x1e3   :  { %v5124_v48 = vpop.f32.mrf.mxu0  ;;  %v2334_v9 = vmul.f32 %v3846_v20, %v5102_v61  ;;  %1720 = vmatmul.f32.gmra.mxu1 %v5127_v47  ;;  %v5133_v60 = vld [vmem:[#allocation2 + $0x1d8] sm:$0xff]  ;;  %1910 = vmatpush.msra.mxu2 %v463_v59  ;;  %vm2340_vm1 = vweird.f32 %v3846_v20  ;;  %v5149_v59 = vld [vmem:[#allocation2 + $0x128] sm:$0xff] }
 0x1e4   :  { %6553 = vst [vmem:[#allocation48_spill] sm:$0xff] %v5133_v60  ;;  %v399_v4 = vld [vmem:[#allocation4 + $0x2b8] sm:$0xff]  ;;  %vm2341_vm3 = vmor %vm2339_vm2, %vm2340_vm1 }
 0x1e5   :  { %v2335_v63 = vmul.f32 %v3846_v20, %v2334_v9  ;;  %1650 = vmatmul.f32.gmra.mxu3 %v5133_v60  ;;  %v459_v47 = vld [vmem:[#allocation4 + $0x498] sm:$0xff]  ;;  %1869 = vmatpush.msra.mxu1 %v399_v4 }
 0x1e6   :  { %1691 = vmatmul.f32.gmra.mxu0 %v5136_v49  ;;  %v543_v21 = vld [vmem:[#allocation4 + $0x738] sm:$0xff]  ;;  %v5144_v60 = vpop.f32.mrf.mxu1  ;;  %1911 = vmatpush.msra.mxu2 %v459_v47 }
 0x1e7   :  { %v2336_v12 = vmul.f32 0.5, %v2335_v63  ;;  %v1323_v11 = vpop.f32.mrf.mxu3  ;;  %v395_v9 = vld [vmem:[#allocation4 + $0x298] sm:$0xff]  ;;  %1947 = vmatpush.msrb.mxu3 %v543_v21  ;;  %v5152_v63 = vld [vmem:[#allocation2 + $0x130] sm:$0xff] }
 0x1e8   :  { %v5142_v42 = vadd.f32 %v1323_v11, %v5051_v13  ;;  %v455_v29 = vld [vmem:[#allocation4 + $0x478] sm:$0xff]  ;;  %1870 = vmatpush.msra.mxu1 %v395_v9  ;;  %6555 = vst [vmem:[#allocation50_spill] sm:$0xff] %v5152_v63  ;;  %v5162_v11 = vpop.f32.mrf.mxu2 }
 0x1e9   :  { %v2337_v52 = vsub.f32 1.5, %v2336_v12  ;;  %v391_v49 = vld [vmem:[#allocation4 + $0x278] sm:$0xff]  ;;  %1912 = vmatpush.msra.mxu2 %v455_v29 }
 0x1ea   :  { %v451_v37 = vld [vmem:[#allocation4 + $0x458] sm:$0xff]  ;;  %1764 = vmatmul.f32.gmra.mxu2 %v5152_v63  ;;  %1871 = vmatpush.msra.mxu1 %v391_v49 }
 0x1eb   :  { %v2338_v57 = vmul.f32 %v3846_v20, %v2337_v52  ;;  %v5147_v32 = vpop.f32.mrf.mxu0  ;;  %1723 = vmatmul.f32.gmra.mxu1 %v5149_v59  ;;  %v387_v13 = vld [vmem:[#allocation4 + $0x258] sm:$0xff]  ;;  %1913 = vmatpush.msra.mxu2 %v451_v37 }
 0x1ec   :  { %v539_v21 = vld [vmem:[#allocation4 + $0x718] sm:$0xff]  ;;  %1872 = vmatpush.msra.mxu1 %v387_v13 }
 0x1ed   :  { %v447_v47 = vld [vmem:[#allocation4 + $0x438] sm:$0xff]  ;;  %v2342_v12 = vsel %vm2341_vm3, %v3846_v20, %v2338_v57  ;;  %1948 = vmatpush.msrb.mxu3 %v539_v21 }
 0x1ee   :  { %v5155_v52 = vld [vmem:[#allocation2 + $0x38] sm:$0xff]  ;;  %v5159_v4 = vmul.f32 %v2342_v12, %v4998_v44  ;;  %1834 = vmatmul.f32.vlgmr.msra.gmra.mxu0 %v4823_v58  ;;  %v5165_v63 = vmul.f32 %v2342_v12, %v4977_v28  ;;  %v5168_v57 = vmul.f32 %v2342_v12, %v4980_v56  ;;  %1914 = vmatpush.msra.mxu2 %v447_v47  ;;  %v5176_v13 = vpop.f32.mrf.mxu1 }
 0x1ef   :  { %1793 = vmatmul.f32.vlgmr.msra.gmra.mxu3 %v5155_v52  ;;  %v383_v61 = vld [vmem:[#allocation4 + $0x238] sm:$0xff]  ;;  %v1466_v20 = vpop.f32.mrf.mxu3  ;;  %v5171_v44 = vmul.f32 %v2342_v12, %v4983_v19  ;;  %v5174_v58 = vmul.f32 %v2342_v12, %v4986_v30  ;;  %v1344_v28 = vadd.f32 %v4935_v51, %v4945_v39  ;;  %v1347_v56 = vadd.f32 %v4950_v3, %v4968_v7  ;;  %v5185_v30 = vld [vmem:[#allocation2 + $0x168] sm:$0xff]  ;;  %v5193_v3 = vld [vmem:[#allocation2 + $0x170] sm:$0xff] }
 0x1f0   :  { %6556 = vst [vmem:[#allocation51_spill] sm:$0xff] %v5159_v4  ;;  %v443_v9 = vld [vmem:[#allocation4 + $0x418] sm:$0xff]  ;;  %1873 = vmatpush.msra.mxu1 %v383_v61  ;;  %v5183_v4 = vmul.f32 %v2342_v12, %v4989_v15  ;;  %v5189_v61 = vmul.f32 %v2342_v12, %v4992_v1 }
 0x1f1   :  { %v535_v29 = vld [vmem:[#allocation4 + $0x6f8] sm:$0xff]  ;;  %1915 = vmatpush.msra.mxu2 %v443_v9  ;;  %v1385_v51 = vadd.f32 %v5055_v24, %v1344_v28  ;;  %v1388_v39 = vadd.f32 %v5076_v38, %v1347_v56  ;;  %v5204_v24 = vpop.f32.mrf.mxu2 }
 0x1f2   :  { %v631_v49 = vld [vmem:[#allocation4 + $0x9f8] sm:$0xff]  ;;  %1949 = vmatpush.msrb.mxu3 %v535_v29  ;;  %6557 = vst [vmem:[#allocation52_spill] sm:$0xff] %v5189_v61  ;;  %1767 = vmatmul.f32.gmra.mxu2 %v5193_v3 }
 0x1f3   :  { %v379_v37 = vld [vmem:[#allocation4 + $0x218] sm:$0xff]  ;;  %1982 = vmatpush.msrb.mxu0 %v631_v49  ;;  %1726 = vmatmul.f32.gmra.mxu1 %v5185_v30  ;;  %v5196_v15 = vpop.f32.mrf.mxu0  ;;  %v1426_v1 = vadd.f32 %v5071_v5, %v1385_v51  ;;  %v1429_v29 = vadd.f32 %v5092_v6, %v1388_v39  ;;  %v5213_v5 = vmul.f32 %v2342_v12, %v4995_v31  ;;  %v5219_v39 = vld [vmem:[#allocation2 + $0x1a8] sm:$0xff]  ;;  %v3948_v12 = vld [vmem:[#allocation2 + $0x80] sm:$0xff] }
 0x1f4   :  { %1874 = vmatpush.msra.mxu1 %v379_v37  ;;  %v627_v21 = vld [vmem:[#allocation4 + $0x9d8] sm:$0xff] }
 0x1f5   :  { %v531_v47 = vld [vmem:[#allocation4 + $0x6d8] sm:$0xff]  ;;  %1983 = vmatpush.msrb.mxu0 %v627_v21  ;;  %v5206_v28 = vadd.f32 %v1466_v20, %v1426_v1  ;;  %6558 = vst [vmem:[#allocation53_spill] sm:$0xff] %v5213_v5 }
 0x1f6   :  { %v623_v19 = vld [vmem:[#allocation4 + $0x9b8] sm:$0xff]  ;;  %1950 = vmatpush.msrb.mxu3 %v531_v47  ;;  %1837 = vmatmul.f32.gmra.mxu0 %v4837_v17  ;;  %v5210_v21 = vpop.f32.mrf.mxu1  ;;  %v1350_v17 = vadd.f32 %v4974_v33, %v5024_v41 }
 0x1f7   :  { %v619_v7 = vld [vmem:[#allocation4 + $0x998] sm:$0xff]  ;;  %1984 = vmatpush.msrb.mxu0 %v623_v19  ;;  %v1469_v37 = vpop.f32.mrf.mxu3 }
 0x1f8   :  { %v5198_v9 = vld [vmem:[#allocation2 + $0x78] sm:$0xff]  ;;  %v5208_v56 = vadd.f32 %v1469_v37, %v1429_v29  ;;  %v1391_v20 = vadd.f32 %v5098_v16, %v1350_v17 }
 0x1f9   :  { %1796 = vmatmul.f32.gmra.mxu3 %v5198_v9  ;;  %v527_v38 = vld [vmem:[#allocation4 + $0x6b8] sm:$0xff]  ;;  %1985 = vmatpush.msrb.mxu0 %v619_v7  ;;  %v5223_v7 = vld [vmem:[#allocation2 + $0x1b0] sm:$0xff]  ;;  %v5230_v1 = vpop.f32.mrf.mxu2 }
 0x1fa   :  { %v615_v49 = vld [vmem:[#allocation4 + $0x978] sm:$0xff]  ;;  %1951 = vmatpush.msrb.mxu3 %v527_v38  ;;  %v2159_v6 = vadd.f32 %v5208_v56, %v5206_v28  ;;  %1770 = vmatmul.f32.gmra.mxu2 %v5223_v7  ;;  %v1432_v41 = vadd.f32 %v5117_v25, %v1391_v20 }
 0x1fb   :  { %1986 = vmatpush.msrb.mxu0 %v615_v49  ;;  %v611_v47 = vld [vmem:[#allocation4 + $0x958] sm:$0xff]  ;;  %1729 = vmatmul.f32.gmra.mxu1 %v5219_v39  ;;  %v5232_v16 = vpop.f32.mrf.mxu0 }
 0x1fc   :  { %v523_v19 = vld [vmem:[#allocation4 + $0x698] sm:$0xff] }
 0x1fd   :  { %v607_v51 = vld [vmem:[#allocation4 + $0x938] sm:$0xff]  ;;  %1987 = vmatpush.msrb.mxu0 %v611_v47  ;;  %1952 = vmatpush.msrb.mxu3 %v523_v19  ;;  %v1353_v47 = vadd.f32 %v5026_v26, %v5053_v62  ;;  %v3952_v62 = vld [vmem:[#allocation2 + $0xc0] sm:$0xff] }
 0x1fe   :  { %v603_v31 = vld [vmem:[#allocation4 + $0x918] sm:$0xff]  ;;  %1840 = vmatmul.f32.gmra.mxu0 %v3948_v12  ;;  %v5236_v17 = vpop.f32.mrf.mxu1  ;;  %v5241_v12 = vld [vmem:[#allocation2 + $0x1e8] sm:$0xff] }
 0x1ff   :  { %v5226_v33 = vld [vmem:[#allocation2 + $0xb8] sm:$0xff]  ;;  %1988 = vmatpush.msrb.mxu0 %v607_v51  ;;  %v1472_v49 = vpop.f32.mrf.mxu3 }
 0x200   :  { %v519_v29 = vld [vmem:[#allocation4 + $0x678] sm:$0xff]  ;;  %v5234_v37 = vadd.f32 %v1472_v49, %v1432_v41  ;;  %v5245_v41 = vld [vmem:[#allocation2 + $0x1f0] sm:$0xff] }
 0x201   :  { %1799 = vmatmul.f32.gmra.mxu3 %v5226_v33  ;;  %v599_v38 = vld [vmem:[#allocation4 + $0x8f8] sm:$0xff]  ;;  %1989 = vmatpush.msrb.mxu0 %v603_v31  ;;  %v1394_v31 = vadd.f32 %v5122_v22, %v1353_v47 }
 0x202   :  { %1953 = vmatpush.msrb.mxu3 %v519_v29  ;;  %v2160_v25 = vadd.f32 %v2159_v6, %v5234_v37  ;;  %v595_v19 = vld [vmem:[#allocation4 + $0x8d8] sm:$0xff]  ;;  %1773 = vmatmul.f32.gmra.mxu2 %v5245_v41  ;;  %v5252_v6 = vpop.f32.mrf.mxu2 }
 0x203   :  { %1990 = vmatpush.msrb.mxu0 %v599_v38  ;;  %v515_v51 = vld [vmem:[#allocation4 + $0x658] sm:$0xff]  ;;  %1732 = vmatmul.f32.gmra.mxu1 %v5241_v12  ;;  %v1435_v26 = vadd.f32 %v5139_v34, %v1394_v31  ;;  %v5258_v5 = vpop.f32.mrf.mxu0 }
 0x204   :  { %v591_v20 = vld [vmem:[#allocation4 + $0x8b8] sm:$0xff]  ;;  %1954 = vmatpush.msrb.mxu3 %v515_v51 }
 0x205   :  { %1991 = vmatpush.msrb.mxu0 %v595_v19  ;;  %v587_v29 = vld [vmem:[#allocation4 + $0x898] sm:$0xff] }
 0x206   :  { %v5248_v38 = vld [vmem:[#allocation2 + $0xf8] sm:$0xff]  ;;  %1843 = vmatmul.f32.gmra.mxu0 %v3952_v62  ;;  %v5256_v51 = vpop.f32.mrf.mxu1  ;;  %v3953_v62 = vld [vmem:[#allocation2 + $0x8] sm:$0xff] }
 0x207   :  { %1992 = vmatpush.msrb.mxu0 %v591_v20  ;;  %v511_v49 = vld [vmem:[#allocation4 + $0x638] sm:$0xff]  ;;  %v1475_v22 = vpop.f32.mrf.mxu3  ;;  %v1356_v20 = vadd.f32 %v5057_v55, %v5074_v53 }
 0x208   :  { %v583_v19 = vld [vmem:[#allocation4 + $0x878] sm:$0xff]  ;;  %1955 = vmatpush.msrb.mxu3 %v511_v49  ;;  %v5254_v47 = vadd.f32 %v1475_v22, %v1435_v26  ;;  %v3956_v22 = vld [vmem:[#allocation2 + $0x100] sm:$0xff] }
 0x209   :  { %1802 = vmatmul.f32.gmra.mxu3 %v5248_v38  ;;  %1993 = vmatpush.msrb.mxu0 %v587_v29  ;;  %v579_v31 = vld [vmem:[#allocation4 + $0x858] sm:$0xff]  ;;  %v1397_v61 = vadd.f32 %v5144_v60, %v1356_v20  ;;  %v3954_v29 = vld [vmem:[#allocation2 + $0x10] sm:$0xff] }
 0x20a   :  { %v2161_v34 = vadd.f32 %v2160_v25, %v5254_v47  ;;  %1916 = vmatmul.f32.vlgmr.msra.gmra.mxu2 %v3954_v29  ;;  %v575_v26 = vld [vmem:[#allocation4 + $0x838] sm:$0xff]  ;;  %v5268_v55 = vpop.f32.mrf.mxu2 }
 0x20b   :  { %1994 = vmatpush.msrb.mxu0 %v583_v19  ;;  %1875 = vmatmul.f32.vlgmr.msra.gmra.mxu1 %v3953_v62  ;;  %v5264_v49 = vld [vmem:[#allocation2 + $0x138] sm:$0xff]  ;;  %v1438_v19 = vadd.f32 %v5162_v11, %v1397_v61  ;;  %v1359_v11 = vadd.f32 %v5078_v45, %v5096_v2  ;;  %v3958_v2 = vld [vmem:[#allocation2 + $0x140] sm:$0xff] }
 0x20c   :  { %6559 = vst [vmem:[#allocation54_spill] sm:$0xff] %v5264_v49  ;;  %v507_v53 = vld [vmem:[#allocation4 + $0x618] sm:$0xff] }
 0x20d   :  { %1995 = vmatpush.msrb.mxu0 %v579_v31  ;;  %v571_v25 = vld [vmem:[#allocation4 + $0x818] sm:$0xff]  ;;  %1956 = vmatpush.msrb.mxu3 %v507_v53 }
 0x20e   :  { %1846 = vmatmul.f32.gmra.mxu0 %v3956_v22  ;;  %v5272_v20 = vpop.f32.mrf.mxu1  ;;  %v759_v31 = vld [vmem:[#allocation4 + $0xdf8] sm:$0xff] }
 0x20f   :  { %1996 = vmatpush.msrb.mxu0 %v575_v26  ;;  %v1478_v62 = vpop.f32.mrf.mxu3  ;;  %v695_v29 = vld [vmem:[#allocation4 + $0xbf8] sm:$0xff]  ;;  %2064 = vmatpush.msrb.mxu2 %v759_v31 }
 0x210   :  { %v5270_v60 = vadd.f32 %v1478_v62, %v1438_v19  ;;  %2023 = vmatpush.msrb.mxu1 %v695_v29  ;;  %v755_v26 = vld [vmem:[#allocation4 + $0xdd8] sm:$0xff]  ;;  %v1400_v19 = vadd.f32 %v5176_v13, %v1359_v11 }
 0x211   :  { %1805 = vmatmul.f32.gmra.mxu3 %v5264_v49  ;;  %1997 = vmatpush.msrb.mxu0 %v571_v25  ;;  %v691_v22 = vld [vmem:[#allocation4 + $0xbd8] sm:$0xff]  ;;  %v5277_v49 = vpop.f32.mrf.mxu0 }
 0x212   :  { %v2162_v61 = vadd.f32 %v2161_v34, %v5270_v60  ;;  %2065 = vmatpush.msrb.mxu2 %v755_v26  ;;  %2024 = vmatpush.msrb.mxu1 %v691_v22  ;;  %v687_v53 = vld [vmem:[#allocation4 + $0xbb8] sm:$0xff]  ;;  %v1441_v45 = vadd.f32 %v5204_v24, %v1400_v19  ;;  %v1362_v24 = vadd.f32 %v5100_v40, %v5120_v14  ;;  %v3961_v14 = vld [vmem:[#allocation2 + $0x180] sm:$0xff] }
 0x213   :  { %1878 = vmatmul.f32.gmra.mxu1 %v4887_v46  ;;  %1919 = vmatmul.f32.gmra.mxu2 %v4890_v18  ;;  %v751_v25 = vld [vmem:[#allocation4 + $0xdb8] sm:$0xff] }
 0x214   :  { %v5282_v62 = vld [vmem:[#allocation2 + $0x178] sm:$0xff]  ;;  %2066 = vmatpush.msrb.mxu2 %v751_v25  ;;  %v5286_v34 = vpop.f32.mrf.mxu2  ;;  %2025 = vmatpush.msrb.mxu1 %v687_v53  ;;  %v1403_v25 = vadd.f32 %v5210_v21, %v1362_v24 }
 0x215   :  { %6560 = vst [vmem:[#allocation55_spill] sm:$0xff] %v5282_v62  ;;  %v683_v46 = vld [vmem:[#allocation4 + $0xb98] sm:$0xff] }
 0x216   :  { %1849 = vmatmul.f32.gmra.mxu0 %v3958_v2  ;;  %v747_v31 = vld [vmem:[#allocation4 + $0xd98] sm:$0xff]  ;;  %v5290_v29 = vpop.f32.mrf.mxu1  ;;  %2026 = vmatpush.msrb.mxu1 %v683_v46  ;;  %v1444_v40 = vadd.f32 %v5230_v1, %v1403_v25  ;;  %v1365_v1 = vadd.f32 %v5124_v48, %v5142_v42  ;;  %v3966_v48 = vld [vmem:[#allocation2 + $0x1c0] sm:$0xff] }
 0x217   :  { %v1481_v13 = vpop.f32.mrf.mxu3  ;;  %2067 = vmatpush.msrb.mxu2 %v747_v31  ;;  %v679_v11 = vld [vmem:[#allocation4 + $0xb78] sm:$0xff] }
 0x218   :  { %v5288_v18 = vadd.f32 %v1481_v13, %v1441_v45  ;;  %v743_v26 = vld [vmem:[#allocation4 + $0xd78] sm:$0xff]  ;;  %2027 = vmatpush.msrb.mxu1 %v679_v11  ;;  %v3959_v45 = vld [vmem:[#allocation2 + $0x90] sm:$0xff] }
 0x219   :  { %1808 = vmatmul.f32.gmra.mxu3 %v5282_v62  ;;  %2068 = vmatpush.msrb.mxu2 %v743_v26  ;;  %v675_v19 = vld [vmem:[#allocation4 + $0xb58] sm:$0xff]  ;;  %v5297_v31 = vpop.f32.mrf.mxu0  ;;  %v3962_v26 = vld [vmem:[#allocation6] sm:$0xf] }
 0x21a   :  { %v2163_v22 = vadd.f32 %v2162_v61, %v5288_v18  ;;  %v739_v53 = vld [vmem:[#allocation4 + $0xd58] sm:$0xff]  ;;  %2028 = vmatpush.msrb.mxu1 %v675_v19  ;;  %v5305_v24 = vperm.slane %v3962_v26, 2 }
 0x21b   :  { %1881 = vmatmul.f32.gmra.mxu1 %v4904_v0  ;;  %2069 = vmatpush.msrb.mxu2 %v739_v53  ;;  %v671_v2 = vld [vmem:[#allocation4 + $0xb38] sm:$0xff] }
 0x21c   :  { %1922 = vmatmul.f32.gmra.mxu2 %v3959_v45  ;;  %v735_v46 = vld [vmem:[#allocation4 + $0xd38] sm:$0xff]  ;;  %v5303_v0 = vpop.f32.mrf.mxu2  ;;  %2029 = vmatpush.msrb.mxu1 %v671_v2 }
 0x21d   :  { %v5299_v13 = vld [vmem:[#allocation2 + $0x1b8] sm:$0xff]  ;;  %2070 = vmatpush.msrb.mxu2 %v735_v46 }
 0x21e   :  { %6561 = vst [vmem:[#allocation56_spill] sm:$0xff] %v5299_v13  ;;  %1852 = vmatmul.f32.gmra.mxu0 %v3961_v14  ;;  %v667_v21 = vld [vmem:[#allocation4 + $0xb18] sm:$0xff]  ;;  %v5309_v53 = vpop.f32.mrf.mxu1 }
 0x21f   :  { %v731_v61 = vld [vmem:[#allocation4 + $0xd18] sm:$0xff]  ;;  %v1484_v11 = vpop.f32.mrf.mxu3  ;;  %2030 = vmatpush.msrb.mxu1 %v667_v21  ;;  %v3964_v21 = vld [vmem:[#allocation2 + $0xd0] sm:$0xff] }
 0x220   :  { %2071 = vmatpush.msrb.mxu2 %v731_v61  ;;  %v5307_v19 = vadd.f32 %v1484_v11, %v1444_v40  ;;  %v663_v45 = vld [vmem:[#allocation4 + $0xaf8] sm:$0xff]  ;;  %v3963_v61 = vld [vmem:[#allocation2 + $0xc8] sm:$0xff]  ;;  %v1508_v40 = vadd.f32 %v5147_v32, %v5305_v24  ;;  %v1406_v11 = vadd.f32 %v5236_v17, %v1365_v1 }
 0x221   :  { %1811 = vmatmul.f32.gmra.mxu3 %v5299_v13  ;;  %v727_v46 = vld [vmem:[#allocation4 + $0xcf8] sm:$0xff]  ;;  %2031 = vmatpush.msrb.mxu1 %v663_v45  ;;  %v5323_v17 = vpop.f32.mrf.mxu0 }
 0x222   :  { %2072 = vmatpush.msrb.mxu2 %v727_v46  ;;  %v2164_v25 = vadd.f32 %v2163_v22, %v5307_v19  ;;  %v659_v2 = vld [vmem:[#allocation4 + $0xad8] sm:$0xff]  ;;  %v1447_v42 = vadd.f32 %v5252_v6, %v1406_v11  ;;  %6563 = vst [vmem:[#allocation58_spill] sm:$0xff] %v5323_v17 }
 0x223   :  { %v723_v14 = vld [vmem:[#allocation4 + $0xcd8] sm:$0xff]  ;;  %1884 = vmatmul.f32.gmra.mxu1 %v3963_v61 }
 0x224   :  { %2073 = vmatpush.msrb.mxu2 %v723_v14  ;;  %2032 = vmatpush.msrb.mxu1 %v659_v2  ;;  %v655_v26 = vld [vmem:[#allocation4 + $0xab8] sm:$0xff]  ;;  %v5321_v22 = vpop.f32.mrf.mxu2  ;;  %v1549_v2 = vadd.f32 %v5256_v51, %v1508_v40  ;;  %v1520_v51 = vadd.f32 %v5277_v49, %v5305_v24 }
 0x225   :  { %1925 = vmatmul.f32.gmra.mxu2 %v3964_v21  ;;  %v719_v46 = vld [vmem:[#allocation4 + $0xcb8] sm:$0xff] }
 0x226   :  { %v5317_v13 = vld [vmem:[#allocation2 + $0x1f8] sm:$0xff]  ;;  %2074 = vmatpush.msrb.mxu2 %v719_v46  ;;  %1855 = vmatmul.f32.gmra.mxu0 %v3966_v48  ;;  %v1560_v61 = vpop.f32.mrf.mxu1  ;;  %v3967_v48 = vld [vmem:[#allocation2 + $0x108] sm:$0xff]  ;;  %v1590_v40 = vadd.f32 %v5268_v55, %v1549_v2 }
 0x227   :  { %6562 = vst [vmem:[#allocation57_spill] sm:$0xff] %v5317_v13  ;;  %2033 = vmatpush.msrb.mxu1 %v655_v26  ;;  %v651_v32 = vld [vmem:[#allocation4 + $0xa98] sm:$0xff]  ;;  %v1487_v1 = vpop.f32.mrf.mxu3  ;;  %v1561_v2 = vadd.f32 %v1560_v61, %v1520_v51  ;;  %v1514_v51 = vadd.f32 %v5232_v16, %v5305_v24 }
 0x228   :  { %v715_v45 = vld [vmem:[#allocation4 + $0xc98] sm:$0xff]  ;;  %v5326_v14 = vadd.f32 %v1487_v1, %v1447_v42 }
 0x229   :  { %1814 = vmatmul.f32.gmra.mxu3 %v5317_v13  ;;  %2075 = vmatpush.msrb.mxu2 %v715_v45  ;;  %v647_v21 = vld [vmem:[#allocation4 + $0xa78] sm:$0xff]  ;;  %v1511_v45 = vadd.f32 %v5196_v15, %v5305_v24 }
 0x22a   :  { %2034 = vmatpush.msrb.mxu1 %v651_v32  ;;  %v711_v46 = vld [vmem:[#allocation4 + $0xc78] sm:$0xff]  ;;  %v2165_v6 = vadd.f32 %v2164_v25, %v5326_v14  ;;  %v3968_v32 = vld [vmem:[#allocation2 + $0x110] sm:$0xff] }
 0x22b   :  { %2076 = vmatpush.msrb.mxu2 %v711_v46  ;;  %v643_v11 = vld [vmem:[#allocation4 + $0xa58] sm:$0xff]  ;;  %1887 = vmatmul.f32.gmra.mxu1 %v3967_v48  ;;  %v3970_v48 = vld [vmem:[#allocation2 + $0x20] sm:$0xff]  ;;  %v1552_v49 = vadd.f32 %v5272_v20, %v1511_v45 }
 0x22c   :  { %2035 = vmatpush.msrb.mxu1 %v647_v21  ;;  %v707_v26 = vld [vmem:[#allocation4 + $0xc58] sm:$0xff]  ;;  %v2166_v42 = vrot.slane %v2165_v6, 4 }
 0x22d   :  { %2077 = vmatpush.msrb.mxu2 %v707_v26  ;;  %v639_v1 = vld [vmem:[#allocation4 + $0xa38] sm:$0xff]  ;;  %v1601_v26 = vpop.f32.mrf.mxu2  ;;  %v1593_v20 = vadd.f32 %v5286_v34, %v1552_v49  ;;  %v2609_v49 = vld [vmem:[#allocation10 + $0xc0] sm:$0xff] }
 0x22e   :  { %1928 = vmatmul.f32.gmra.mxu2 %v3968_v32  ;;  %2036 = vmatpush.msrb.mxu1 %v643_v11  ;;  %v703_v25 = vld [vmem:[#allocation4 + $0xc38] sm:$0xff]  ;;  %v2167_v46 = vadd.f32 %v2166_v42, %v2165_v6  ;;  %v1563_v17 = vpop.f32.mrf.mxu1  ;;  %v5339_v42 = vadd.f32 %v1601_v26, %v1561_v2 }
 0x22f   :  { %v3969_v21 = vld [vmem:[#allocation2 + $0x18] sm:$0xff]  ;;  %2078 = vmatpush.msrb.mxu2 %v703_v25  ;;  %1998 = vmatmul.f32.vlgmr.msrb.gmra.mxu0 %v3970_v48  ;;  %v1630_v62 = vpop.f32.mrf.mxu3  ;;  %v5337_v25 = vpop.f32.mrf.mxu0  ;;  %v2613_v48 = vld [vmem:[#allocation10 + $0xe0] sm:$0xff] }
 0x230   :  { %2037 = vmatpush.msrb.mxu1 %v639_v1  ;;  %v635_v15 = vld [vmem:[#allocation4 + $0xa18] sm:$0xff]  ;;  %v2168_v55 = vrot.slane %v2167_v46, 2  ;;  %v5335_v11 = vadd.f32 %v1630_v62, %v1590_v40  ;;  %v3971_v62 = vld [vmem:[#allocation2 + $0x150] sm:$0xff]  ;;  %v1523_v40 = vadd.f32 %v5297_v31, %v5305_v24  ;;  %v1555_v31 = vadd.f32 %v5290_v29, %v1514_v51 }
 0x231   :  { %1957 = vmatmul.f32.vlgmr.msrb.gmra.mxu3 %v3969_v21  ;;  %v699_v13 = vld [vmem:[#allocation4 + $0xc18] sm:$0xff] }
 0x232   :  { %2079 = vmatpush.msrb.mxu2 %v699_v13  ;;  %v823_v32 = vld [vmem:[#allocation4 + $0xff8] sm:$0xff]  ;;  %2038 = vmatpush.msrb.mxu1 %v635_v15  ;;  %v2169_v6 = vadd.f32 %v2168_v55, %v2167_v46  ;;  %v3973_v15 = vld [vmem:[#allocation2 + $0x60] sm:$0xff] }
 0x233   :  { %v2615_v21 = vld [vmem:[#allocation10 + $0xf0] sm:$0xff]  ;;  %2105 = vmatpush.msra.mxu3 %v823_v32  ;;  %1890 = vmatmul.f32.gmra.mxu1 %v4953_v10 }
 0x234   :  { %2719 = vmatpush.msra.mxu0 %v2615_v21  ;;  %v819_v1 = vld [vmem:[#allocation4 + $0xfd8] sm:$0xff]  ;;  %v2170_v13 = vrot.slane %v2169_v6, 1 }
 0x235   :  { %2106 = vmatpush.msra.mxu3 %v819_v1  ;;  %v815_v61 = vld [vmem:[#allocation4 + $0xfb8] sm:$0xff]  ;;  %v1604_v10 = vpop.f32.mrf.mxu2  ;;  %v1564_v1 = vadd.f32 %v1563_v17, %v1523_v40  ;;  %v2605_v40 = vld [vmem:[#allocation10 + $0xa0] sm:$0xff] }
 0x236   :  { %1931 = vmatmul.f32.gmra.mxu2 %v3971_v62  ;;  %2720 = vmatpush.msra.mxu0 %v2613_v48  ;;  %v2611_v45 = vld [vmem:[#allocation10 + $0xd0] sm:$0xff]  ;;  %v2171_v26 = vadd.f32 %v2170_v13, %v2169_v6 }
 0x237   :  { %v3972_v46 = vld [vmem:[#allocation2 + $0x58] sm:$0xff]  ;;  %2001 = vmatmul.f32.gmra.mxu0 %v3973_v15  ;;  %2107 = vmatpush.msra.mxu3 %v815_v61  ;;  %v1633_v55 = vpop.f32.mrf.mxu3  ;;  %v5391_v51 = vadd.f32 %v1604_v10, %v1564_v1 }
 0x238   :  { %v811_v34 = vld [vmem:[#allocation4 + $0xf98] sm:$0xff]  ;;  %2721 = vmatpush.msra.mxu0 %v2611_v45  ;;  %v2206_v2 = vmul.f32 %v4962_v8, %v2171_v26  ;;  %v5348_v32 = vadd.f32 %v1633_v55, %v1593_v20  ;;  %v5350_v16 = vpop.f32.mrf.mxu1 }
 0x239   :  { %1960 = vmatmul.f32.gmra.mxu3 %v3972_v46  ;;  %v807_v21 = vld [vmem:[#allocation4 + $0xf78] sm:$0xff] }
 0x23a   :  { %2108 = vmatpush.msra.mxu3 %v811_v34  ;;  %2722 = vmatpush.msra.mxu0 %v2609_v49  ;;  %v5354_v6 = vsub.f32 %v5206_v28, %v2206_v2  ;;  %v5357_v48 = vsub.f32 %v5208_v56, %v2206_v2  ;;  %v5360_v13 = vsub.f32 %v5234_v37, %v2206_v2  ;;  %v5377_v56 = vpop.f32.mrf.mxu0  ;;  %v803_v37 = vld [vmem:[#allocation4 + $0xf58] sm:$0xff] }
 0x23b   :  { %v5363_v20 = vsub.f32 %v5254_v47, %v2206_v2  ;;  %v5366_v62 = vsub.f32 %v5270_v60, %v2206_v2  ;;  %v5369_v29 = vsub.f32 %v5288_v18, %v2206_v2  ;;  %v5372_v17 = vsub.f32 %v5307_v19, %v2206_v2  ;;  %1893 = vmatmul.f32.gmra.mxu1 %v5000_v36  ;;  %v2607_v18 = vld [vmem:[#allocation10 + $0xb0] sm:$0xff] }
 0x23c   :  { %2109 = vmatpush.msra.mxu3 %v807_v21  ;;  %v5375_v28 = vsub.f32 %v5326_v14, %v2206_v2  ;;  %v2242_v47 = vmul.f32 %v5354_v6, %v5354_v6  ;;  %v2246_v60 = vmul.f32 %v5357_v48, %v5357_v48  ;;  %v1517_v19 = vadd.f32 %v5258_v5, %v5305_v24  ;;  %v799_v61 = vld [vmem:[#allocation4 + $0xf38] sm:$0xff]  ;;  %v2601_v2 = vld [vmem:[#allocation10 + $0x80] sm:$0xff] }
 0x23d   :  { %v1596_v14 = vadd.f32 %v5303_v0, %v1555_v31  ;;  %v2250_v36 = vmul.f32 %v5360_v13, %v5360_v13  ;;  %v795_v46 = vld [vmem:[#allocation4 + $0xf18] sm:$0xff]  ;;  %2723 = vmatpush.msra.mxu0 %v2607_v18  ;;  %v2254_v5 = vmul.f32 %v5363_v20, %v5363_v20  ;;  %v2258_v49 = vmul.f32 %v5366_v62, %v5366_v62 }
 0x23e   :  { %1934 = vmatmul.f32.gmra.mxu2 %v5008_v27  ;;  %v2286_v45 = vadd.f32 %v2246_v60, %v2242_v47  ;;  %2110 = vmatpush.msra.mxu3 %v803_v37  ;;  %v5394_v27 = vpop.f32.mrf.mxu2  ;;  %v2603_v15 = vld [vmem:[#allocation10 + $0x90] sm:$0xff]  ;;  %v1558_v10 = vadd.f32 %v5309_v53, %v1517_v19  ;;  %v2262_v31 = vmul.f32 %v5369_v29, %v5369_v29 }
 0x23f   :  { %2004 = vmatmul.f32.gmra.mxu0 %v5016_v23  ;;  %6564 = vst [vmem:[#allocation59_spill] sm:$0xff] %v5394_v27  ;;  %v791_v23 = vld [vmem:[#allocation4 + $0xef8] sm:$0xff]  ;;  %v6566_v19 = vld [vmem:[#allocation33_spill] sm:$0xff] }
 0x240   :  { %v2287_v0 = vadd.f32 %v2286_v45, %v2250_v36  ;;  %v5398_v26 = vpop.f32.mrf.mxu1  ;;  %2111 = vmatpush.msra.mxu3 %v799_v61  ;;  %2724 = vmatpush.msra.mxu0 %v2605_v40  ;;  %v787_v21 = vld [vmem:[#allocation4 + $0xed8] sm:$0xff]  ;;  %v1599_v37 = vadd.f32 %v5321_v22, %v1558_v10  ;;  %v2270_v22 = vmul.f32 %v5375_v28, %v5375_v28 }
 0x241   :  { %1963 = vmatmul.f32.gmra.mxu3 %v5011_v43  ;;  %v1636_v43 = vpop.f32.mrf.mxu3  ;;  %6565 = vst [vmem:[#allocation60_spill] sm:$0xff] %v5398_v26  ;;  %v2599_v53 = vld [vmem:[#allocation10 + $0x70] sm:$0xff] }
 0x242   :  { %v5401_v34 = vadd.f32 %v1636_v43, %v1596_v14  ;;  %v2288_v55 = vadd.f32 %v2287_v0, %v2254_v5  ;;  %2112 = vmatpush.msra.mxu3 %v795_v46  ;;  %2725 = vmatpush.msra.mxu0 %v2603_v15  ;;  %v5410_v47 = vpop.f32.mrf.mxu0  ;;  %v783_v60 = vld [vmem:[#allocation4 + $0xeb8] sm:$0xff]  ;;  %v2597_v14 = vld [vmem:[#allocation10 + $0x60] sm:$0xff] }
 0x243   :  { %1896 = vmatmul.f32.gmra.mxu1 %v5032_v50  ;;  %v2266_v50 = vmul.f32 %v5372_v17, %v5372_v17  ;;  %v2595_v40 = vld [vmem:[#allocation10 + $0x50] sm:$0xff]  ;;  %v2593_v43 = vld [vmem:[#allocation10 + $0x40] sm:$0xff] }
 0x244   :  { %v2289_v1 = vadd.f32 %v2288_v55, %v2258_v49  ;;  %2113 = vmatpush.msra.mxu3 %v791_v23  ;;  %2726 = vmatpush.msra.mxu0 %v2601_v2  ;;  %v775_v5 = vld [vmem:[#allocation4 + $0xe78] sm:$0xff]  ;;  %v6568_v15 = vld [vmem:[#allocation34_spill] sm:$0xff] }
 0x245   :  { %v771_v10 = vld [vmem:[#allocation4 + $0xe58] sm:$0xff] }
 0x246   :  { %1937 = vmatmul.f32.gmra.mxu2 %v5038_v54  ;;  %v2290_v18 = vadd.f32 %v2289_v1, %v2262_v31  ;;  %2114 = vmatpush.msra.mxu3 %v787_v21  ;;  %v5416_v61 = vpop.f32.mrf.mxu2  ;;  %v779_v54 = vld [vmem:[#allocation4 + $0xe98] sm:$0xff]  ;;  %v6571_v1 = vld [vmem:[#allocation37_spill] sm:$0xff] }
 0x247   :  { %2007 = vmatmul.f32.gmra.mxu0 %v6566_v19  ;;  %6567 = vst [vmem:[#allocation33_spill] sm:$0xff] %v5416_v61  ;;  %v6569_v49 = vld [vmem:[#allocation35_spill] sm:$0xff]  ;;  %v2591_v55 = vld [vmem:[#allocation10 + $0x30] sm:$0xff] }
 0x248   :  { %2727 = vmatpush.msra.mxu0 %v2599_v53  ;;  %v2291_v36 = vadd.f32 %v2290_v18, %v2266_v50  ;;  %2115 = vmatpush.msra.mxu3 %v783_v60  ;;  %v6570_v2 = vld [vmem:[#allocation36_spill] sm:$0xff]  ;;  %v2589_v53 = vld [vmem:[#allocation10 + $0x20] sm:$0xff]  ;;  %v6585_v61 = vld [vmem:[#allocation49_spill] sm:$0xff] }
 0x249   :  { %1966 = vmatmul.f32.gmra.mxu3 %v5041_v35  ;;  %v1639_v45 = vpop.f32.mrf.mxu3  ;;  %v5420_v35 = vpop.f32.mrf.mxu1  ;;  %v767_v21 = vld [vmem:[#allocation4 + $0xe38] sm:$0xff] }
 0x24a   :  { %v5422_v46 = vadd.f32 %v1639_v45, %v1599_v37  ;;  %2728 = vmatpush.msra.mxu0 %v2597_v14  ;;  %v2292_v0 = vadd.f32 %v2291_v36, %v2270_v22  ;;  %2116 = vmatpush.msra.mxu3 %v779_v54  ;;  %v5428_v37 = vpop.f32.mrf.mxu0  ;;  %v763_v50 = vld [vmem:[#allocation4 + $0xe18] sm:$0xff]  ;;  %v2645_v45 = vld [vmem:[#allocation10 + $0x1e0] sm:$0xff] }
 0x24b   :  { %2039 = vmatmul.f32.vlgmr.msrb.gmra.mxu1 %v6568_v15  ;;  %v2587_v54 = vld [vmem:[#allocation10 + $0x10] sm:$0xff]  ;;  %v6573_v15 = vld [vmem:[#allocation39_spill] sm:$0xff] }
 0x24c   :  { %2729 = vmatpush.msra.mxu0 %v2595_v40  ;;  %v2293_v23 = vrot.slane %v2292_v0, 4  ;;  %2117 = vmatpush.msra.mxu3 %v775_v5  ;;  %v2647_v22 = vld [vmem:[#allocation10 + $0x1f0] sm:$0xff]  ;;  %v2585_v5 = vld [vmem:[#allocation10] sm:$0xff] }
 0x24d   :  { %2760 = vmatpush.msra.mxu1 %v2647_v22  ;;  %v2637_v22 = vld [vmem:[#allocation10 + $0x1a0] sm:$0xff]  ;;  %v2623_v27 = vld [vmem:[#allocation10 + $0x130] sm:$0xff] }
 0x24e   :  { %2080 = vmatmul.f32.vlgmr.msrb.gmra.mxu2 %v6569_v49  ;;  %2730 = vmatpush.msra.mxu0 %v2593_v43  ;;  %v2294_v31 = vadd.f32 %v2293_v23, %v2292_v0  ;;  %v5430_v60 = vpop.f32.mrf.mxu2  ;;  %v6572_v0 = vld [vmem:[#allocation38_spill] sm:$0xff]  ;;  %v6574_v23 = vld [vmem:[#allocation40_spill] sm:$0xff] }
 0x24f   :  { %2010 = vmatmul.f32.gmra.mxu0 %v6571_v1  ;;  %2118 = vmatpush.msra.mxu3 %v771_v10  ;;  %v2643_v10 = vld [vmem:[#allocation10 + $0x1d0] sm:$0xff]  ;;  %v2641_v49 = vld [vmem:[#allocation10 + $0x1c0] sm:$0xff] }
 0x250   :  { %2731 = vmatpush.msra.mxu0 %v2591_v55  ;;  %v2295_v18 = vrot.slane %v2294_v31, 2  ;;  %2761 = vmatpush.msra.mxu1 %v2645_v45  ;;  %v6575_v55 = vld [vmem:[#allocation41_spill] sm:$0xff]  ;;  %v6577_v45 = vld [vmem:[#allocation42_spill] sm:$0xff] }
 0x251   :  { %1969 = vmatmul.f32.gmra.mxu3 %v6570_v2  ;;  %v1642_v19 = vpop.f32.mrf.mxu3  ;;  %v5432_v14 = vpop.f32.mrf.mxu1 }
 0x252   :  { %2119 = vmatpush.msra.mxu3 %v767_v21  ;;  %v5435_v36 = vadd.f32 %v1642_v19, %v5339_v42  ;;  %2732 = vmatpush.msra.mxu0 %v2589_v53  ;;  %v2296_v40 = vadd.f32 %v2295_v18, %v2294_v31  ;;  %v2639_v21 = vld [vmem:[#allocation10 + $0x1b0] sm:$0xff]  ;;  %v5451_v19 = vld [vmem:[#allocation7] sm:$0xf] }
 0x253   :  { %2042 = vmatmul.f32.gmra.mxu1 %v6572_v0  ;;  %v5456_v0 = vperm.slane %v5451_v19, 0 }
 0x254   :  { %2120 = vmatpush.msra.mxu3 %v763_v50  ;;  %2733 = vmatpush.msra.mxu0 %v2587_v54  ;;  %v2297_v43 = vrot.slane %v2296_v40, 1  ;;  %v5446_v50 = vpop.f32.mrf.mxu0 }
 0x255   :  { %2762 = vmatpush.msra.mxu1 %v2643_v10  ;;  %v5460_v10 = vld [vmem:[#allocation9] sm:$0xf] }
 0x256   :  { %2083 = vmatmul.f32.gmra.mxu2 %v6573_v15  ;;  %2734 = vmatpush.msra.mxu0 %v2585_v5  ;;  %v2298_v42 = vadd.f32 %v2297_v43, %v2296_v40  ;;  %v5441_v2 = vpop.f32.mrf.mxu2  ;;  %v6578_v40 = vld [vmem:[#allocation43_spill] sm:$0xff]  ;;  %v2635_v5 = vld [vmem:[#allocation10 + $0x190] sm:$0xff] }
 0x257   :  { %2013 = vmatmul.f32.gmra.mxu0 %v6575_v55  ;;  %2763 = vmatpush.msra.mxu1 %v2641_v49  ;;  %v6579_v43 = vld [vmem:[#allocation44_spill] sm:$0xff]  ;;  %v2633_v15 = vld [vmem:[#allocation10 + $0x180] sm:$0xff] }
 0x258   :  { %v2326_v31 = vmul.f32 %v2298_v42, %v4962_v8  ;;  %v2631_v49 = vld [vmem:[#allocation10 + $0x170] sm:$0xff] }
 0x259   :  { %1972 = vmatmul.f32.gmra.mxu3 %v6574_v23  ;;  %v1645_v1 = vpop.f32.mrf.mxu3  ;;  %v5444_v53 = vpop.f32.mrf.mxu1  ;;  %2764 = vmatpush.msra.mxu1 %v2639_v21  ;;  %v2415_v21 = vmul.f32 %v5456_v0, %v5165_v63 }
 0x25a   :  { %v5449_v18 = vadd.f32 %v1645_v1, %v5391_v51  ;;  %v2330_v54 = vadd.f32 1e-05, %v2326_v31  ;;  %v6580_v51 = vld [vmem:[#allocation45_spill] sm:$0xff]  ;;  %v5471_v31 = vperm.slane %v5460_v10, 0 }
 0x25b   :  { %2045 = vmatmul.f32.gmra.mxu1 %v6577_v45 }
 0x25c   :  { %6576 = vst [vmem:[#allocation34_spill] sm:$0xff] %v5449_v18  ;;  %3847 = vrsqrt.f32 %v2330_v54  ;;  %2765 = vmatpush.msra.mxu1 %v2637_v22  ;;  %v2629_v22 = vld [vmem:[#allocation10 + $0x160] sm:$0xff]  ;;  %v2457_v63 = vadd.f32 %v5471_v31, %v2415_v21  ;;  %vm2349_vm6 = vweird.f32 %v2330_v54 }
 0x25d   :  { %v2621_v21 = vld [vmem:[#allocation10 + $0x120] sm:$0xff] }
 0x25e   :  { %2086 = vmatmul.f32.gmra.mxu2 %v6578_v40  ;;  %2766 = vmatpush.msra.mxu1 %v2635_v5  ;;  %v5462_v23 = vpop.f32.mrf.mxu2  ;;  %v5473_v40 = vpop.f32.mrf.mxu0  ;;  %v6582_v5 = vld [vmem:[#allocation46_spill] sm:$0xff]  ;;  %vm2489_vm5 = vcmp.ge.f32.partialorder %v2457_v63, 0.0 }
 0x25f   :  { %2016 = vmatmul.f32.gmra.mxu0 %v6580_v51  ;;  %v2627_v51 = vld [vmem:[#allocation10 + $0x150] sm:$0xff] }
 0x260   :  { %2767 = vmatpush.msra.mxu1 %v2633_v15  ;;  %v6584_v15 = vld [vmem:[#allocation48_spill] sm:$0xff] }
 0x261   :  { %1975 = vmatmul.f32.gmra.mxu3 %v6579_v43  ;;  %v5464_v42 = vpop.f32.mrf.mxu3  ;;  %v5466_v55 = vpop.f32.mrf.mxu1  ;;  %v6583_v43 = vld [vmem:[#allocation47_spill] sm:$0xff] }
 0x262   :  { %6581 = vst [vmem:[#allocation35_spill] sm:$0xff] %v5464_v42  ;;  %v3848_v1 = vpop.eup %3847  ;;  %2768 = vmatpush.msra.mxu1 %v2631_v49  ;;  %v2625_v42 = vld [vmem:[#allocation10 + $0x140] sm:$0xff] }
 0x263   :  { %v2344_v45 = vmul.f32 %v3848_v1, %v2330_v54  ;;  %2048 = vmatmul.f32.gmra.mxu1 %v6582_v5  ;;  %vm2350_vm4 = vweird.f32 %v3848_v1  ;;  %v2616_v54 = vld [vmem:[#allocation10 + $0xf8] sm:$0xff] }
 0x264   :  { %2769 = vmatpush.msra.mxu1 %v2629_v22  ;;  %vm2351_vm7 = vmor %vm2349_vm6, %vm2350_vm4  ;;  %2883 = vmatpush.msrb.mxu0 %v2616_v54 }
 0x265   :  { %v2345_v8 = vmul.f32 %v3848_v1, %v2344_v45  ;;  %v2521_v45 = vmul.f32 0.01, %v2457_v63 }
 0x266   :  { %2089 = vmatmul.f32.gmra.mxu2 %v6583_v43  ;;  %2770 = vmatpush.msra.mxu1 %v2627_v51  ;;  %v5480_v26 = vpop.f32.mrf.mxu2  ;;  %v2419_v43 = vmul.f32 %v5456_v0, %v5168_v57  ;;  %v2619_v51 = vld [vmem:[#allocation10 + $0x110] sm:$0xff] }
 0x267   :  { %2019 = vmatmul.f32.gmra.mxu0 %v6585_v61  ;;  %v2346_v49 = vmul.f32 0.5, %v2345_v8  ;;  %v6586_v8 = vld [vmem:[#allocation50_spill] sm:$0xff] }
 0x268   :  { %2771 = vmatpush.msra.mxu1 %v2625_v42  ;;  %v5490_v42 = vpop.f32.mrf.mxu0  ;;  %v2461_v57 = vadd.f32 %v5471_v31, %v2419_v43 }
 0x269   :  { %1978 = vmatmul.f32.gmra.mxu3 %v6584_v15  ;;  %v5482_v18 = vpop.f32.mrf.mxu3  ;;  %v5484_v5 = vpop.f32.mrf.mxu1  ;;  %v2347_v22 = vsub.f32 1.5, %v2346_v49  ;;  %v5493_v49 = vsel %vm2489_vm5, %v2457_v63, %v2521_v45 }
 0x26a   :  { %2772 = vmatpush.msra.mxu1 %v2623_v27  ;;  %v2617_v27 = vld [vmem:[#allocation10 + $0x100] sm:$0xff]  ;;  %vm2493_vm8 = vcmp.ge.f32.partialorder %v2461_v57, 0.0 }
 0x26b   :  { %v2348_v61 = vmul.f32 %v3848_v1, %v2347_v22  ;;  %2051 = vmatmul.f32.gmra.mxu1 %v5149_v59 }
 0x26c   :  { %2773 = vmatpush.msra.mxu1 %v2621_v21 }
 0x26d   :  { %v2352_v15 = vsel %vm2351_vm7, %v3848_v1, %v2348_v61  ;;  %v2525_v61 = vmul.f32 0.01, %v2461_v57 }
 0x26e   :  { %2092 = vmatmul.f32.gmra.mxu2 %v6586_v8  ;;  %v5497_v22 = vmul.f32 %v2352_v15, %v5375_v28  ;;  %2774 = vmatpush.msra.mxu1 %v2619_v51  ;;  %v2374_v59 = vmul.f32 %v2352_v15, %v5354_v6  ;;  %v5502_v1 = vmul.f32 %v2352_v15, %v5357_v48  ;;  %v5504_v21 = vpop.f32.mrf.mxu2  ;;  %v2612_v8 = vld [vmem:[#allocation10 + $0xd8] sm:$0xff]  ;;  %v2610_v51 = vld [vmem:[#allocation10 + $0xc8] sm:$0xff] }
 0x26f   :  { %2735 = vmatmul.f32.vlgmr.msra.gmra.mxu0 %v5493_v49  ;;  %v5510_v63 = vmul.f32 %v2352_v15, %v5363_v20  ;;  %v5513_v28 = vmul.f32 %v2352_v15, %v5366_v62  ;;  %v5516_v45 = vmul.f32 %v2352_v15, %v5369_v29  ;;  %v2423_v48 = vmul.f32 %v5456_v0, %v5171_v44 }
 0x270   :  { %2775 = vmatpush.msra.mxu1 %v2617_v27  ;;  %v1672_v20 = vadd.f32 %v5377_v56, %v5335_v11  ;;  %v1675_v62 = vadd.f32 %v5410_v47, %v5348_v32  ;;  %v5528_v29 = vmul.f32 %v2352_v15, %v5372_v17  ;;  %v5535_v11 = vsel %vm2493_vm8, %v2461_v57, %v2525_v61  ;;  %v5540_v17 = vpop.f32.mrf.mxu0  ;;  %v2604_v61 = vld [vmem:[#allocation10 + $0x98] sm:$0xff] }
 0x271   :  { %2121 = vmatmul.f32.vlgmr.msra.gmra.mxu3 %v5155_v52  ;;  %v5507_v52 = vmul.f32 %v2352_v15, %v5360_v13  ;;  %v5518_v43 = vpop.f32.mrf.mxu1  ;;  %v2614_v13 = vld [vmem:[#allocation10 + $0xe8] sm:$0xff]  ;;  %v2465_v44 = vadd.f32 %v5471_v31, %v2423_v48  ;;  %v2427_v57 = vmul.f32 %v5456_v0, %v5174_v58 }
 0x272   :  { %v1794_v6 = vpop.f32.mrf.mxu3  ;;  %2884 = vmatpush.msrb.mxu0 %v2614_v13  ;;  %v1713_v27 = vadd.f32 %v5420_v35, %v1672_v20  ;;  %v1716_v54 = vadd.f32 %v5432_v14, %v1675_v62 }
 0x273   :  { %2054 = vmatmul.f32.gmra.mxu1 %v5185_v30  ;;  %v2608_v30 = vld [vmem:[#allocation10 + $0xb8] sm:$0xff]  ;;  %v2529_v15 = vmul.f32 0.01, %v2465_v44  ;;  %vm2497_vm9 = vcmp.ge.f32.partialorder %v2465_v44, 0.0  ;;  %v2469_v20 = vadd.f32 %v5471_v31, %v2427_v57 }
 0x274   :  { %2885 = vmatpush.msrb.mxu0 %v2612_v8  ;;  %v1754_v32 = vadd.f32 %v5430_v60, %v1713_v27  ;;  %v5553_v60 = vperm.slane %v5451_v19, 1  ;;  %v2600_v8 = vld [vmem:[#allocation10 + $0x78] sm:$0xff]  ;;  %v2431_v27 = vmul.f32 %v5456_v0, %v5183_v4 }
 0x275   :  { %v5563_v13 = vsel %vm2497_vm9, %v2465_v44, %v2529_v15  ;;  %vm2501_vm10 = vcmp.ge.f32.partialorder %v2469_v20, 0.0 }
 0x276   :  { %2095 = vmatmul.f32.gmra.mxu2 %v5193_v3  ;;  %v1757_v3 = vadd.f32 %v5441_v2, %v1716_v54  ;;  %v5542_v56 = vpop.f32.mrf.mxu2  ;;  %2886 = vmatpush.msrb.mxu0 %v2610_v51  ;;  %v5546_v14 = vadd.f32 %v1794_v6, %v1754_v32  ;;  %v1678_v2 = vadd.f32 %v5428_v37, %v5401_v34  ;;  %v2606_v6 = vld [vmem:[#allocation10 + $0xa8] sm:$0xff]  ;;  %v5569_v37 = vperm.slane %v5460_v10, 1 }
 0x277   :  { %2738 = vmatmul.f32.gmra.mxu0 %v5535_v11  ;;  %v2416_v34 = vmul.f32 %v5553_v60, %v2374_v59  ;;  %v2533_v51 = vmul.f32 0.01, %v2469_v20  ;;  %v2598_v32 = vld [vmem:[#allocation10 + $0x68] sm:$0xff]  ;;  %v2473_v15 = vadd.f32 %v5471_v31, %v2431_v27  ;;  %v6589_v27 = vld [vmem:[#allocation58_spill] sm:$0xff] }
 0x278   :  { %2887 = vmatpush.msrb.mxu0 %v2608_v30  ;;  %v1719_v58 = vadd.f32 %v5444_v53, %v1678_v2 }
 0x279   :  { %2124 = vmatmul.f32.gmra.mxu3 %v5198_v9  ;;  %v5544_v35 = vpop.f32.mrf.mxu1  ;;  %v2458_v54 = vadd.f32 %v5569_v37, %v2416_v34  ;;  %vm2505_vm12 = vcmp.ge.f32.partialorder %v2473_v15, 0.0 }
 0x27a   :  { %2888 = vmatpush.msrb.mxu0 %v2606_v6  ;;  %v6587_v6 = vld [vmem:[#allocation52_spill] sm:$0xff] }
 0x27b   :  { %2057 = vmatmul.f32.gmra.mxu1 %v5219_v39  ;;  %v2602_v39 = vld [vmem:[#allocation10 + $0x88] sm:$0xff]  ;;  %vm2490_vm11 = vcmp.ge.f32.partialorder %v2458_v54, 0.0 }
 0x27c   :  { %v1797_v47 = vpop.f32.mrf.mxu3  ;;  %2889 = vmatpush.msrb.mxu0 %v2604_v61  ;;  %v2435_v61 = vmul.f32 %v5456_v0, %v6587_v6 }
 0x27d   :  { %v5548_v9 = vadd.f32 %v1797_v47, %v1757_v3  ;;  %v2596_v3 = vld [vmem:[#allocation10 + $0x58] sm:$0xff]  ;;  %v5590_v47 = vsel %vm2501_vm10, %v2469_v20, %v2533_v51 }
 0x27e   :  { %2098 = vmatmul.f32.gmra.mxu2 %v5223_v7  ;;  %v1760_v7 = vadd.f32 %v5462_v23, %v1719_v58  ;;  %v5572_v62 = vpop.f32.mrf.mxu2  ;;  %2890 = vmatpush.msrb.mxu0 %v2602_v39  ;;  %v1681_v23 = vadd.f32 %v5446_v50, %v5422_v46  ;;  %v2522_v46 = vmul.f32 0.01, %v2458_v54  ;;  %v2594_v50 = vld [vmem:[#allocation10 + $0x48] sm:$0xff]  ;;  %v2477_v51 = vadd.f32 %v5471_v31, %v2435_v61 }
 0x27f   :  { %v2172_v48 = vadd.f32 %v5548_v9, %v5546_v14  ;;  %2741 = vmatmul.f32.gmra.mxu0 %v5563_v13 }
 0x280   :  { %2891 = vmatpush.msrb.mxu0 %v2600_v8  ;;  %v1722_v4 = vadd.f32 %v5466_v55, %v1681_v23  ;;  %v5603_v58 = vsel %vm2490_vm11, %v2458_v54, %v2522_v46  ;;  %v1526_v54 = vadd.f32 %v6589_v27, %v5305_v24  ;;  %v2590_v46 = vld [vmem:[#allocation10 + $0x28] sm:$0xff]  ;;  %vm2509_vm14 = vcmp.ge.f32.partialorder %v2477_v51, 0.0 }
 0x281   :  { %2127 = vmatmul.f32.gmra.mxu3 %v5226_v33  ;;  %v5574_v33 = vpop.f32.mrf.mxu0  ;;  %v5580_v59 = vpop.f32.mrf.mxu1 }
 0x282   :  { %2892 = vmatpush.msrb.mxu0 %v2598_v32  ;;  %v1763_v57 = vadd.f32 %v5480_v26, %v1722_v4  ;;  %v1684_v26 = vadd.f32 %v5473_v40, %v5435_v36  ;;  %v2424_v40 = vmul.f32 %v5553_v60, %v5507_v52  ;;  %v6590_v4 = vld [vmem:[#allocation53_spill] sm:$0xff] }
 0x283   :  { %2060 = vmatmul.f32.gmra.mxu1 %v5241_v12  ;;  %v2420_v12 = vmul.f32 %v5553_v60, %v5502_v1 }
 0x284   :  { %v1800_v53 = vpop.f32.mrf.mxu3  ;;  %2893 = vmatpush.msrb.mxu0 %v2596_v3  ;;  %v2541_v3 = vmul.f32 0.01, %v2477_v51  ;;  %v2466_v52 = vadd.f32 %v5569_v37, %v2424_v40 }
 0x285   :  { %v5576_v44 = vadd.f32 %v1800_v53, %v1760_v7  ;;  %v2462_v1 = vadd.f32 %v5569_v37, %v2420_v12  ;;  %v1725_v7 = vadd.f32 %v5484_v5, %v1684_v26  ;;  %v6588_v53 = vld [vmem:[#allocation54_spill] sm:$0xff] }
 0x286   :  { %2101 = vmatmul.f32.gmra.mxu2 %v5245_v41  ;;  %v5597_v41 = vpop.f32.mrf.mxu2  ;;  %2894 = vmatpush.msrb.mxu0 %v2594_v50  ;;  %v1567_v50 = vadd.f32 %v5350_v16, %v1526_v54  ;;  %v5645_v26 = vsel %vm2509_vm14, %v2477_v51, %v2541_v3  ;;  %vm2498_vm15 = vcmp.ge.f32.partialorder %v2466_v52, 0.0  ;;  %v2648_v51 = vld [vmem:[#allocation10 + $0x1f8] sm:$0xff] }
 0x287   :  { %v2173_v30 = vadd.f32 %v2172_v48, %v5576_v44  ;;  %2744 = vmatmul.f32.gmra.mxu0 %v5590_v47  ;;  %v2537_v48 = vmul.f32 0.01, %v2473_v15  ;;  %v2526_v36 = vmul.f32 0.01, %v2462_v1  ;;  %v1766_v23 = vadd.f32 %v5504_v21, %v1725_v7  ;;  %v6593_v7 = vld [vmem:[#allocation59_spill] sm:$0xff]  ;;  %2924 = vmatpush.msrb.mxu1 %v2648_v51 }
 0x288   :  { %vm2494_vm13 = vcmp.ge.f32.partialorder %v2462_v1, 0.0  ;;  %v1529_v21 = vadd.f32 %v5337_v25, %v5305_v24  ;;  %v2586_v25 = vld [vmem:[#allocation10 + $0x8] sm:$0xff] }
 0x289   :  { %2130 = vmatmul.f32.gmra.mxu3 %v5248_v38  ;;  %v2592_v38 = vld [vmem:[#allocation10 + $0x38] sm:$0xff]  ;;  %v5608_v20 = vpop.f32.mrf.mxu0  ;;  %v5612_v39 = vpop.f32.mrf.mxu1  ;;  %v5616_v8 = vsel %vm2505_vm12, %v2473_v15, %v2537_v48  ;;  %v2439_v15 = vmul.f32 %v5456_v0, %v6590_v4  ;;  %v5631_v12 = vsel %vm2494_vm13, %v2462_v1, %v2526_v36  ;;  %v6592_v1 = vld [vmem:[#allocation55_spill] sm:$0xff] }
 0x28a   :  { %2895 = vmatpush.msrb.mxu0 %v2592_v38  ;;  %v2588_v48 = vld [vmem:[#allocation10 + $0x18] sm:$0xff] }
 0x28b   :  { %2776 = vmatmul.f32.vlgmr.msra.gmra.mxu1 %v5603_v58  ;;  %v2481_v24 = vadd.f32 %v5471_v31, %v2439_v15 }
 0x28c   :  { %v1803_v55 = vpop.f32.mrf.mxu3  ;;  %2896 = vmatpush.msrb.mxu0 %v2590_v46 }
 0x28d   :  { %v5599_v2 = vadd.f32 %v1803_v55, %v1763_v57  ;;  %v6591_v57 = vld [vmem:[#allocation34_spill] sm:$0xff]  ;;  %v2545_v4 = vmul.f32 0.01, %v2481_v24  ;;  %vm2513_vm0 = vcmp.ge.f32.partialorder %v2481_v24, 0.0 }
 0x28e   :  { %v1687_v55 = vadd.f32 %v5490_v42, %v6591_v57  ;;  %2897 = vmatpush.msrb.mxu0 %v2588_v48  ;;  %v2530_v42 = vmul.f32 0.01, %v2466_v52  ;;  %v2644_v48 = vld [vmem:[#allocation10 + $0x1d8] sm:$0xff] }
 0x28f   :  { %v2174_v34 = vadd.f32 %v2173_v30, %v5599_v2  ;;  %2747 = vmatmul.f32.gmra.mxu0 %v5616_v8  ;;  %v5625_v30 = vpop.f32.mrf.mxu2 }
 0x290   :  { %v1728_v6 = vadd.f32 %v5518_v43, %v1687_v55  ;;  %v6594_v43 = vld [vmem:[#allocation60_spill] sm:$0xff]  ;;  %2898 = vmatpush.msrb.mxu0 %v2586_v25  ;;  %v5662_v15 = vsel %vm2498_vm15, %v2466_v52, %v2530_v42  ;;  %v2432_v42 = vmul.f32 %v5553_v60, %v5513_v28 }
 0x291   :  { %2133 = vmatmul.f32.gmra.mxu3 %v6588_v53  ;;  %v5642_v61 = vpop.f32.mrf.mxu0  ;;  %v5648_v16 = vpop.f32.mrf.mxu1  ;;  %v1608_v53 = vadd.f32 %v6593_v7, %v1567_v50  ;;  %v1570_v36 = vadd.f32 %v6594_v43, %v1529_v21  ;;  %v6597_v50 = vld [vmem:[#allocation35_spill] sm:$0xff] }
 0x292   :  { %v1769_v40 = vadd.f32 %v5542_v56, %v1728_v6  ;;  %v6596_v56 = vld [vmem:[#allocation33_spill] sm:$0xff]  ;;  %v5670_v6 = vsel %vm2513_vm0, %v2481_v24, %v2545_v4 }
 0x293   :  { %2779 = vmatmul.f32.gmra.mxu1 %v5631_v12  ;;  %v1611_v21 = vadd.f32 %v6596_v56, %v1570_v36  ;;  %v1649_v57 = vadd.f32 %v6597_v50, %v1608_v53  ;;  %v2640_v53 = vld [vmem:[#allocation10 + $0x1b8] sm:$0xff] }
 0x294   :  { %v1806_v5 = vpop.f32.mrf.mxu3  ;;  %v6599_v4 = vld [vmem:[#allocation57_spill] sm:$0xff] }
 0x295   :  { %v5627_v32 = vadd.f32 %v1806_v5, %v1766_v23  ;;  %v6595_v23 = vld [vmem:[#allocation51_spill] sm:$0xff] }
 0x296   :  { %v2443_v5 = vmul.f32 %v5456_v0, %v6595_v23  ;;  %v6598_v0 = vld [vmem:[#allocation56_spill] sm:$0xff]  ;;  %v2636_v23 = vld [vmem:[#allocation10 + $0x198] sm:$0xff] }
 0x297   :  { %v2175_v38 = vadd.f32 %v2174_v34, %v5627_v32  ;;  %2750 = vmatmul.f32.gmra.mxu0 %v5645_v26  ;;  %v2428_v34 = vmul.f32 %v5553_v60, %v5510_v63  ;;  %v5656_v54 = vpop.f32.mrf.mxu2  ;;  %v2646_v63 = vld [vmem:[#allocation10 + $0x1e8] sm:$0xff] }
 0x298   :  { %2925 = vmatpush.msrb.mxu1 %v2646_v63  ;;  %v2485_v52 = vadd.f32 %v5471_v31, %v2443_v5 }
 0x299   :  { %2136 = vmatmul.f32.gmra.mxu3 %v6592_v1  ;;  %v2470_v46 = vadd.f32 %v5569_v37, %v2428_v34  ;;  %v2642_v1 = vld [vmem:[#allocation10 + $0x1c8] sm:$0xff]  ;;  %v1690_v34 = vadd.f32 %v5540_v17, %v1649_v57  ;;  %v5678_v7 = vpop.f32.mrf.mxu0  ;;  %v5680_v24 = vpop.f32.mrf.mxu1 }
 0x29a   :  { %2926 = vmatpush.msrb.mxu1 %v2644_v48  ;;  %v2549_v36 = vmul.f32 0.01, %v2485_v52  ;;  %vm2517_vm2 = vcmp.ge.f32.partialorder %v2485_v52, 0.0 }
 0x29b   :  { %2782 = vmatmul.f32.gmra.mxu1 %v5662_v15  ;;  %v2534_v25 = vmul.f32 0.01, %v2470_v46  ;;  %vm2502_vm1 = vcmp.ge.f32.partialorder %v2470_v46, 0.0  ;;  %v1731_v31 = vadd.f32 %v5544_v35, %v1690_v34 }
 0x29c   :  { %v1809_v27 = vpop.f32.mrf.mxu3  ;;  %2927 = vmatpush.msrb.mxu1 %v2642_v1  ;;  %v5695_v63 = vsel %vm2517_vm2, %v2485_v52, %v2549_v36 }
 0x29d   :  { %v5660_v3 = vadd.f32 %v1809_v27, %v1769_v40  ;;  %v2638_v40 = vld [vmem:[#allocation10 + $0x1a8] sm:$0xff]  ;;  %v5685_v28 = vsel %vm2502_vm1, %v2470_v46, %v2534_v25  ;;  %v1772_v17 = vadd.f32 %v5572_v62, %v1731_v31  ;;  %v2436_v62 = vmul.f32 %v5553_v60, %v5516_v45  ;;  %v2628_v25 = vld [vmem:[#allocation10 + $0x158] sm:$0xff] }
 0x29e   :  { %2928 = vmatpush.msrb.mxu1 %v2640_v53  ;;  %v2634_v46 = vld [vmem:[#allocation10 + $0x188] sm:$0xff]  ;;  %v2440_v53 = vmul.f32 %v5553_v60, %v5528_v29  ;;  %v2624_v31 = vld [vmem:[#allocation10 + $0x138] sm:$0xff] }
 0x29f   :  { %v2176_v55 = vadd.f32 %v2175_v38, %v5660_v3  ;;  %2753 = vmatmul.f32.gmra.mxu0 %v5670_v6  ;;  %v1652_v38 = vadd.f32 %v5482_v18, %v1611_v21  ;;  %v5683_v51 = vpop.f32.mrf.mxu2  ;;  %v2474_v18 = vadd.f32 %v5569_v37, %v2432_v42  ;;  %v2632_v21 = vld [vmem:[#allocation10 + $0x178] sm:$0xff]  ;;  %v2478_v45 = vadd.f32 %v5569_v37, %v2436_v62 }
 0x2a0   :  { %2929 = vmatpush.msrb.mxu1 %v2638_v40  ;;  %v2620_v29 = vld [vmem:[#allocation10 + $0x118] sm:$0xff] }
 0x2a1   :  { %2139 = vmatmul.f32.gmra.mxu3 %v6598_v0  ;;  %v1693_v27 = vadd.f32 %v5574_v33, %v1652_v38  ;;  %v2538_v56 = vmul.f32 0.01, %v2474_v18  ;;  %vm2506_vm3 = vcmp.ge.f32.partialorder %v2474_v18, 0.0  ;;  %v2630_v0 = vld [vmem:[#allocation10 + $0x168] sm:$0xff]  ;;  %v5706_v52 = vpop.f32.mrf.mxu1  ;;  %v2542_v34 = vmul.f32 0.01, %v2478_v45 }
 0x2a2   :  { %2930 = vmatpush.msrb.mxu1 %v2636_v23  ;;  %vm2510_vm4 = vcmp.ge.f32.partialorder %v2478_v45, 0.0 }
 0x2a3   :  { %2785 = vmatmul.f32.gmra.mxu1 %v5685_v28  ;;  %v1734_v35 = vadd.f32 %v5580_v59, %v1693_v27  ;;  %v5701_v59 = vpop.f32.mrf.mxu0  ;;  %v5708_v1 = vsel %vm2506_vm3, %v2474_v18, %v2538_v56  ;;  %v2622_v18 = vld [vmem:[#allocation10 + $0x128] sm:$0xff]  ;;  %v2482_v27 = vadd.f32 %v5569_v37, %v2440_v53  ;;  %v2444_v56 = vmul.f32 %v5553_v60, %v5497_v22 }
 0x2a4   :  { %v1812_v43 = vpop.f32.mrf.mxu3  ;;  %2931 = vmatpush.msrb.mxu1 %v2634_v46  ;;  %v2618_v46 = vld [vmem:[#allocation10 + $0x108] sm:$0xff] }
 0x2a5   :  { %v5692_v5 = vadd.f32 %v1812_v43, %v1772_v17  ;;  %v1775_v33 = vadd.f32 %v5597_v41, %v1734_v35  ;;  %v5720_v17 = vsel %vm2510_vm4, %v2478_v45, %v2542_v34  ;;  %vm2514_vm5 = vcmp.ge.f32.partialorder %v2482_v27, 0.0 }
 0x2a6   :  { %2932 = vmatpush.msrb.mxu1 %v2632_v21 }
 0x2a7   :  { %2756 = vmatmul.f32.gmra.mxu0 %v5695_v63  ;;  %v2177_v57 = vadd.f32 %v2176_v55, %v5692_v5  ;;  %v2626_v55 = vld [vmem:[#allocation10 + $0x148] sm:$0xff] }
 0x2a8   :  { %2933 = vmatpush.msrb.mxu1 %v2630_v0  ;;  %v5713_v42 = vpop.f32.mrf.mxu2 }
 0x2a9   :  { %2142 = vmatmul.f32.gmra.mxu3 %v6599_v4  ;;  %v5726_v35 = vpop.f32.mrf.mxu1 }
 0x2aa   :  { %2934 = vmatpush.msrb.mxu1 %v2628_v25 }
 0x2ab   :  { %2788 = vmatmul.f32.gmra.mxu1 %v5708_v1  ;;  %v5723_v23 = vpop.f32.mrf.mxu0 }
 0x2ac   :  { %v1815_v50 = vpop.f32.mrf.mxu3  ;;  %2935 = vmatpush.msrb.mxu1 %v2626_v55 }
 0x2ad   :  { %v5704_v48 = vadd.f32 %v1815_v50, %v1775_v33  ;;  %v2546_v33 = vmul.f32 0.01, %v2482_v27 }
 0x2ae   :  { %2936 = vmatpush.msrb.mxu1 %v2624_v31 }
 0x2af   :  { %v2178_v41 = vadd.f32 %v2177_v57, %v5704_v48  ;;  %2899 = vmatmul.f32.vlgmr.msrb.gmra.mxu0 %v5493_v49  ;;  %v6600_v57 = vld [vmem:[#allocation32_spill] sm:$0xff]  ;;  %v5736_v45 = vsel %vm2514_vm5, %v2482_v27, %v2546_v33 }
 0x2b0   :  { %2937 = vmatpush.msrb.mxu1 %v2622_v18  ;;  %v2679_v18 = vld [vmem:[#allocation10 + $0x2f0] sm:$0xff] }
 0x2b1   :  { %v2179_v38 = vrot.slane %v2178_v41, 4  ;;  %v5730_v62 = vpop.f32.mrf.mxu2  ;;  %2801 = vmatpush.msra.mxu2 %v2679_v18  ;;  %v2667_v18 = vld [vmem:[#allocation10 + $0x290] sm:$0xff] }
 0x2b2   :  { %2938 = vmatpush.msrb.mxu1 %v2620_v29  ;;  %v2677_v29 = vld [vmem:[#allocation10 + $0x2e0] sm:$0xff] }
 0x2b3   :  { %v2180_v43 = vadd.f32 %v2179_v38, %v2178_v41  ;;  %2791 = vmatmul.f32.gmra.mxu1 %v5720_v17  ;;  %v2486_v41 = vadd.f32 %v5569_v37, %v2444_v56  ;;  %v5758_v37 = vpop.f32.mrf.mxu0  ;;  %2802 = vmatpush.msra.mxu2 %v2677_v29  ;;  %v2665_v29 = vld [vmem:[#allocation10 + $0x280] sm:$0xff] }
 0x2b4   :  { %v5718_v36 = vpop.f32.mrf.mxu3  ;;  %2939 = vmatpush.msrb.mxu1 %v2618_v46 }
 0x2b5   :  { %v2181_v40 = vrot.slane %v2180_v43, 2  ;;  %vm2518_vm6 = vcmp.ge.f32.partialorder %v2486_v41, 0.0 }
 0x2b7   :  { %v2182_v49 = vadd.f32 %v2181_v40, %v2180_v43  ;;  %2902 = vmatmul.f32.gmra.mxu0 %v5535_v11 }
 0x2b9   :  { %v2183_v4 = vrot.slane %v2182_v49, 1 }
 0x2bb   :  { %v2184_v21 = vadd.f32 %v2183_v4, %v2182_v49  ;;  %2794 = vmatmul.f32.gmra.mxu1 %v5736_v45  ;;  %v5789_v33 = vpop.f32.mrf.mxu0 }
 0x2bc   :  { %v5733_v50 = vpop.f32.mrf.mxu3 }
 0x2bd   :  { %v2207_v0 = vmul.f32 %v6600_v57, %v2184_v21 }
 0x2bf   :  { %v5740_v25 = vsub.f32 %v5546_v14, %v2207_v0  ;;  %v5743_v22 = vsub.f32 %v5548_v9, %v2207_v0  ;;  %v5746_v11 = vsub.f32 %v5576_v44, %v2207_v0  ;;  %v5749_v60 = vsub.f32 %v5599_v2, %v2207_v0  ;;  %v5764_v44 = vpop.f32.mrf.mxu1  ;;  %2905 = vmatmul.f32.gmra.mxu0 %v5563_v13 }
 0x2c0   :  { %v5753_v38 = vsub.f32 %v5627_v32, %v2207_v0  ;;  %v5756_v55 = vsub.f32 %v5660_v3, %v2207_v0  ;;  %v2550_v2 = vmul.f32 0.01, %v2486_v41  ;;  %v5769_v3 = vpop.f32.mrf.mxu2  ;;  %v5778_v27 = vsub.f32 %v5692_v5, %v2207_v0  ;;  %v2675_v5 = vld [vmem:[#allocation10 + $0x2d0] sm:$0xff] }
 0x2c1   :  { %v2243_v14 = vmul.f32 %v5740_v25, %v5740_v25  ;;  %v2247_v9 = vmul.f32 %v5743_v22, %v5743_v22  ;;  %v2251_v32 = vmul.f32 %v5746_v11, %v5746_v11  ;;  %v2255_v43 = vmul.f32 %v5749_v60, %v5749_v60  ;;  %2803 = vmatpush.msra.mxu2 %v2675_v5  ;;  %v2663_v5 = vld [vmem:[#allocation10 + $0x270] sm:$0xff] }
 0x2c2   :  { %v5775_v40 = vsel %vm2518_vm6, %v2486_v41, %v2550_v2  ;;  %v2259_v13 = vmul.f32 %v5753_v38, %v5753_v38  ;;  %v5784_v4 = vsub.f32 %v5704_v48, %v2207_v0  ;;  %v2263_v46 = vmul.f32 %v5756_v55, %v5756_v55  ;;  %v2673_v48 = vld [vmem:[#allocation10 + $0x2c0] sm:$0xff] }
 0x2c3   :  { %v2299_v34 = vadd.f32 %v2247_v9, %v2243_v14  ;;  %2797 = vmatmul.f32.gmra.mxu1 %v5775_v40  ;;  %v2267_v21 = vmul.f32 %v5778_v27, %v5778_v27  ;;  %2804 = vmatpush.msra.mxu2 %v2673_v48 }
 0x2c4   :  { %v5771_v53 = vpop.f32.mrf.mxu3  ;;  %v2271_v0 = vmul.f32 %v5784_v4, %v5784_v4 }
 0x2c5   :  { %v2300_v31 = vadd.f32 %v2299_v34, %v2251_v32 }
 0x2c7   :  { %v2301_v49 = vadd.f32 %v2300_v31, %v2255_v43  ;;  %2908 = vmatmul.f32.gmra.mxu0 %v5590_v47  ;;  %v5793_v14 = vpop.f32.mrf.mxu1  ;;  %v2671_v47 = vld [vmem:[#allocation10 + $0x2b0] sm:$0xff]  ;;  %v2669_v43 = vld [vmem:[#allocation10 + $0x2a0] sm:$0xff] }
 0x2c8   :  { %v5799_v32 = vpop.f32.mrf.mxu2  ;;  %2805 = vmatpush.msra.mxu2 %v2671_v47 }
 0x2c9   :  { %v2302_v56 = vadd.f32 %v2301_v49, %v2259_v13 }
 0x2ca   :  { %2806 = vmatpush.msra.mxu2 %v2669_v43  ;;  %v2655_v43 = vld [vmem:[#allocation10 + $0x230] sm:$0xff] }
 0x2cb   :  { %v2303_v41 = vadd.f32 %v2302_v56, %v2263_v46  ;;  %2940 = vmatmul.f32.vlgmr.msrb.gmra.mxu1 %v5603_v58  ;;  %v5805_v46 = vpop.f32.mrf.mxu0  ;;  %v2661_v58 = vld [vmem:[#allocation10 + $0x260] sm:$0xff] }
 0x2cc   :  { %v5795_v9 = vpop.f32.mrf.mxu3  ;;  %2807 = vmatpush.msra.mxu2 %v2667_v18  ;;  %v2653_v18 = vld [vmem:[#allocation10 + $0x220] sm:$0xff] }
 0x2cd   :  { %v2304_v2 = vadd.f32 %v2303_v41, %v2267_v21 }
 0x2ce   :  { %2808 = vmatpush.msra.mxu2 %v2665_v29 }
 0x2cf   :  { %v2305_v34 = vadd.f32 %v2304_v2, %v2271_v0  ;;  %2911 = vmatmul.f32.gmra.mxu0 %v5616_v8  ;;  %v5807_v21 = vpop.f32.mrf.mxu1  ;;  %v2659_v8 = vld [vmem:[#allocation10 + $0x250] sm:$0xff]  ;;  %v2657_v2 = vld [vmem:[#allocation10 + $0x240] sm:$0xff] }
 0x2d0   :  { %2809 = vmatpush.msra.mxu2 %v2663_v5  ;;  %v5810_v48 = vpop.f32.mrf.mxu2  ;;  %v2649_v5 = vld [vmem:[#allocation10 + $0x200] sm:$0xff] }
 0x2d1   :  { %v2306_v31 = vrot.slane %v2305_v34, 4 }
 0x2d2   :  { %2810 = vmatpush.msra.mxu2 %v2661_v58 }
 0x2d3   :  { %v2307_v13 = vadd.f32 %v2306_v31, %v2305_v34  ;;  %2943 = vmatmul.f32.gmra.mxu1 %v5631_v12  ;;  %v5816_v12 = vpop.f32.mrf.mxu0 }
 0x2d4   :  { %v5803_v49 = vpop.f32.mrf.mxu3  ;;  %2811 = vmatpush.msra.mxu2 %v2659_v8 }
 0x2d5   :  { %v2308_v56 = vrot.slane %v2307_v13, 2 }
 0x2d6   :  { %2812 = vmatpush.msra.mxu2 %v2657_v2 }
 0x2d7   :  { %v2309_v41 = vadd.f32 %v2308_v56, %v2307_v13  ;;  %2914 = vmatmul.f32.gmra.mxu0 %v5645_v26  ;;  %v5819_v29 = vpop.f32.mrf.mxu1  ;;  %v2651_v56 = vld [vmem:[#allocation10 + $0x210] sm:$0xff] }
 0x2d8   :  { %2813 = vmatpush.msra.mxu2 %v2655_v43  ;;  %v5821_v26 = vpop.f32.mrf.mxu2 }
 0x2d9   :  { %v2310_v0 = vrot.slane %v2309_v41, 1 }
 0x2da   :  { %2814 = vmatpush.msra.mxu2 %v2653_v18 }
 0x2db   :  { %v2311_v47 = vadd.f32 %v2310_v0, %v2309_v41  ;;  %2946 = vmatmul.f32.gmra.mxu1 %v5662_v15  ;;  %v5827_v15 = vpop.f32.mrf.mxu0 }
 0x2dc   :  { %v5813_v34 = vpop.f32.mrf.mxu3  ;;  %2815 = vmatpush.msra.mxu2 %v2651_v56 }
 0x2dd   :  { %v2327_v31 = vmul.f32 %v2311_v47, %v6600_v57 }
 0x2de   :  { %2816 = vmatpush.msra.mxu2 %v2649_v5  ;;  %v5841_v5 = vperm.slane %v5460_v10, 2 }
 0x2df   :  { %v2331_v13 = vadd.f32 1e-05, %v2327_v31  ;;  %2917 = vmatmul.f32.gmra.mxu0 %v5670_v6  ;;  %v5829_v2 = vpop.f32.mrf.mxu1 }
 0x2e0   :  { %v5832_v43 = vpop.f32.mrf.mxu2 }
 0x2e1   :  { %3849 = vrsqrt.f32 %v2331_v13  ;;  %vm2359_vm8 = vweird.f32 %v2331_v13 }
 0x2e3   :  { %2949 = vmatmul.f32.gmra.mxu1 %v5685_v28  ;;  %v5838_v28 = vperm.slane %v5451_v19, 2 }
 0x2e4   :  { %v5824_v58 = vpop.f32.mrf.mxu3 }
 0x2e5   :  { %6601 = vst [vmem:[#allocation36_spill] sm:$0xff] %v5824_v58 }
 0x2e7   :  { %v3850_v41 = vpop.eup %3849  ;;  %2920 = vmatmul.f32.gmra.mxu0 %v5695_v63 }
 0x2e8   :  { %v2354_v8 = vmul.f32 %v3850_v41, %v2331_v13  ;;  %vm2360_vm7 = vweird.f32 %v3850_v41  ;;  %v5851_v13 = vpop.f32.mrf.mxu1 }
 0x2e9   :  { %vm2361_vm9 = vmor %vm2359_vm8, %vm2360_vm7 }
 0x2ea   :  { %v2355_v0 = vmul.f32 %v3850_v41, %v2354_v8  ;;  %v5846_v8 = vpop.f32.mrf.mxu0 }
 0x2eb   :  { %2952 = vmatmul.f32.gmra.mxu1 %v5708_v1 }
 0x2ec   :  { %v2356_v47 = vmul.f32 0.5, %v2355_v0  ;;  %v5834_v6 = vpop.f32.mrf.mxu3 }
 0x2ed   :  { %6602 = vst [vmem:[#allocation37_spill] sm:$0xff] %v5834_v6 }
 0x2ee   :  { %v2357_v31 = vsub.f32 1.5, %v2356_v47 }
 0x2f0   :  { %v2358_v18 = vmul.f32 %v3850_v41, %v2357_v31 }
 0x2f2   :  { %v2362_v56 = vsel %vm2361_vm9, %v3850_v41, %v2358_v18  ;;  %v5863_v18 = vpop.f32.mrf.mxu2 }
 0x2f3   :  { %v5844_v63 = vmul.f32 %v2362_v56, %v5784_v4  ;;  %v2375_v0 = vmul.f32 %v2362_v56, %v5740_v25  ;;  %v2379_v47 = vmul.f32 %v2362_v56, %v5743_v22  ;;  %v2383_v1 = vmul.f32 %v2362_v56, %v5746_v11  ;;  %2955 = vmatmul.f32.gmra.mxu1 %v5720_v17 }
 0x2f4   :  { %v5853_v31 = vpop.f32.mrf.mxu3  ;;  %v2387_v19 = vmul.f32 %v2362_v56, %v5749_v60  ;;  %v5857_v10 = vmul.f32 %v2362_v56, %v5753_v38  ;;  %v5860_v4 = vmul.f32 %v2362_v56, %v5756_v55  ;;  %v5869_v11 = vmul.f32 %v2362_v56, %v5778_v27  ;;  %v3974_v38 = vld [vmem:[#allocation6] sm:$0xf] }
 0x2f5   :  { %6603 = vst [vmem:[#allocation38_spill] sm:$0xff] %v5844_v63  ;;  %v2417_v41 = vmul.f32 %v5838_v28, %v2375_v0  ;;  %v2421_v22 = vmul.f32 %v5838_v28, %v2379_v47  ;;  %v5871_v57 = vperm.slane %v3974_v38, 3  ;;  %v5881_v47 = vpop.f32.mrf.mxu0 }
 0x2f6   :  { %6604 = vst [vmem:[#allocation39_spill] sm:$0xff] %v5869_v11 }
 0x2f7   :  { %v2459_v25 = vadd.f32 %v5841_v5, %v2417_v41  ;;  %v2463_v0 = vadd.f32 %v5841_v5, %v2421_v22  ;;  %v1839_v17 = vadd.f32 %v5642_v61, %v5871_v57  ;;  %v1836_v27 = vadd.f32 %v5608_v20, %v5871_v57  ;;  %v5887_v41 = vpop.f32.mrf.mxu1  ;;  %v2678_v61 = vld [vmem:[#allocation10 + $0x2e8] sm:$0xff] }
 0x2f8   :  { %v1842_v56 = vadd.f32 %v5678_v7, %v5871_v57  ;;  %v2425_v22 = vmul.f32 %v5838_v28, %v2383_v1  ;;  %v1848_v7 = vadd.f32 %v5723_v23, %v5871_v57  ;;  %v2676_v1 = vld [vmem:[#allocation10 + $0x2d8] sm:$0xff] }
 0x2f9   :  { %vm2491_vm10 = vcmp.ge.f32.partialorder %v2459_v25, 0.0  ;;  %v2523_v60 = vmul.f32 0.01, %v2459_v25  ;;  %vm2495_vm11 = vcmp.ge.f32.partialorder %v2463_v0, 0.0  ;;  %v1880_v20 = vadd.f32 %v5648_v16, %v1839_v17 }
 0x2fa   :  { %v5891_v38 = vpop.f32.mrf.mxu2  ;;  %v1877_v6 = vadd.f32 %v5612_v39, %v1836_v27  ;;  %v2467_v58 = vadd.f32 %v5841_v5, %v2425_v22 }
 0x2fb   :  { %v5873_v55 = vsel %vm2491_vm10, %v2459_v25, %v2523_v60  ;;  %2958 = vmatmul.f32.gmra.mxu1 %v5736_v45  ;;  %v2527_v25 = vmul.f32 0.01, %v2463_v0  ;;  %v2680_v60 = vld [vmem:[#allocation10 + $0x2f8] sm:$0xff]  ;;  %v1883_v45 = vadd.f32 %v5680_v24, %v1842_v56  ;;  %v1921_v16 = vadd.f32 %v5656_v54, %v1880_v20 }
 0x2fc   :  { %6605 = vst [vmem:[#allocation40_spill] sm:$0xff] %v5873_v55  ;;  %v5876_v63 = vpop.f32.mrf.mxu3  ;;  %2817 = vmatmul.f32.vlgmr.msra.gmra.mxu2 %v5873_v55  ;;  %v1845_v55 = vadd.f32 %v5701_v59, %v5871_v57  ;;  %v2674_v59 = vld [vmem:[#allocation10 + $0x2c8] sm:$0xff]  ;;  %v1918_v39 = vadd.f32 %v5625_v30, %v1877_v6  ;;  %v1851_v24 = vadd.f32 %v5758_v37, %v5871_v57  ;;  %v2531_v56 = vmul.f32 0.01, %v2467_v58  ;;  %v2672_v54 = vld [vmem:[#allocation10 + $0x2b8] sm:$0xff] }
 0x2fd   :  { %2965 = vmatpush.msrb.mxu2 %v2680_v60  ;;  %v5900_v11 = vsel %vm2495_vm11, %v2463_v0, %v2527_v25  ;;  %v1924_v23 = vadd.f32 %v5683_v51, %v1883_v45  ;;  %v1889_v0 = vadd.f32 %v5726_v35, %v1848_v7  ;;  %v2011_v27 = vpop.f32.mrf.mxu0  ;;  %v2429_v25 = vmul.f32 %v5838_v28, %v2387_v19  ;;  %v2668_v19 = vld [vmem:[#allocation10 + $0x298] sm:$0xff] }
 0x2fe   :  { %v1886_v17 = vadd.f32 %v5706_v52, %v1845_v55  ;;  %vm2499_vm12 = vcmp.ge.f32.partialorder %v2467_v58, 0.0  ;;  %v2670_v52 = vld [vmem:[#allocation10 + $0x2a8] sm:$0xff]  ;;  %v1962_v6 = vadd.f32 %v5733_v50, %v1921_v16  ;;  %v1959_v35 = vadd.f32 %v5718_v36, %v1918_v39 }
 0x2ff   :  { %2966 = vmatpush.msrb.mxu2 %v2678_v61  ;;  %v2052_v22 = vpop.f32.mrf.mxu1  ;;  %v1930_v51 = vadd.f32 %v5730_v62, %v1889_v0  ;;  %v1892_v37 = vadd.f32 %v5764_v44, %v1851_v24  ;;  %v5921_v61 = vsel %vm2499_vm12, %v2467_v58, %v2531_v56  ;;  %v2471_v20 = vadd.f32 %v5841_v5, %v2429_v25  ;;  %v2664_v56 = vld [vmem:[#allocation10 + $0x278] sm:$0xff] }
 0x300   :  { %v1927_v30 = vadd.f32 %v5713_v42, %v1886_v17  ;;  %v2666_v42 = vld [vmem:[#allocation10 + $0x288] sm:$0xff]  ;;  %v2003_v62 = vadd.f32 %v5827_v15, %v1962_v6  ;;  %v2000_v44 = vadd.f32 %v5816_v12, %v1959_v35 }
 0x301   :  { %2967 = vmatpush.msrb.mxu2 %v2676_v1  ;;  %v1933_v36 = vadd.f32 %v5769_v3, %v1892_v37  ;;  %v2535_v1 = vmul.f32 0.01, %v2471_v20  ;;  %vm2503_vm13 = vcmp.ge.f32.partialorder %v2471_v20, 0.0  ;;  %v1854_v3 = vadd.f32 %v5789_v33, %v5871_v57 }
 0x302   :  { %v2093_v55 = vpop.f32.mrf.mxu2  ;;  %v1968_v50 = vadd.f32 %v5795_v9, %v1927_v30  ;;  %v2044_v45 = vadd.f32 %v5829_v2, %v2003_v62  ;;  %v2041_v9 = vadd.f32 %v5819_v29, %v2000_v44  ;;  %v2660_v30 = vld [vmem:[#allocation10 + $0x258] sm:$0xff] }
 0x303   :  { %2961 = vmatmul.f32.gmra.mxu1 %v5775_v40  ;;  %2968 = vmatpush.msrb.mxu2 %v2674_v59  ;;  %v1965_v40 = vadd.f32 %v5771_v53, %v1924_v23  ;;  %v1971_v53 = vadd.f32 %v5803_v49, %v1930_v51  ;;  %v2433_v59 = vmul.f32 %v5838_v28, %v5857_v10 }
 0x304   :  { %v5903_v60 = vpop.f32.mrf.mxu3  ;;  %2820 = vmatmul.f32.gmra.mxu2 %v5900_v11  ;;  %v2085_v49 = vadd.f32 %v5832_v43, %v2044_v45  ;;  %v2082_v2 = vadd.f32 %v5821_v26, %v2041_v9  ;;  %v1974_v16 = vadd.f32 %v5813_v34, %v1933_v36  ;;  %v5947_v24 = vsel %vm2503_vm13, %v2471_v20, %v2535_v1  ;;  %v2654_v45 = vld [vmem:[#allocation10 + $0x228] sm:$0xff]  ;;  %v2652_v1 = vld [vmem:[#allocation10 + $0x218] sm:$0xff] }
 0x305   :  { %2969 = vmatpush.msrb.mxu2 %v2672_v54  ;;  %v2006_v58 = vadd.f32 %v5846_v8, %v1965_v40  ;;  %v2014_v12 = vpop.f32.mrf.mxu0  ;;  %v2009_v8 = vadd.f32 %v5881_v47, %v1968_v50  ;;  %v2012_v17 = vadd.f32 %v2011_v27, %v1971_v53  ;;  %v2475_v33 = vadd.f32 %v5841_v5, %v2433_v59  ;;  %v6606_v50 = vld [vmem:[#allocation36_spill] sm:$0xff]  ;;  %v6607_v53 = vld [vmem:[#allocation39_spill] sm:$0xff]  ;;  %v6608_v59 = vld [vmem:[#allocation37_spill] sm:$0xff] }
 0x306   :  { %v5953_v26 = vadd.f32 %v5853_v31, %v2082_v2  ;;  %v2015_v27 = vadd.f32 %v2014_v12, %v1974_v16  ;;  %v2437_v31 = vmul.f32 %v5838_v28, %v5860_v4 }
 0x307   :  { %2970 = vmatpush.msrb.mxu2 %v2670_v52  ;;  %v2047_v15 = vadd.f32 %v5851_v13, %v2006_v58  ;;  %v2055_v39 = vpop.f32.mrf.mxu1  ;;  %v2050_v29 = vadd.f32 %v5887_v41, %v2009_v8  ;;  %v5945_v13 = vadd.f32 %v5876_v63, %v2085_v49  ;;  %v2053_v43 = vadd.f32 %v2052_v22, %v2012_v17  ;;  %v2650_v49 = vld [vmem:[#allocation10 + $0x208] sm:$0xff] }
 0x308   :  { %v1857_v63 = vadd.f32 %v5805_v46, %v5871_v57  ;;  %v1895_v41 = vadd.f32 %v5793_v14, %v1854_v3  ;;  %vm2507_vm14 = vcmp.ge.f32.partialorder %v2475_v33, 0.0  ;;  %v2056_v22 = vadd.f32 %v2055_v39, %v2015_v27 }
 0x309   :  { %2971 = vmatpush.msrb.mxu2 %v2668_v19  ;;  %v2088_v10 = vadd.f32 %v5863_v18, %v2047_v15  ;;  %v2091_v34 = vadd.f32 %v5891_v38, %v2050_v29  ;;  %v2094_v0 = vadd.f32 %v2093_v55, %v2053_v43  ;;  %v2185_v25 = vadd.f32 %v5945_v13, %v5953_v26  ;;  %v2658_v19 = vld [vmem:[#allocation10 + $0x248] sm:$0xff] }
 0x30a   :  { %v2096_v23 = vpop.f32.mrf.mxu2  ;;  %v2539_v38 = vmul.f32 0.01, %v2475_v33  ;;  %v1936_v14 = vadd.f32 %v5799_v32, %v1895_v41  ;;  %v1898_v52 = vadd.f32 %v5807_v21, %v1857_v63  ;;  %v2479_v4 = vadd.f32 %v5841_v5, %v2437_v31 }
 0x30b   :  { %2972 = vmatpush.msrb.mxu2 %v2666_v42  ;;  %v5956_v18 = vadd.f32 %v5903_v60, %v2088_v10  ;;  %v2662_v60 = vld [vmem:[#allocation10 + $0x268] sm:$0xff]  ;;  %v2097_v51 = vadd.f32 %v2096_v23, %v2056_v22  ;;  %v2656_v42 = vld [vmem:[#allocation10 + $0x238] sm:$0xff]  ;;  %v2441_v58 = vmul.f32 %v5838_v28, %v6607_v53 }
 0x30c   :  { %v2131_v7 = vpop.f32.mrf.mxu3  ;;  %2823 = vmatmul.f32.gmra.mxu2 %v5921_v61  ;;  %v5973_v37 = vsel %vm2507_vm14, %v2475_v33, %v2539_v38  ;;  %v1939_v21 = vadd.f32 %v5810_v48, %v1898_v52  ;;  %v1977_v62 = vadd.f32 %v6606_v50, %v1936_v14  ;;  %v2543_v44 = vmul.f32 0.01, %v2479_v4  ;;  %v6609_v10 = vld [vmem:[#allocation38_spill] sm:$0xff] }
 0x30d   :  { %v5963_v54 = vadd.f32 %v2131_v7, %v2091_v34  ;;  %2973 = vmatpush.msrb.mxu2 %v2664_v56  ;;  %v2186_v57 = vadd.f32 %v2185_v25, %v5956_v18  ;;  %v2017_v6 = vpop.f32.mrf.mxu0  ;;  %vm2511_vm15 = vcmp.ge.f32.partialorder %v2479_v4, 0.0  ;;  %v2483_v48 = vadd.f32 %v5841_v5, %v2441_v58  ;;  %v2709_v50 = vld [vmem:[#allocation10 + $0x3e0] sm:$0xff] }
 0x30e   :  { %v1980_v9 = vadd.f32 %v6608_v59, %v1939_v21  ;;  %v2018_v15 = vadd.f32 %v2017_v6, %v1977_v62  ;;  %v5983_v3 = vsel %vm2511_vm15, %v2479_v4, %v2543_v44  ;;  %v2445_v17 = vmul.f32 %v5838_v28, %v6609_v10  ;;  %v2693_v10 = vld [vmem:[#allocation10 + $0x360] sm:$0xff] }
 0x30f   :  { %2974 = vmatpush.msrb.mxu2 %v2662_v60  ;;  %v2187_v35 = vadd.f32 %v2186_v57, %v5963_v54  ;;  %v2058_v40 = vpop.f32.mrf.mxu1  ;;  %v2547_v33 = vmul.f32 0.01, %v2483_v48  ;;  %vm2515_vm0 = vcmp.ge.f32.partialorder %v2483_v48, 0.0 }
 0x310   :  { %v2059_v8 = vadd.f32 %v2058_v40, %v2018_v15  ;;  %v2487_v41 = vadd.f32 %v5841_v5, %v2445_v17  ;;  %v6611_v5 = vld [vmem:[#allocation32_spill] sm:$0xff] }
 0x311   :  { %2975 = vmatpush.msrb.mxu2 %v2660_v30  ;;  %v5989_v63 = vsel %vm2515_vm0, %v2483_v48, %v2547_v33  ;;  %v6610_v30 = vld [vmem:[#allocation40_spill] sm:$0xff]  ;;  %v2701_v48 = vld [vmem:[#allocation10 + $0x3a0] sm:$0xff] }
 0x312   :  { %v2099_v7 = vpop.f32.mrf.mxu2  ;;  %v2551_v38 = vmul.f32 0.01, %v2487_v41  ;;  %vm2519_vm1 = vcmp.ge.f32.partialorder %v2487_v41, 0.0  ;;  %v2689_v33 = vld [vmem:[#allocation10 + $0x340] sm:$0xff] }
 0x313   :  { %2976 = vmatpush.msrb.mxu2 %v2658_v19  ;;  %v2100_v39 = vadd.f32 %v2099_v7, %v2059_v8 }
 0x314   :  { %v2134_v47 = vpop.f32.mrf.mxu3  ;;  %2826 = vmatmul.f32.gmra.mxu2 %v5947_v24  ;;  %v5993_v60 = vsel %vm2519_vm1, %v2487_v41, %v2551_v38  ;;  %v2683_v41 = vld [vmem:[#allocation10 + $0x310] sm:$0xff] }
 0x315   :  { %v5968_v46 = vadd.f32 %v2134_v47, %v2094_v0  ;;  %2977 = vmatpush.msrb.mxu2 %v2656_v42  ;;  %v2020_v2 = vpop.f32.mrf.mxu0 }
 0x316   :  { %v2021_v29 = vadd.f32 %v2020_v2, %v1980_v9  ;;  %v2703_v9 = vld [vmem:[#allocation10 + $0x3b0] sm:$0xff]  ;;  %v2697_v2 = vld [vmem:[#allocation10 + $0x380] sm:$0xff] }
 0x317   :  { %v2188_v20 = vadd.f32 %v2187_v35, %v5968_v46  ;;  %2978 = vmatpush.msrb.mxu2 %v2654_v45  ;;  %v2061_v16 = vpop.f32.mrf.mxu1  ;;  %v2705_v45 = vld [vmem:[#allocation10 + $0x3c0] sm:$0xff] }
 0x318   :  { %v2062_v23 = vadd.f32 %v2061_v16, %v2021_v29 }
 0x319   :  { %2979 = vmatpush.msrb.mxu2 %v2652_v1 }
 0x31a   :  { %v2102_v43 = vpop.f32.mrf.mxu2 }
 0x31b   :  { %2980 = vmatpush.msrb.mxu2 %v2650_v49  ;;  %v2103_v34 = vadd.f32 %v2102_v43, %v2062_v23  ;;  %v2699_v49 = vld [vmem:[#allocation10 + $0x390] sm:$0xff] }
 0x31c   :  { %v2137_v55 = vpop.f32.mrf.mxu3  ;;  %2829 = vmatmul.f32.gmra.mxu2 %v5973_v37  ;;  %v2687_v23 = vld [vmem:[#allocation10 + $0x330] sm:$0xff] }
 0x31d   :  { %v2138_v32 = vadd.f32 %v2137_v55, %v2097_v51 }
 0x31f   :  { %v2189_v36 = vadd.f32 %v2188_v20, %v2138_v32 }
 0x324   :  { %v2140_v12 = vpop.f32.mrf.mxu3  ;;  %2832 = vmatmul.f32.gmra.mxu2 %v5983_v3 }
 0x325   :  { %v2141_v47 = vadd.f32 %v2140_v12, %v2100_v39  ;;  %v2691_v39 = vld [vmem:[#allocation10 + $0x350] sm:$0xff] }
 0x327   :  { %v2190_v27 = vadd.f32 %v2189_v36, %v2141_v47 }
 0x32c   :  { %v2143_v0 = vpop.f32.mrf.mxu3  ;;  %2835 = vmatmul.f32.gmra.mxu2 %v5989_v63 }
 0x32d   :  { %v2144_v56 = vadd.f32 %v2143_v0, %v2103_v34  ;;  %v2681_v0 = vld [vmem:[#allocation10 + $0x300] sm:$0xff] }
 0x32f   :  { %v2191_v25 = vadd.f32 %v2190_v27, %v2144_v56  ;;  %v2712_v27 = vld [vmem:[#allocation10 + $0x3f8] sm:$0xff] }
 0x331   :  { %v2192_v28 = vrot.slane %v2191_v25, 4 }
 0x333   :  { %v2193_v31 = vadd.f32 %v2192_v28, %v2191_v25  ;;  %v2706_v28 = vld [vmem:[#allocation10 + $0x3c8] sm:$0xff] }
 0x334   :  { %2838 = vmatmul.f32.gmra.mxu2 %v5993_v60 }
 0x335   :  { %v2194_v22 = vrot.slane %v2193_v31, 2 }
 0x337   :  { %v2195_v57 = vadd.f32 %v2194_v22, %v2193_v31 }
 0x339   :  { %v2196_v14 = vrot.slane %v2195_v57, 1 }
 0x33b   :  { %v2197_v52 = vadd.f32 %v2196_v14, %v2195_v57  ;;  %v2704_v57 = vld [vmem:[#allocation10 + $0x3b8] sm:$0xff] }
 0x33c   :  { %2981 = vmatmul.f32.vlgmr.msrb.gmra.mxu2 %v6610_v30  ;;  %v3975_v30 = vld [vmem:[#allocation7] sm:$0xf] }
 0x33d   :  { %v2208_v6 = vmul.f32 %v6611_v5, %v2197_v52 }
 0x33f   :  { %v5999_v51 = vsub.f32 %v5953_v26, %v2208_v6  ;;  %v6002_v35 = vsub.f32 %v5945_v13, %v2208_v6  ;;  %v6005_v4 = vsub.f32 %v5956_v18, %v2208_v6  ;;  %v6008_v40 = vsub.f32 %v5968_v46, %v2208_v6 }
 0x340   :  { %v6010_v55 = vsub.f32 %v2138_v32, %v2208_v6  ;;  %v6013_v19 = vsub.f32 %v5963_v54, %v2208_v6  ;;  %v2711_v32 = vld [vmem:[#allocation10 + $0x3f0] sm:$0xff]  ;;  %v6024_v7 = vsub.f32 %v2141_v47, %v2208_v6  ;;  %v6028_v62 = vsub.f32 %v2144_v56, %v2208_v6  ;;  %v2710_v56 = vld [vmem:[#allocation10 + $0x3e8] sm:$0xff] }
 0x341   :  { %v2244_v20 = vmul.f32 %v5999_v51, %v5999_v51  ;;  %v2248_v26 = vmul.f32 %v6002_v35, %v6002_v35  ;;  %v2252_v13 = vmul.f32 %v6005_v4, %v6005_v4  ;;  %v2260_v54 = vmul.f32 %v6008_v40, %v6008_v40  ;;  %2842 = vmatpush.msrb.mxu3 %v2711_v32 }
 0x342   :  { %v2256_v18 = vmul.f32 %v6013_v19, %v6013_v19  ;;  %v2264_v36 = vmul.f32 %v6010_v55, %v6010_v55  ;;  %v2268_v53 = vmul.f32 %v6024_v7, %v6024_v7  ;;  %v2272_v1 = vmul.f32 %v6028_v62, %v6028_v62 }
 0x343   :  { %v2312_v21 = vadd.f32 %v2248_v26, %v2244_v20  ;;  %2843 = vmatpush.msrb.mxu3 %v2709_v50  ;;  %v6042_v6 = vperm.slane %v3975_v30, 3  ;;  %v3976_v26 = vld [vmem:[#allocation9] sm:$0xf] }
 0x344   :  { %2984 = vmatmul.f32.gmra.mxu2 %v5900_v11  ;;  %v2707_v11 = vld [vmem:[#allocation10 + $0x3d0] sm:$0xff] }
 0x345   :  { %v2313_v46 = vadd.f32 %v2312_v21, %v2252_v13  ;;  %2844 = vmatpush.msrb.mxu3 %v2707_v11  ;;  %v6044_v13 = vperm.slane %v3976_v26, 3  ;;  %v2694_v11 = vld [vmem:[#allocation10 + $0x368] sm:$0xff] }
 0x347   :  { %v2314_v42 = vadd.f32 %v2313_v46, %v2256_v18  ;;  %2845 = vmatpush.msrb.mxu3 %v2705_v45  ;;  %v2692_v45 = vld [vmem:[#allocation10 + $0x358] sm:$0xff] }
 0x349   :  { %v2315_v44 = vadd.f32 %v2314_v42, %v2260_v54  ;;  %2846 = vmatpush.msrb.mxu3 %v2703_v9  ;;  %v2700_v54 = vld [vmem:[#allocation10 + $0x398] sm:$0xff]  ;;  %v2690_v9 = vld [vmem:[#allocation10 + $0x348] sm:$0xff] }
 0x34b   :  { %v2316_v58 = vadd.f32 %v2315_v44, %v2264_v36  ;;  %2847 = vmatpush.msrb.mxu3 %v2701_v48  ;;  %v2698_v44 = vld [vmem:[#allocation10 + $0x388] sm:$0xff] }
 0x34c   :  { %2987 = vmatmul.f32.gmra.mxu2 %v5921_v61  ;;  %v2695_v61 = vld [vmem:[#allocation10 + $0x370] sm:$0xff] }
 0x34d   :  { %v2317_v59 = vadd.f32 %v2316_v58, %v2268_v53  ;;  %2848 = vmatpush.msrb.mxu3 %v2699_v49 }
 0x34f   :  { %v2318_v15 = vadd.f32 %v2317_v59, %v2272_v1  ;;  %2849 = vmatpush.msrb.mxu3 %v2697_v2  ;;  %v2686_v2 = vld [vmem:[#allocation10 + $0x328] sm:$0xff] }
 0x351   :  { %v2319_v12 = vrot.slane %v2318_v15, 4  ;;  %2850 = vmatpush.msrb.mxu3 %v2695_v61 }
 0x353   :  { %v2320_v8 = vadd.f32 %v2319_v12, %v2318_v15  ;;  %2851 = vmatpush.msrb.mxu3 %v2693_v10  ;;  %v2688_v12 = vld [vmem:[#allocation10 + $0x338] sm:$0xff] }
 0x354   :  { %2990 = vmatmul.f32.gmra.mxu2 %v5947_v24  ;;  %v2685_v24 = vld [vmem:[#allocation10 + $0x320] sm:$0xff]  ;;  %v2684_v10 = vld [vmem:[#allocation10 + $0x318] sm:$0xff] }
 0x355   :  { %v2321_v16 = vrot.slane %v2320_v8, 2  ;;  %2852 = vmatpush.msrb.mxu3 %v2691_v39 }
 0x357   :  { %v2322_v17 = vadd.f32 %v2321_v16, %v2320_v8  ;;  %2853 = vmatpush.msrb.mxu3 %v2689_v33 }
 0x359   :  { %v2323_v29 = vrot.slane %v2322_v17, 1  ;;  %2854 = vmatpush.msrb.mxu3 %v2687_v23 }
 0x35b   :  { %v2324_v43 = vadd.f32 %v2323_v29, %v2322_v17  ;;  %2855 = vmatpush.msrb.mxu3 %v2685_v24  ;;  %v2682_v29 = vld [vmem:[#allocation10 + $0x308] sm:$0xff] }
 0x35c   :  { %2993 = vmatmul.f32.gmra.mxu2 %v5973_v37  ;;  %v2708_v37 = vld [vmem:[#allocation10 + $0x3d8] sm:$0xff] }
 0x35d   :  { %v2328_v47 = vmul.f32 %v2324_v43, %v6611_v5  ;;  %2856 = vmatpush.msrb.mxu3 %v2683_v41 }
 0x35f   :  { %v2332_v34 = vadd.f32 1e-05, %v2328_v47  ;;  %2857 = vmatpush.msrb.mxu3 %v2681_v0 }
 0x361   :  { %3851 = vrsqrt.f32 %v2332_v34  ;;  %3006 = vmatpush.msra.mxu3 %v2712_v27  ;;  %vm2369_vm3 = vweird.f32 %v2332_v34 }
 0x363   :  { %3007 = vmatpush.msra.mxu3 %v2710_v56 }
 0x364   :  { %2996 = vmatmul.f32.gmra.mxu2 %v5983_v3  ;;  %v2702_v3 = vld [vmem:[#allocation10 + $0x3a8] sm:$0xff] }
 0x365   :  { %3008 = vmatpush.msra.mxu3 %v2708_v37 }
 0x367   :  { %v3852_v25 = vpop.eup %3851  ;;  %3009 = vmatpush.msra.mxu3 %v2706_v28  ;;  %v2777_v28 = vpop.f32.mrf.mxu1 }
 0x368   :  { %v2364_v38 = vmul.f32 %v3852_v25, %v2332_v34  ;;  %vm2370_vm2 = vweird.f32 %v3852_v25 }
 0x369   :  { %3010 = vmatpush.msra.mxu3 %v2704_v57  ;;  %vm2371_vm4 = vmor %vm2369_vm3, %vm2370_vm2 }
 0x36a   :  { %v2365_v31 = vmul.f32 %v3852_v25, %v2364_v38  ;;  %v2736_v38 = vpop.f32.mrf.mxu0 }
 0x36b   :  { %3011 = vmatpush.msra.mxu3 %v2702_v3 }
 0x36c   :  { %v2366_v22 = vmul.f32 0.5, %v2365_v31  ;;  %2999 = vmatmul.f32.gmra.mxu2 %v5989_v63 }
 0x36d   :  { %3012 = vmatpush.msra.mxu3 %v2700_v54 }
 0x36e   :  { %v2367_v14 = vsub.f32 1.5, %v2366_v22 }
 0x36f   :  { %3013 = vmatpush.msra.mxu3 %v2698_v44  ;;  %v2780_v57 = vpop.f32.mrf.mxu1  ;;  %v6074_v44 = vld [vmem:[#allocation12] sm:$0x3] }
 0x370   :  { %v2368_v52 = vmul.f32 %v3852_v25, %v2367_v14 }
 0x372   :  { %v2372_v20 = vsel %vm2371_vm4, %v3852_v25, %v2368_v52  ;;  %v2739_v22 = vpop.f32.mrf.mxu0 }
 0x373   :  { %v6047_v21 = vmul.f32 %v2372_v20, %v6028_v62  ;;  %v2376_v63 = vmul.f32 %v2372_v20, %v5999_v51  ;;  %v2380_v18 = vmul.f32 %v2372_v20, %v6002_v35  ;;  %v2384_v46 = vmul.f32 %v2372_v20, %v6005_v4 }
 0x374   :  { %3002 = vmatmul.f32.gmra.mxu2 %v5993_v60  ;;  %v2388_v32 = vmul.f32 %v2372_v20, %v6013_v19  ;;  %v2392_v42 = vmul.f32 %v2372_v20, %v6008_v40  ;;  %v2396_v50 = vmul.f32 %v2372_v20, %v6010_v55  ;;  %v2400_v36 = vmul.f32 %v2372_v20, %v6024_v7  ;;  %v2696_v40 = vld [vmem:[#allocation10 + $0x378] sm:$0xff] }
 0x375   :  { %v2418_v62 = vmul.f32 %v6042_v6, %v2376_v63  ;;  %v2422_v35 = vmul.f32 %v6042_v6, %v2380_v18  ;;  %3014 = vmatpush.msra.mxu3 %v2696_v40  ;;  %v2426_v7 = vmul.f32 %v6042_v6, %v2384_v46  ;;  %v2446_v41 = vmul.f32 %v6042_v6, %v6047_v21 }
 0x376   :  { %v2430_v59 = vmul.f32 %v6042_v6, %v2388_v32  ;;  %v2434_v8 = vmul.f32 %v6042_v6, %v2392_v42  ;;  %v2438_v39 = vmul.f32 %v6042_v6, %v2396_v50  ;;  %v2442_v47 = vmul.f32 %v6042_v6, %v2400_v36 }
 0x377   :  { %v2460_v51 = vadd.f32 %v6044_v13, %v2418_v62  ;;  %v2464_v19 = vadd.f32 %v6044_v13, %v2422_v35  ;;  %3015 = vmatpush.msra.mxu3 %v2694_v11  ;;  %v2468_v58 = vadd.f32 %v6044_v13, %v2426_v7  ;;  %v2488_v56 = vadd.f32 %v6044_v13, %v2446_v41  ;;  %v2783_v3 = vpop.f32.mrf.mxu1 }
 0x378   :  { %v2472_v48 = vadd.f32 %v6044_v13, %v2430_v59  ;;  %v2476_v61 = vadd.f32 %v6044_v13, %v2434_v8  ;;  %v2480_v43 = vadd.f32 %v6044_v13, %v2438_v39  ;;  %v2484_v34 = vadd.f32 %v6044_v13, %v2442_v47 }
 0x379   :  { %vm2492_vm5 = vcmp.ge.f32.partialorder %v2460_v51, 0.0  ;;  %v2524_v4 = vmul.f32 0.01, %v2460_v51  ;;  %v2528_v55 = vmul.f32 0.01, %v2464_v19  ;;  %vm2496_vm6 = vcmp.ge.f32.partialorder %v2464_v19, 0.0  ;;  %3016 = vmatpush.msra.mxu3 %v2692_v45 }
 0x37a   :  { %v2532_v1 = vmul.f32 0.01, %v2468_v58  ;;  %vm2500_vm7 = vcmp.ge.f32.partialorder %v2468_v58, 0.0  ;;  %v2536_v49 = vmul.f32 0.01, %v2472_v48  ;;  %vm2504_vm8 = vcmp.ge.f32.partialorder %v2472_v48, 0.0  ;;  %v2742_v52 = vpop.f32.mrf.mxu0 }
 0x37b   :  { %v2556_v60 = vsel %vm2492_vm5, %v2460_v51, %v2524_v4  ;;  %v2560_v53 = vsel %vm2496_vm6, %v2464_v19, %v2528_v55  ;;  %3017 = vmatpush.msra.mxu3 %v2690_v9  ;;  %v2540_v17 = vmul.f32 0.01, %v2476_v61  ;;  %vm2508_vm9 = vcmp.ge.f32.partialorder %v2476_v61, 0.0 }
 0x37c   :  { %2858 = vmatmul.f32.vlgmr.msrb.gmra.mxu3 %v2556_v60  ;;  %v2564_v15 = vsel %vm2500_vm7, %v2468_v58, %v2532_v1  ;;  %v2568_v16 = vsel %vm2504_vm8, %v2472_v48, %v2536_v49  ;;  %v2544_v23 = vmul.f32 0.01, %v2480_v43  ;;  %vm2512_vm10 = vcmp.ge.f32.partialorder %v2480_v43, 0.0 }
 0x37d   :  { %3018 = vmatpush.msra.mxu3 %v2688_v12  ;;  %v2572_v33 = vsel %vm2508_vm9, %v2476_v61, %v2540_v17  ;;  %v2548_v0 = vmul.f32 0.01, %v2484_v34  ;;  %vm2516_vm11 = vcmp.ge.f32.partialorder %v2484_v34, 0.0  ;;  %v2552_v25 = vmul.f32 0.01, %v2488_v56 }
 0x37e   :  { %v2576_v24 = vsel %vm2512_vm10, %v2480_v43, %v2544_v23  ;;  %vm2520_vm12 = vcmp.ge.f32.partialorder %v2488_v56, 0.0  ;;  %v2715_v40 = vperm.slane %v6074_v44, 0 }
 0x37f   :  { %3019 = vmatpush.msra.mxu3 %v2686_v2  ;;  %v2580_v27 = vsel %vm2516_vm11, %v2484_v34, %v2548_v0  ;;  %v2584_v37 = vsel %vm2520_vm12, %v2488_v56, %v2552_v25  ;;  %v2818_v31 = vpop.f32.mrf.mxu2  ;;  %v2786_v20 = vpop.f32.mrf.mxu1 }
 0x380   :  { %v2740_v7 = vadd.f32 %v2739_v22, %v2715_v40  ;;  %v2737_v11 = vadd.f32 %v2736_v38, %v2715_v40 }
 0x381   :  { %3020 = vmatpush.msra.mxu3 %v2684_v10 }
 0x382   :  { %v2745_v6 = vpop.f32.mrf.mxu0  ;;  %v2781_v58 = vadd.f32 %v2780_v57, %v2740_v7  ;;  %v2778_v59 = vadd.f32 %v2777_v28, %v2737_v11 }
 0x383   :  { %3021 = vmatpush.msra.mxu3 %v2682_v29  ;;  %v2746_v1 = vadd.f32 %v2745_v6, %v2715_v40 }
 0x384   :  { %2861 = vmatmul.f32.gmra.mxu3 %v2560_v53  ;;  %v2819_v8 = vadd.f32 %v2818_v31, %v2778_v59 }
 0x385   :  { %v2787_v49 = vadd.f32 %v2786_v20, %v2746_v1 }
 0x387   :  { %v2821_v14 = vpop.f32.mrf.mxu2  ;;  %v2789_v63 = vpop.f32.mrf.mxu1 }
 0x38a   :  { %v2748_v21 = vpop.f32.mrf.mxu0 }
 0x38b   :  { %v2749_v48 = vadd.f32 %v2748_v21, %v2715_v40 }
 0x38c   :  { %2864 = vmatmul.f32.gmra.mxu3 %v2564_v15 }
 0x38d   :  { %v2790_v17 = vadd.f32 %v2789_v63, %v2749_v48 }
 0x38f   :  { %v2824_v30 = vpop.f32.mrf.mxu2  ;;  %v2792_v54 = vpop.f32.mrf.mxu1 }
 0x392   :  { %v2751_v32 = vpop.f32.mrf.mxu0 }
 0x393   :  { %v2752_v61 = vadd.f32 %v2751_v32, %v2715_v40 }
 0x394   :  { %2867 = vmatmul.f32.gmra.mxu3 %v2568_v16 }
 0x395   :  { %v2793_v47 = vadd.f32 %v2792_v54, %v2752_v61 }
 0x397   :  { %v2827_v26 = vpop.f32.mrf.mxu2  ;;  %v2795_v62 = vpop.f32.mrf.mxu1 }
 0x398   :  { %v2828_v39 = vadd.f32 %v2827_v26, %v2787_v49 }
 0x39a   :  { %v2754_v36 = vpop.f32.mrf.mxu0 }
 0x39b   :  { %v2755_v43 = vadd.f32 %v2754_v36, %v2715_v40 }
 0x39c   :  { %2870 = vmatmul.f32.gmra.mxu3 %v2572_v33 }
 0x39f   :  { %v2830_v18 = vpop.f32.mrf.mxu2  ;;  %v2798_v19 = vpop.f32.mrf.mxu1 }
 0x3a2   :  { %v2757_v4 = vpop.f32.mrf.mxu0 }
 0x3a3   :  { %v2758_v38 = vadd.f32 %v2757_v4, %v2715_v40 }
 0x3a4   :  { %2873 = vmatmul.f32.gmra.mxu3 %v2576_v24 }
 0x3a7   :  { %v2833_v42 = vpop.f32.mrf.mxu2  ;;  %v6079_v10 = vpop.f32.mrf.mxu1 }
 0x3a8   :  { %v2834_v56 = vadd.f32 %v2833_v42, %v2793_v47  ;;  %v3279_v47 = vld [vmem:[#allocation16 + $0x70] sm:$0xff] }
 0x3aa   :  { %v6077_v12 = vpop.f32.mrf.mxu0 }
 0x3ac   :  { %2876 = vmatmul.f32.gmra.mxu3 %v2580_v27 }
 0x3af   :  { %v2836_v35 = vpop.f32.mrf.mxu2 }
 0x3b2   :  { %v6083_v57 = vpop.f32.mrf.mxu0 }
 0x3b4   :  { %2879 = vmatmul.f32.gmra.mxu3 %v2584_v37 }
 0x3b7   :  { %v2839_v55 = vpop.f32.mrf.mxu2 }
 0x3ba   :  { %v6089_v32 = vpop.f32.mrf.mxu0 }
 0x3bc   :  { %3022 = vmatmul.f32.vlgmr.msra.gmra.mxu3 %v2556_v60 }
 0x3bf   :  { %v6081_v23 = vpop.f32.mrf.mxu2 }
 0x3c4   :  { %3025 = vmatmul.f32.gmra.mxu3 %v2560_v53  ;;  %v2743_v53 = vadd.f32 %v2742_v52, %v2715_v40 }
 0x3c6   :  { %v2784_v9 = vadd.f32 %v2783_v3, %v2743_v53 }
 0x3c7   :  { %v6087_v26 = vpop.f32.mrf.mxu2 }
 0x3c8   :  { %v2825_v2 = vadd.f32 %v2824_v30, %v2784_v9  ;;  %v6085_v30 = vpop.f32.mrf.mxu1 }
 0x3cc   :  { %3028 = vmatmul.f32.gmra.mxu3 %v2564_v15  ;;  %v2822_v15 = vadd.f32 %v2821_v14, %v2781_v58  ;;  %v2799_v14 = vadd.f32 %v2798_v19, %v2758_v38  ;;  %v3277_v38 = vld [vmem:[#allocation16 + $0x60] sm:$0xff] }
 0x3ce   :  { %v2840_v6 = vadd.f32 %v2839_v55, %v2799_v14 }
 0x3d0   :  { %v6091_v42 = vpop.f32.mrf.mxu1 }
 0x3d4   :  { %3031 = vmatmul.f32.gmra.mxu3 %v2568_v16 }
 0x3d8   :  { %v6102_v55 = vpop.f32.mrf.mxu1 }
 0x3dc   :  { %3034 = vmatmul.f32.gmra.mxu3 %v2572_v33 }
 0x3e4   :  { %3037 = vmatmul.f32.gmra.mxu3 %v2576_v24  ;;  %v2831_v24 = vadd.f32 %v2830_v18, %v2790_v17  ;;  %v3280_v17 = vld [vmem:[#allocation16 + $0x78] sm:$0xff] }
 0x3e5   :  { %3301 = vmatpush.msra.mxu0 %v3280_v17 }
 0x3e7   :  { %3302 = vmatpush.msra.mxu0 %v3279_v47  ;;  %v3269_v47 = vld [vmem:[#allocation16 + $0x20] sm:$0xff] }
 0x3ec   :  { %3040 = vmatmul.f32.gmra.mxu3 %v2580_v27  ;;  %v2796_v27 = vadd.f32 %v2795_v62, %v2755_v43  ;;  %v6095_v62 = vpop.f32.mrf.mxu2  ;;  %v6132_v43 = vpop.f32.mrf.mxu1 }
 0x3ee   :  { %v2837_v28 = vadd.f32 %v2836_v35, %v2796_v27  ;;  %v3278_v27 = vld [vmem:[#allocation16 + $0x68] sm:$0xff] }
 0x3ef   :  { %3303 = vmatpush.msra.mxu0 %v3278_v27 }
 0x3f1   :  { %3304 = vmatpush.msra.mxu0 %v3277_v38 }
 0x3f4   :  { %3043 = vmatmul.f32.gmra.mxu3 %v2584_v37  ;;  %v6110_v58 = vpop.f32.mrf.mxu2 }
 0x3ff   :  { %v2859_v13 = vpop.f32.mrf.mxu3 }
 0x400   :  { %v2860_v29 = vadd.f32 %v2859_v13, %v2819_v8 }
 0x407   :  { %v2862_v46 = vpop.f32.mrf.mxu3 }
 0x408   :  { %v2863_v16 = vadd.f32 %v2862_v46, %v2822_v15 }
 0x40a   :  { %v3047_v34 = vadd.f32 %v2863_v16, %v2860_v29 }
 0x40f   :  { %v2865_v50 = vpop.f32.mrf.mxu3 }
 0x410   :  { %v2866_v33 = vadd.f32 %v2865_v50, %v2825_v2 }
 0x412   :  { %v3048_v25 = vadd.f32 %v3047_v34, %v2866_v33 }
 0x417   :  { %v2868_v51 = vpop.f32.mrf.mxu3 }
 0x418   :  { %v2869_v41 = vadd.f32 %v2868_v51, %v2828_v39 }
 0x41a   :  { %v3049_v31 = vadd.f32 %v3048_v25, %v2869_v41 }
 0x41f   :  { %v2871_v60 = vpop.f32.mrf.mxu3 }
 0x420   :  { %v2872_v37 = vadd.f32 %v2871_v60, %v2831_v24  ;;  %v6097_v60 = vpop.f32.mrf.mxu0 }
 0x422   :  { %v3050_v52 = vadd.f32 %v3049_v31, %v2872_v37 }
 0x427   :  { %v2874_v45 = vpop.f32.mrf.mxu3 }
 0x428   :  { %v2875_v22 = vadd.f32 %v2874_v45, %v2834_v56  ;;  %v2912_v61 = vpop.f32.mrf.mxu0 }
 0x42a   :  { %v3051_v20 = vadd.f32 %v3050_v52, %v2875_v22 }
 0x42f   :  { %v2877_v0 = vpop.f32.mrf.mxu3 }
 0x430   :  { %v2878_v3 = vadd.f32 %v2877_v0, %v2837_v28  ;;  %v6138_v0 = vpop.f32.mrf.mxu2  ;;  %v2915_v52 = vpop.f32.mrf.mxu0 }
 0x432   :  { %v3052_v21 = vadd.f32 %v3051_v20, %v2878_v3  ;;  %v2956_v20 = vpop.f32.mrf.mxu1 }
 0x437   :  { %v2880_v13 = vpop.f32.mrf.mxu3 }
 0x438   :  { %v2881_v63 = vadd.f32 %v2880_v13, %v2840_v6  ;;  %v3274_v13 = vld [vmem:[#allocation16 + $0x48] sm:$0xff] }
 0x43a   :  { %v3053_v18 = vadd.f32 %v3052_v21, %v2881_v63 }
 0x43c   :  { %v3054_v46 = vrot.slane %v3053_v18, 4 }
 0x43e   :  { %v3055_v54 = vadd.f32 %v3054_v46, %v3053_v18  ;;  %v3273_v46 = vld [vmem:[#allocation16 + $0x40] sm:$0xff] }
 0x43f   :  { %v6093_v50 = vpop.f32.mrf.mxu3 }
 0x440   :  { %v3056_v36 = vrot.slane %v3055_v54, 2 }
 0x442   :  { %v3057_v51 = vadd.f32 %v3056_v36, %v3055_v54  ;;  %v3272_v36 = vld [vmem:[#allocation16 + $0x38] sm:$0xff] }
 0x444   :  { %v3058_v35 = vrot.slane %v3057_v51, 1 }
 0x446   :  { %v3059_v4 = vadd.f32 %v3058_v35, %v3057_v51  ;;  %v2716_v51 = vperm.slane %v6074_v44, 1  ;;  %v2959_v44 = vpop.f32.mrf.mxu1 }
 0x447   :  { %v6099_v19 = vpop.f32.mrf.mxu3 }
 0x448   :  { %v3073_v40 = vmul.f32 %v3059_v4, %v6611_v5  ;;  %v3271_v4 = vld [vmem:[#allocation16 + $0x30] sm:$0xff] }
 0x44a   :  { %v6104_v7 = vsub.f32 %v2860_v29, %v3073_v40  ;;  %v6106_v11 = vsub.f32 %v2863_v16, %v3073_v40  ;;  %v6108_v53 = vsub.f32 %v2866_v33, %v3073_v40  ;;  %v6112_v45 = vsub.f32 %v2869_v41, %v3073_v40 }
 0x44b   :  { %v6118_v9 = vsub.f32 %v2872_v37, %v3073_v40  ;;  %v6124_v8 = vsub.f32 %v2875_v22, %v3073_v40  ;;  %v6128_v39 = vsub.f32 %v2878_v3, %v3073_v40  ;;  %v6134_v24 = vsub.f32 %v2881_v63, %v3073_v40  ;;  %v3276_v22 = vld [vmem:[#allocation16 + $0x58] sm:$0xff]  ;;  %v3275_v3 = vld [vmem:[#allocation16 + $0x50] sm:$0xff]  ;;  %v2997_v63 = vpop.f32.mrf.mxu2 }
 0x44c   :  { %v3091_v1 = vmul.f32 %v6104_v7, %v6104_v7  ;;  %v3093_v59 = vmul.f32 %v6106_v11, %v6106_v11  ;;  %v3095_v15 = vmul.f32 %v6108_v53, %v6108_v53  ;;  %v3097_v2 = vmul.f32 %v6112_v45, %v6112_v45  ;;  %3305 = vmatpush.msra.mxu0 %v3276_v22 }
 0x44d   :  { %v3099_v29 = vmul.f32 %v6118_v9, %v6118_v9  ;;  %v3101_v34 = vmul.f32 %v6124_v8, %v6124_v8  ;;  %v3103_v56 = vmul.f32 %v6128_v39, %v6128_v39  ;;  %v3105_v28 = vmul.f32 %v6134_v24, %v6134_v24 }
 0x44e   :  { %v3107_v48 = vadd.f32 %v3093_v59, %v3091_v1  ;;  %3306 = vmatpush.msra.mxu0 %v3275_v3  ;;  %v2904_v40 = vadd.f32 %v6083_v57, %v2716_v51  ;;  %v2918_v59 = vpop.f32.mrf.mxu0 }
 0x44f   :  { %v6122_v49 = vpop.f32.mrf.mxu3 }
 0x450   :  { %v3108_v16 = vadd.f32 %v3107_v48, %v3095_v15  ;;  %3307 = vmatpush.msra.mxu0 %v3274_v13  ;;  %v3270_v15 = vld [vmem:[#allocation16 + $0x28] sm:$0xff]  ;;  %v2901_v48 = vadd.f32 %v6077_v12, %v2716_v51  ;;  %v2913_v12 = vadd.f32 %v2912_v61, %v2716_v51 }
 0x452   :  { %v3109_v33 = vadd.f32 %v3108_v16, %v3097_v2  ;;  %3308 = vmatpush.msra.mxu0 %v3273_v46  ;;  %v2907_v2 = vadd.f32 %v6089_v32, %v2716_v51  ;;  %v2945_v16 = vadd.f32 %v6085_v30, %v2904_v40 }
 0x453   :  { %v3000_v30 = vpop.f32.mrf.mxu2 }
 0x454   :  { %v3110_v41 = vadd.f32 %v3109_v33, %v3099_v29  ;;  %3309 = vmatpush.msra.mxu0 %v3272_v36  ;;  %v2910_v29 = vadd.f32 %v6097_v60, %v2716_v51  ;;  %v2948_v57 = vadd.f32 %v6091_v42, %v2907_v2  ;;  %v3267_v42 = vld [vmem:[#allocation16 + $0x10] sm:$0xff] }
 0x456   :  { %v3111_v25 = vadd.f32 %v3110_v41, %v3101_v34  ;;  %3310 = vmatpush.msra.mxu0 %v3271_v4  ;;  %v2942_v34 = vadd.f32 %v6079_v10, %v2901_v48  ;;  %v2986_v41 = vadd.f32 %v6087_v26, %v2945_v16  ;;  %v2951_v32 = vadd.f32 %v6102_v55, %v2910_v29  ;;  %v6178_v29 = vld [vmem:[#allocation13] sm:$0x3] }
 0x457   :  { %v6142_v37 = vpop.f32.mrf.mxu3  ;;  %v2989_v60 = vadd.f32 %v6095_v62, %v2948_v57  ;;  %v2916_v10 = vadd.f32 %v2915_v52, %v2716_v51  ;;  %v2954_v26 = vadd.f32 %v6132_v43, %v2913_v12  ;;  %v3266_v62 = vld [vmem:[#allocation16 + $0x8] sm:$0xff] }
 0x458   :  { %v3112_v31 = vadd.f32 %v3111_v25, %v3103_v56  ;;  %3311 = vmatpush.msra.mxu0 %v3270_v15  ;;  %v3268_v56 = vld [vmem:[#allocation16 + $0x18] sm:$0xff]  ;;  %v2983_v25 = vadd.f32 %v6081_v23, %v2942_v34  ;;  %v2919_v23 = vadd.f32 %v2918_v59, %v2716_v51 }
 0x459   :  { %v6168_v61 = vadd.f32 %v6122_v49, %v2989_v60  ;;  %v2957_v22 = vadd.f32 %v2956_v20, %v2916_v10 }
 0x45a   :  { %v3113_v14 = vadd.f32 %v3112_v31, %v3105_v28  ;;  %3312 = vmatpush.msra.mxu0 %v3269_v47  ;;  %v6160_v28 = vadd.f32 %v6099_v19, %v2986_v41  ;;  %v2992_v31 = vadd.f32 %v6110_v58, %v2951_v32  ;;  %v6165_v55 = vadd.f32 %v6093_v50, %v2983_v25  ;;  %v2921_v58 = vpop.f32.mrf.mxu0  ;;  %v3265_v50 = vld [vmem:[#allocation16] sm:$0xff] }
 0x45b   :  { %v2995_v19 = vadd.f32 %v6138_v0, %v2954_v26  ;;  %v2960_v3 = vadd.f32 %v2959_v44, %v2919_v23  ;;  %v2922_v46 = vadd.f32 %v2921_v58, %v2716_v51  ;;  %v6183_v47 = vperm.slane %v6178_v29, 0 }
 0x45c   :  { %v3114_v6 = vrot.slane %v3113_v14, 4  ;;  %3313 = vmatpush.msra.mxu0 %v3268_v56  ;;  %v6174_v43 = vadd.f32 %v6142_v37, %v2992_v31 }
 0x45d   :  { %v3001_v0 = vadd.f32 %v3000_v30, %v2960_v3 }
 0x45e   :  { %v3115_v21 = vadd.f32 %v3114_v6, %v3113_v14  ;;  %3314 = vmatpush.msra.mxu0 %v3267_v42  ;;  %v3060_v14 = vadd.f32 %v6160_v28, %v6165_v55  ;;  %v2998_v6 = vadd.f32 %v2997_v63, %v2957_v22 }
 0x45f   :  { %v3035_v18 = vpop.f32.mrf.mxu3 }
 0x460   :  { %v3116_v54 = vrot.slane %v3115_v21, 2  ;;  %3315 = vmatpush.msra.mxu0 %v3266_v62  ;;  %v3061_v49 = vadd.f32 %v3060_v14, %v6168_v61  ;;  %v3036_v13 = vadd.f32 %v3035_v18, %v2995_v19 }
 0x462   :  { %v3117_v35 = vadd.f32 %v3116_v54, %v3115_v21  ;;  %3316 = vmatpush.msra.mxu0 %v3265_v50  ;;  %v2962_v21 = vpop.f32.mrf.mxu1  ;;  %v3062_v54 = vadd.f32 %v3061_v49, %v6174_v43 }
 0x463   :  { %v2963_v4 = vadd.f32 %v2962_v21, %v2922_v46  ;;  %v3296_v46 = vld [vmem:[#allocation16 + $0xf8] sm:$0xff] }
 0x464   :  { %v3118_v1 = vrot.slane %v3117_v35, 1  ;;  %v3063_v40 = vadd.f32 %v3062_v54, %v3036_v13  ;;  %3784 = vmatpush.msra.mxu1 %v3296_v46  ;;  %3342 = vmatpush.msrb.mxu0 %v3296_v46 }
 0x466   :  { %v3119_v17 = vadd.f32 %v3118_v1, %v3117_v35  ;;  %v3003_v35 = vpop.f32.mrf.mxu2 }
 0x467   :  { %v3038_v33 = vpop.f32.mrf.mxu3  ;;  %v3004_v15 = vadd.f32 %v3003_v35, %v2963_v4 }
 0x468   :  { %v3133_v27 = vmul.f32 %v3119_v17, %v6611_v5  ;;  %v3039_v36 = vadd.f32 %v3038_v33, %v2998_v6  ;;  %v6180_v33 = vld [vmem:[#allocation15] sm:$0x3] }
 0x469   :  { %v6190_v12 = vperm.slane %v6180_v33, 0 }
 0x46a   :  { %v3135_v38 = vadd.f32 1e-05, %v3133_v27  ;;  %v3064_v48 = vadd.f32 %v3063_v40, %v3039_v36 }
 0x46c   :  { %3853 = vrsqrt.f32 %v3135_v38  ;;  %vm3143_vm14 = vweird.f32 %v3135_v38 }
 0x46f   :  { %v3041_v52 = vpop.f32.mrf.mxu3 }
 0x470   :  { %v3042_v1 = vadd.f32 %v3041_v52, %v3001_v0 }
 0x472   :  { %v3854_v20 = vpop.eup %3853  ;;  %v3065_v16 = vadd.f32 %v3064_v48, %v3042_v1 }
 0x473   :  { %v3138_v37 = vmul.f32 %v3854_v20, %v3135_v38  ;;  %vm3144_vm13 = vweird.f32 %v3854_v20 }
 0x474   :  { %vm3145_vm15 = vmor %vm3143_vm14, %vm3144_vm13 }
 0x475   :  { %v3139_v59 = vmul.f32 %v3854_v20, %v3138_v37  ;;  %v3295_v37 = vld [vmem:[#allocation16 + $0xf0] sm:$0xff] }
 0x476   :  { %3785 = vmatpush.msra.mxu1 %v3295_v37  ;;  %3343 = vmatpush.msrb.mxu0 %v3295_v37 }
 0x477   :  { %v3140_v63 = vmul.f32 0.5, %v3139_v59  ;;  %v3044_v2 = vpop.f32.mrf.mxu3  ;;  %v3294_v59 = vld [vmem:[#allocation16 + $0xe8] sm:$0xff] }
 0x478   :  { %v3045_v18 = vadd.f32 %v3044_v2, %v3004_v15  ;;  %3786 = vmatpush.msra.mxu1 %v3294_v59  ;;  %3344 = vmatpush.msrb.mxu0 %v3294_v59 }
 0x479   :  { %v3141_v17 = vsub.f32 1.5, %v3140_v63 }
 0x47a   :  { %v3066_v51 = vadd.f32 %v3065_v16, %v3045_v18  ;;  %v3293_v16 = vld [vmem:[#allocation16 + $0xe0] sm:$0xff] }
 0x47b   :  { %v3142_v44 = vmul.f32 %v3854_v20, %v3141_v17  ;;  %3787 = vmatpush.msra.mxu1 %v3293_v16  ;;  %3345 = vmatpush.msrb.mxu0 %v3293_v16 }
 0x47c   :  { %v3067_v34 = vrot.slane %v3066_v51, 4 }
 0x47d   :  { %v6185_v57 = vsel %vm3145_vm15, %v3854_v20, %v3142_v44 }
 0x47e   :  { %v3068_v41 = vadd.f32 %v3067_v34, %v3066_v51  ;;  %v3157_v27 = vmul.f32 %v6185_v57, %v6104_v7  ;;  %v3159_v32 = vmul.f32 %v6185_v57, %v6106_v11  ;;  %v3161_v7 = vmul.f32 %v6185_v57, %v6108_v53  ;;  %v3292_v51 = vld [vmem:[#allocation16 + $0xd8] sm:$0xff] }
 0x47f   :  { %v3165_v15 = vmul.f32 %v6185_v57, %v6118_v9  ;;  %3788 = vmatpush.msra.mxu1 %v3292_v51  ;;  %3346 = vmatpush.msrb.mxu0 %v3292_v51  ;;  %v3171_v46 = vmul.f32 %v6185_v57, %v6134_v24 }
 0x480   :  { %v3069_v30 = vrot.slane %v3068_v41, 2  ;;  %v3179_v56 = vmul.f32 %v6183_v47, %v3157_v27  ;;  %v3181_v38 = vmul.f32 %v6183_v47, %v3159_v32  ;;  %v3183_v62 = vmul.f32 %v6183_v47, %v3161_v7  ;;  %v3290_v32 = vld [vmem:[#allocation16 + $0xc8] sm:$0xff]  ;;  %v3287_v7 = vld [vmem:[#allocation16 + $0xb0] sm:$0xff] }
 0x481   :  { %v3187_v9 = vmul.f32 %v6183_v47, %v3165_v15 }
 0x482   :  { %v3070_v25 = vadd.f32 %v3069_v30, %v3068_v41  ;;  %v3201_v60 = vadd.f32 %v6190_v12, %v3179_v56  ;;  %v3203_v23 = vadd.f32 %v6190_v12, %v3181_v38  ;;  %v3291_v41 = vld [vmem:[#allocation16 + $0xd0] sm:$0xff]  ;;  %v3167_v30 = vmul.f32 %v6185_v57, %v6124_v8  ;;  %v3289_v38 = vld [vmem:[#allocation16 + $0xc0] sm:$0xff]  ;;  %v3286_v8 = vld [vmem:[#allocation16 + $0xa8] sm:$0xff] }
 0x483   :  { %3789 = vmatpush.msra.mxu1 %v3291_v41  ;;  %3347 = vmatpush.msrb.mxu0 %v3291_v41 }
 0x484   :  { %v3071_v10 = vrot.slane %v3070_v25, 1  ;;  %vm3217_vm0 = vcmp.ge.f32.partialorder %v3201_v60, 0.0  ;;  %v3233_v26 = vmul.f32 0.01, %v3201_v60  ;;  %v3235_v58 = vmul.f32 0.01, %v3203_v23 }
 0x485   :  { %vm3219_vm1 = vcmp.ge.f32.partialorder %v3203_v23, 0.0  ;;  %3790 = vmatpush.msra.mxu1 %v3290_v32  ;;  %3348 = vmatpush.msrb.mxu0 %v3290_v32 }
 0x486   :  { %v3072_v42 = vadd.f32 %v3071_v10, %v3070_v25  ;;  %v3249_v31 = vsel %vm3217_vm0, %v3201_v60, %v3233_v26  ;;  %v3251_v49 = vsel %vm3219_vm1, %v3203_v23, %v3235_v58  ;;  %v3209_v60 = vadd.f32 %v6190_v12, %v3187_v9  ;;  %v3288_v26 = vld [vmem:[#allocation16 + $0xb8] sm:$0xff] }
 0x487   :  { %3317 = vmatmul.f32.vlgmr.msra.gmra.mxu0 %v3249_v31  ;;  %3791 = vmatpush.msra.mxu1 %v3289_v38  ;;  %v3189_v23 = vmul.f32 %v6183_v47, %v3167_v30  ;;  %v3169_v58 = vmul.f32 %v6185_v57, %v6128_v39  ;;  %v3282_v39 = vld [vmem:[#allocation16 + $0x88] sm:$0xff] }
 0x488   :  { %v3074_v11 = vmul.f32 %v3072_v42, %v6611_v5  ;;  %3349 = vmatpush.msrb.mxu0 %v3289_v38  ;;  %v3241_v31 = vmul.f32 0.01, %v3209_v60  ;;  %vm3225_vm4 = vcmp.ge.f32.partialorder %v3209_v60, 0.0 }
 0x489   :  { %3792 = vmatpush.msra.mxu1 %v3288_v26 }
 0x48a   :  { %v6203_v22 = vsub.f32 %v6165_v55, %v3074_v11  ;;  %v6206_v19 = vsub.f32 %v6160_v28, %v3074_v11  ;;  %v6209_v14 = vsub.f32 %v6168_v61, %v3074_v11  ;;  %v6212_v53 = vsub.f32 %v6174_v43, %v3074_v11  ;;  %3350 = vmatpush.msrb.mxu0 %v3288_v26 }
 0x48b   :  { %v3205_v55 = vadd.f32 %v6190_v12, %v3183_v62  ;;  %v3163_v28 = vmul.f32 %v6185_v57, %v6112_v45  ;;  %v6221_v3 = vsub.f32 %v3036_v13, %v3074_v11  ;;  %v6225_v43 = vsub.f32 %v3039_v36, %v3074_v11  ;;  %3793 = vmatpush.msra.mxu1 %v3287_v7  ;;  %v3285_v62 = vld [vmem:[#allocation16 + $0xa0] sm:$0xff] }
 0x48c   :  { %v3092_v52 = vmul.f32 %v6203_v22, %v6203_v22  ;;  %v3094_v50 = vmul.f32 %v6206_v19, %v6206_v19  ;;  %v3096_v61 = vmul.f32 %v6209_v14, %v6209_v14  ;;  %v3098_v21 = vmul.f32 %v6212_v53, %v6212_v53  ;;  %3351 = vmatpush.msrb.mxu0 %v3287_v7 }
 0x48d   :  { %v3185_v0 = vmul.f32 %v6183_v47, %v3163_v28  ;;  %v6230_v54 = vsub.f32 %v3042_v1, %v3074_v11  ;;  %v3100_v45 = vmul.f32 %v6221_v3, %v6221_v3  ;;  %v3237_v35 = vmul.f32 0.01, %v3205_v55  ;;  %3794 = vmatpush.msra.mxu1 %v3286_v8  ;;  %v3284_v28 = vld [vmem:[#allocation16 + $0x98] sm:$0xff] }
 0x48e   :  { %v3120_v6 = vadd.f32 %v3094_v50, %v3092_v52  ;;  %vm3221_vm2 = vcmp.ge.f32.partialorder %v3205_v55, 0.0  ;;  %v6234_v36 = vsub.f32 %v3045_v18, %v3074_v11  ;;  %v3102_v4 = vmul.f32 %v6225_v43, %v6225_v43  ;;  %3352 = vmatpush.msrb.mxu0 %v3286_v8 }
 0x48f   :  { %3320 = vmatmul.f32.gmra.mxu0 %v3251_v49  ;;  %v3207_v1 = vadd.f32 %v6190_v12, %v3185_v0  ;;  %v3104_v48 = vmul.f32 %v6230_v54, %v6230_v54  ;;  %v3253_v2 = vsel %vm3221_vm2, %v3205_v55, %v3237_v35  ;;  %v3257_v50 = vsel %vm3225_vm4, %v3209_v60, %v3241_v31  ;;  %v3281_v0 = vld [vmem:[#allocation16 + $0x80] sm:$0xff] }
 0x490   :  { %v3121_v20 = vadd.f32 %v3120_v6, %v3096_v61  ;;  %v3106_v18 = vmul.f32 %v6234_v36, %v6234_v36  ;;  %v3211_v55 = vadd.f32 %v6190_v12, %v3189_v23  ;;  %3795 = vmatpush.msra.mxu1 %v3285_v62  ;;  %3353 = vmatpush.msrb.mxu0 %v3285_v62  ;;  %v3283_v6 = vld [vmem:[#allocation16 + $0x90] sm:$0xff] }
 0x491   :  { %v3239_v34 = vmul.f32 0.01, %v3207_v1  ;;  %vm3223_vm3 = vcmp.ge.f32.partialorder %v3207_v1, 0.0  ;;  %v3193_v35 = vmul.f32 %v6183_v47, %v3171_v46 }
 0x492   :  { %v3122_v13 = vadd.f32 %v3121_v20, %v3098_v21  ;;  %v3243_v21 = vmul.f32 0.01, %v3211_v55  ;;  %v3191_v20 = vmul.f32 %v6183_v47, %v3169_v58  ;;  %3796 = vmatpush.msra.mxu1 %v3284_v28  ;;  %3354 = vmatpush.msrb.mxu0 %v3284_v28  ;;  %vm3227_vm5 = vcmp.ge.f32.partialorder %v3211_v55, 0.0 }
 0x493   :  { %v3255_v25 = vsel %vm3223_vm3, %v3207_v1, %v3239_v34  ;;  %v3215_v1 = vadd.f32 %v6190_v12, %v3193_v35 }
 0x494   :  { %v3123_v40 = vadd.f32 %v3122_v13, %v3100_v45  ;;  %3797 = vmatpush.msra.mxu1 %v3283_v6  ;;  %3355 = vmatpush.msrb.mxu0 %v3283_v6  ;;  %v3259_v45 = vsel %vm3227_vm5, %v3211_v55, %v3243_v21  ;;  %v3213_v13 = vadd.f32 %v6190_v12, %v3191_v20 }
 0x495   :  { %vm3231_vm8 = vcmp.ge.f32.partialorder %v3215_v1, 0.0 }
 0x496   :  { %v3124_v63 = vadd.f32 %v3123_v40, %v3102_v4  ;;  %3798 = vmatpush.msra.mxu1 %v3282_v39  ;;  %3356 = vmatpush.msrb.mxu0 %v3282_v39  ;;  %v3245_v4 = vmul.f32 0.01, %v3213_v13  ;;  %vm3229_vm6 = vcmp.ge.f32.partialorder %v3213_v13, 0.0 }
 0x497   :  { %3323 = vmatmul.f32.gmra.mxu0 %v3253_v2  ;;  %v3176_v2 = vperm.slane %v6178_v29, 1 }
 0x498   :  { %v3125_v17 = vadd.f32 %v3124_v63, %v3104_v48  ;;  %3799 = vmatpush.msra.mxu1 %v3281_v0  ;;  %3357 = vmatpush.msrb.mxu0 %v3281_v0  ;;  %v3261_v15 = vsel %vm3229_vm6, %v3213_v13, %v3245_v4  ;;  %v3247_v48 = vmul.f32 0.01, %v3215_v1 }
 0x49a   :  { %v3126_v44 = vadd.f32 %v3125_v17, %v3106_v18  ;;  %v3263_v16 = vsel %vm3231_vm8, %v3215_v1, %v3247_v48  ;;  %v3198_v18 = vperm.slane %v6180_v33, 1 }
 0x49c   :  { %v3127_v27 = vrot.slane %v3126_v44, 4 }
 0x49e   :  { %v3128_v56 = vadd.f32 %v3127_v27, %v3126_v44 }
 0x49f   :  { %3326 = vmatmul.f32.gmra.mxu0 %v3255_v25 }
 0x4a0   :  { %v3129_v10 = vrot.slane %v3128_v56, 2 }
 0x4a2   :  { %v3130_v42 = vadd.f32 %v3129_v10, %v3128_v56 }
 0x4a4   :  { %v3131_v11 = vrot.slane %v3130_v42, 1 }
 0x4a6   :  { %v3132_v52 = vadd.f32 %v3131_v11, %v3130_v42 }
 0x4a7   :  { %3329 = vmatmul.f32.gmra.mxu0 %v3257_v50 }
 0x4a8   :  { %v3134_v61 = vmul.f32 %v3132_v52, %v6611_v5 }
 0x4aa   :  { %v3136_v49 = vadd.f32 1e-05, %v3134_v61 }
 0x4ac   :  { %3855 = vrsqrt.f32 %v3136_v49  ;;  %vm3153_vm9 = vweird.f32 %v3136_v49 }
 0x4af   :  { %3332 = vmatmul.f32.gmra.mxu0 %v3259_v45 }
 0x4b2   :  { %v3856_v37 = vpop.eup %3855 }
 0x4b3   :  { %v3148_v40 = vmul.f32 %v3856_v37, %v3136_v49  ;;  %vm3154_vm7 = vweird.f32 %v3856_v37 }
 0x4b4   :  { %vm3155_vm10 = vmor %vm3153_vm9, %vm3154_vm7 }
 0x4b5   :  { %v3149_v59 = vmul.f32 %v3856_v37, %v3148_v40 }
 0x4b7   :  { %v3150_v24 = vmul.f32 0.5, %v3149_v59  ;;  %3335 = vmatmul.f32.gmra.mxu0 %v3261_v15  ;;  %v3839_v59 = vld [vmem:[#allocation18] ss:$0 sm:$0xff] }
 0x4b9   :  { %v3151_v57 = vsub.f32 1.5, %v3150_v24 }
 0x4bb   :  { %v3152_v63 = vmul.f32 %v3856_v37, %v3151_v57 }
 0x4bd   :  { %v3156_v47 = vsel %vm3155_vm10, %v3856_v37, %v3152_v63 }
 0x4be   :  { %v3172_v17 = vmul.f32 %v3156_v47, %v6234_v36  ;;  %v3158_v12 = vmul.f32 %v3156_v47, %v6203_v22  ;;  %v3162_v51 = vmul.f32 %v3156_v47, %v6209_v14  ;;  %v3160_v44 = vmul.f32 %v3156_v47, %v6206_v19 }
 0x4bf   :  { %3338 = vmatmul.f32.gmra.mxu0 %v3263_v16  ;;  %v3164_v34 = vmul.f32 %v3156_v47, %v6212_v53  ;;  %v3166_v9 = vmul.f32 %v3156_v47, %v6221_v3  ;;  %v3168_v41 = vmul.f32 %v3156_v47, %v6225_v43  ;;  %v3170_v29 = vmul.f32 %v3156_v47, %v6230_v54 }
 0x4c0   :  { %v3194_v27 = vmul.f32 %v3176_v2, %v3172_v17  ;;  %v3180_v32 = vmul.f32 %v3176_v2, %v3158_v12  ;;  %v3184_v33 = vmul.f32 %v3176_v2, %v3162_v51  ;;  %v3182_v30 = vmul.f32 %v3176_v2, %v3160_v44 }
 0x4c1   :  { %v3186_v36 = vmul.f32 %v3176_v2, %v3164_v34  ;;  %v3188_v56 = vmul.f32 %v3176_v2, %v3166_v9  ;;  %v3190_v22 = vmul.f32 %v3176_v2, %v3168_v41  ;;  %v3192_v25 = vmul.f32 %v3176_v2, %v3170_v29 }
 0x4c2   :  { %v3202_v14 = vadd.f32 %v3198_v18, %v3180_v32  ;;  %v3206_v60 = vadd.f32 %v3198_v18, %v3184_v33  ;;  %v3204_v19 = vadd.f32 %v3198_v18, %v3182_v30  ;;  %v3216_v38 = vadd.f32 %v3198_v18, %v3194_v27 }
 0x4c3   :  { %v3208_v10 = vadd.f32 %v3198_v18, %v3186_v36  ;;  %v3210_v53 = vadd.f32 %v3198_v18, %v3188_v56  ;;  %v3212_v26 = vadd.f32 %v3198_v18, %v3190_v22  ;;  %v3214_v3 = vadd.f32 %v3198_v18, %v3192_v25 }
 0x4c4   :  { %vm3218_vm11 = vcmp.ge.f32.partialorder %v3202_v14, 0.0  ;;  %v3234_v43 = vmul.f32 0.01, %v3202_v14  ;;  %vm3222_vm12 = vcmp.ge.f32.partialorder %v3206_v60, 0.0  ;;  %v3238_v54 = vmul.f32 0.01, %v3206_v60 }
 0x4c5   :  { %v3236_v31 = vmul.f32 0.01, %v3204_v19  ;;  %v3240_v23 = vmul.f32 0.01, %v3208_v10  ;;  %vm3220_vm13 = vcmp.ge.f32.partialorder %v3204_v19, 0.0  ;;  %vm3224_vm14 = vcmp.ge.f32.partialorder %v3208_v10, 0.0 }
 0x4c6   :  { %v3250_v7 = vsel %vm3218_vm11, %v3202_v14, %v3234_v43  ;;  %v3254_v42 = vsel %vm3222_vm12, %v3206_v60, %v3238_v54  ;;  %v3242_v62 = vmul.f32 0.01, %v3210_v53  ;;  %vm3226_vm15 = vcmp.ge.f32.partialorder %v3210_v53, 0.0 }
 0x4c7   :  { %3358 = vmatmul.f32.vlgmr.msrb.gmra.mxu0 %v3250_v7  ;;  %3364 = vmatmul.f32.vlgmr.msra.gmra.mxu1 %v3254_v42  ;;  %v3252_v8 = vsel %vm3220_vm13, %v3204_v19, %v3236_v31  ;;  %v3256_v11 = vsel %vm3224_vm14, %v3208_v10, %v3240_v23  ;;  %v3244_v52 = vmul.f32 0.01, %v3212_v26  ;;  %vm3228_vm0 = vcmp.ge.f32.partialorder %v3212_v26, 0.0 }
 0x4c8   :  { %v3258_v58 = vsel %vm3226_vm15, %v3210_v53, %v3242_v62  ;;  %v3246_v55 = vmul.f32 0.01, %v3214_v3  ;;  %vm3230_vm1 = vcmp.ge.f32.partialorder %v3214_v3, 0.0  ;;  %v3248_v61 = vmul.f32 0.01, %v3216_v38 }
 0x4c9   :  { %v3260_v50 = vsel %vm3228_vm0, %v3212_v26, %v3244_v52  ;;  %vm3232_vm2 = vcmp.ge.f32.partialorder %v3216_v38, 0.0  ;;  %vm3555_vm14 = vcmask 80896  }
 0x4ca   :  { %v3262_v28 = vsel %vm3230_vm1, %v3214_v3, %v3246_v55  ;;  %v3264_v6 = vsel %vm3232_vm2, %v3216_v38, %v3248_v61 }
 0x4cf   :  { %3361 = vmatmul.f32.gmra.mxu0 %v3252_v8  ;;  %3367 = vmatmul.f32.gmra.mxu1 %v3256_v11 }
 0x4d7   :  { %3370 = vmatmul.f32.gmra.mxu1 %v3258_v58 }
 0x4df   :  { %3373 = vmatmul.f32.gmra.mxu1 %v3260_v50 }
 0x4e7   :  { %3376 = vmatmul.f32.gmra.mxu1 %v3262_v28 }
 0x4ef   :  { %3379 = vmatmul.f32.gmra.mxu1 %v3264_v6  ;;  %v3509_v6 = vld [vmem:[%s6460_s13 + $0x78] sm:$0xff] }
 0x4f0   :  { %3514 = vmatpush.msra.mxu2 %v3509_v6  ;;  %3800 = vmatpush.msrb.mxu3 %v3509_v6 }
 0x504   :  { %v3318_v49 = vpop.f32.mrf.mxu0 }
 0x505   :  { %v3319_v24 = vadd.f32 %v3839_v59, %v3318_v49 }
 0x50c   :  { %v3321_v21 = vpop.f32.mrf.mxu0 }
 0x50d   :  { %v3322_v15 = vadd.f32 %v3839_v59, %v3321_v21 }
 0x514   :  { %v3324_v20 = vpop.f32.mrf.mxu0 }
 0x515   :  { %v3325_v2 = vadd.f32 %v3839_v59, %v3324_v20 }
 0x51c   :  { %v3327_v39 = vpop.f32.mrf.mxu0 }
 0x51d   :  { %v3328_v18 = vadd.f32 %v3839_v59, %v3327_v39  ;;  %v3508_v39 = vld [vmem:[%s6460_s13 + $0x70] sm:$0xff] }
 0x51e   :  { %3515 = vmatpush.msra.mxu2 %v3508_v39  ;;  %3801 = vmatpush.msrb.mxu3 %v3508_v39 }
 0x524   :  { %v3330_v46 = vpop.f32.mrf.mxu0 }
 0x525   :  { %v3331_v17 = vadd.f32 %v3839_v59, %v3330_v46 }
 0x52c   :  { %v3333_v0 = vpop.f32.mrf.mxu0 }
 0x52d   :  { %v3334_v44 = vadd.f32 %v3839_v59, %v3333_v0 }
 0x534   :  { %v3336_v45 = vpop.f32.mrf.mxu0 }
 0x535   :  { %v3337_v41 = vadd.f32 %v3839_v59, %v3336_v45  ;;  %v3507_v45 = vld [vmem:[%s6460_s13 + $0x68] sm:$0xff] }
 0x536   :  { %3516 = vmatpush.msra.mxu2 %v3507_v45  ;;  %3802 = vmatpush.msrb.mxu3 %v3507_v45 }
 0x53c   :  { %v3339_v13 = vpop.f32.mrf.mxu0 }
 0x53d   :  { %v3340_v30 = vadd.f32 %v3839_v59, %v3339_v13 }
 0x544   :  { %v3365_v35 = vpop.f32.mrf.mxu1  ;;  %v3359_v4 = vpop.f32.mrf.mxu0 }
 0x545   :  { %v3360_v63 = vadd.f32 %v3359_v4, %v3319_v24  ;;  %v3366_v16 = vadd.f32 %v3365_v35, %v3325_v2  ;;  %v3503_v24 = vld [vmem:[%s6460_s13 + $0x48] sm:$0xff] }
 0x54c   :  { %v3368_v37 = vpop.f32.mrf.mxu1  ;;  %v3362_v1 = vpop.f32.mrf.mxu0 }
 0x54d   :  { %v3363_v57 = vadd.f32 %v3362_v1, %v3322_v15  ;;  %v3369_v34 = vadd.f32 %v3368_v37, %v3328_v18  ;;  %v3506_v37 = vld [vmem:[%s6460_s13 + $0x60] sm:$0xff]  ;;  %v3504_v1 = vld [vmem:[%s6460_s13 + $0x50] sm:$0xff]  ;;  %v3499_v18 = vld [vmem:[%s6460_s13 + $0x28] sm:$0xff] }
 0x54e   :  { %3517 = vmatpush.msra.mxu2 %v3506_v37  ;;  %3803 = vmatpush.msrb.mxu3 %v3506_v37 }
 0x54f   :  { %v3383_v47 = vadd.f32 %v3363_v57, %v3360_v63 }
 0x551   :  { %v3384_v12 = vadd.f32 %v3383_v47, %v3366_v16  ;;  %v3500_v47 = vld [vmem:[%s6460_s13 + $0x30] sm:$0xff] }
 0x553   :  { %v3385_v29 = vadd.f32 %v3384_v12, %v3369_v34  ;;  %v3498_v12 = vld [vmem:[%s6460_s13 + $0x20] sm:$0xff] }
 0x554   :  { %v3371_v40 = vpop.f32.mrf.mxu1 }
 0x555   :  { %v3372_v9 = vadd.f32 %v3371_v40, %v3331_v17  ;;  %v3505_v40 = vld [vmem:[%s6460_s13 + $0x58] sm:$0xff] }
 0x556   :  { %3518 = vmatpush.msra.mxu2 %v3505_v40  ;;  %3804 = vmatpush.msrb.mxu3 %v3505_v40 }
 0x557   :  { %v3386_v32 = vadd.f32 %v3385_v29, %v3372_v9 }
 0x558   :  { %3519 = vmatpush.msra.mxu2 %v3504_v1  ;;  %3805 = vmatpush.msrb.mxu3 %v3504_v1 }
 0x55a   :  { %3520 = vmatpush.msra.mxu2 %v3503_v24  ;;  %3806 = vmatpush.msrb.mxu3 %v3503_v24 }
 0x55c   :  { %v3374_v48 = vpop.f32.mrf.mxu1 }
 0x55d   :  { %v3375_v27 = vadd.f32 %v3374_v48, %v3334_v44  ;;  %v3502_v48 = vld [vmem:[%s6460_s13 + $0x40] sm:$0xff]  ;;  %v3497_v44 = vld [vmem:[%s6460_s13 + $0x18] sm:$0xff] }
 0x55e   :  { %3521 = vmatpush.msra.mxu2 %v3502_v48  ;;  %3807 = vmatpush.msrb.mxu3 %v3502_v48 }
 0x55f   :  { %v3387_v36 = vadd.f32 %v3386_v32, %v3375_v27 }
 0x564   :  { %v3377_v51 = vpop.f32.mrf.mxu1 }
 0x565   :  { %v3378_v33 = vadd.f32 %v3377_v51, %v3337_v41  ;;  %v3494_v41 = vld [vmem:[%s6460_s13] sm:$0xff] }
 0x567   :  { %v3388_v22 = vadd.f32 %v3387_v36, %v3378_v33 }
 0x56c   :  { %v3380_v56 = vpop.f32.mrf.mxu1 }
 0x56d   :  { %v3381_v25 = vadd.f32 %v3380_v56, %v3340_v30  ;;  %v3840_v56 = vld [vmem:[#allocation19] ss:$0 sm:$0xff] }
 0x56f   :  { %v3389_v14 = vadd.f32 %v3388_v22, %v3381_v25 }
 0x571   :  { %v3390_v60 = vrot.slane %v3389_v14, 4 }
 0x573   :  { %v3391_v19 = vadd.f32 %v3390_v60, %v3389_v14  ;;  %v3841_v60 = vld [vmem:[#allocation21] ss:$0 sm:$0xff] }
 0x575   :  { %v3392_v38 = vrot.slane %v3391_v19, 2 }
 0x577   :  { %v3393_v10 = vadd.f32 %v3392_v38, %v3391_v19 }
 0x579   :  { %v3394_v53 = vrot.slane %v3393_v10, 1 }
 0x57b   :  { %v3395_v26 = vadd.f32 %v3394_v53, %v3393_v10 }
 0x57d   :  { %v3396_v3 = vmul.f32 %v3395_v26, %v6611_v5 }
 0x57f   :  { %v6271_v43 = vsub.f32 %v3360_v63, %v3396_v3  ;;  %v6273_v54 = vsub.f32 %v3363_v57, %v3396_v3  ;;  %v6275_v7 = vsub.f32 %v3366_v16, %v3396_v3  ;;  %v6277_v42 = vsub.f32 %v3369_v34, %v3396_v3  ;;  %v3501_v63 = vld [vmem:[%s6460_s13 + $0x38] sm:$0xff] }
 0x580   :  { %v6283_v8 = vsub.f32 %v3372_v9, %v3396_v3  ;;  %v6287_v58 = vsub.f32 %v3375_v27, %v3396_v3  ;;  %v6291_v55 = vsub.f32 %v3378_v33, %v3396_v3  ;;  %v6298_v49 = vsub.f32 %v3381_v25, %v3396_v3  ;;  %3522 = vmatpush.msra.mxu2 %v3501_v63  ;;  %v3496_v9 = vld [vmem:[%s6460_s13 + $0x10] sm:$0xff] }
 0x581   :  { %v3405_v31 = vmul.f32 %v6271_v43, %v6271_v43  ;;  %v3406_v23 = vmul.f32 %v6273_v54, %v6273_v54  ;;  %v3407_v11 = vmul.f32 %v6275_v7, %v6275_v7  ;;  %v3408_v52 = vmul.f32 %v6277_v42, %v6277_v42  ;;  %3808 = vmatpush.msrb.mxu3 %v3501_v63 }
 0x582   :  { %v3409_v28 = vmul.f32 %v6283_v8, %v6283_v8  ;;  %v3410_v21 = vmul.f32 %v6287_v58, %v6287_v58  ;;  %v3411_v46 = vmul.f32 %v6291_v55, %v6291_v55  ;;  %v3412_v13 = vmul.f32 %v6298_v49, %v6298_v49  ;;  %3523 = vmatpush.msra.mxu2 %v3500_v47 }
 0x583   :  { %v3413_v62 = vadd.f32 %v3406_v23, %v3405_v31  ;;  %3809 = vmatpush.msrb.mxu3 %v3500_v47 }
 0x584   :  { %3524 = vmatpush.msra.mxu2 %v3499_v18 }
 0x585   :  { %v3414_v50 = vadd.f32 %v3413_v62, %v3407_v11  ;;  %3810 = vmatpush.msrb.mxu3 %v3499_v18 }
 0x586   :  { %3525 = vmatpush.msra.mxu2 %v3498_v12 }
 0x587   :  { %v3415_v61 = vadd.f32 %v3414_v50, %v3408_v52  ;;  %3811 = vmatpush.msrb.mxu3 %v3498_v12 }
 0x588   :  { %3526 = vmatpush.msra.mxu2 %v3497_v44 }
 0x589   :  { %v3416_v20 = vadd.f32 %v3415_v61, %v3409_v28  ;;  %3812 = vmatpush.msrb.mxu3 %v3497_v44 }
 0x58a   :  { %3527 = vmatpush.msra.mxu2 %v3496_v9 }
 0x58b   :  { %v3417_v0 = vadd.f32 %v3416_v20, %v3410_v21  ;;  %3813 = vmatpush.msrb.mxu3 %v3496_v9 }
 0x58d   :  { %v3418_v35 = vadd.f32 %v3417_v0, %v3411_v46 }
 0x58f   :  { %v3419_v4 = vadd.f32 %v3418_v35, %v3412_v13 }
 0x591   :  { %v3420_v59 = vrot.slane %v3419_v4, 4 }
 0x593   :  { %v3421_v15 = vadd.f32 %v3420_v59, %v3419_v4 }
 0x595   :  { %v3422_v57 = vrot.slane %v3421_v15, 2 }
 0x597   :  { %v3423_v2 = vadd.f32 %v3422_v57, %v3421_v15  ;;  %v3842_v57 = vld [vmem:[#allocation22] ss:$0 sm:$0xff] }
 0x599   :  { %v3424_v16 = vrot.slane %v3423_v2, 1 }
 0x59b   :  { %v3425_v17 = vadd.f32 %v3424_v16, %v3423_v2 }
 0x59d   :  { %v3426_v51 = vmul.f32 %v3425_v17, %v6611_v5  ;;  %v3495_v5 = vld [vmem:[%s6460_s13 + $0x8] sm:$0xff] }
 0x59e   :  { %3528 = vmatpush.msra.mxu2 %v3495_v5  ;;  %3814 = vmatpush.msrb.mxu3 %v3495_v5 }
 0x59f   :  { %v3427_v34 = vadd.f32 1e-05, %v3426_v51 }
 0x5a0   :  { %3529 = vmatpush.msra.mxu2 %v3494_v41  ;;  %3815 = vmatpush.msrb.mxu3 %v3494_v41 }
 0x5a1   :  { %3857 = vrsqrt.f32 %v3427_v34  ;;  %vm3434_vm4 = vweird.f32 %v3427_v34 }
 0x5a7   :  { %v3858_v29 = vpop.eup %3857 }
 0x5a8   :  { %v3429_v27 = vmul.f32 %v3858_v29, %v3427_v34  ;;  %vm3435_vm3 = vweird.f32 %v3858_v29 }
 0x5a9   :  { %vm3436_vm5 = vmor %vm3434_vm4, %vm3435_vm3 }
 0x5aa   :  { %v3430_v32 = vmul.f32 %v3858_v29, %v3429_v27 }
 0x5ac   :  { %v3431_v33 = vmul.f32 0.5, %v3430_v32 }
 0x5ae   :  { %v3432_v30 = vsub.f32 1.5, %v3431_v33 }
 0x5b0   :  { %v3433_v36 = vmul.f32 %v3858_v29, %v3432_v30 }
 0x5b2   :  { %v3437_v22 = vsel %vm3436_vm5, %v3858_v29, %v3433_v36 }
 0x5b3   :  { %v3445_v25 = vmul.f32 %v3437_v22, %v6298_v49  ;;  %v3438_v14 = vmul.f32 %v3437_v22, %v6271_v43  ;;  %v3444_v19 = vmul.f32 %v3437_v22, %v6291_v55  ;;  %v3439_v38 = vmul.f32 %v3437_v22, %v6273_v54 }
 0x5b4   :  { %v3440_v10 = vmul.f32 %v3437_v22, %v6275_v7  ;;  %v3441_v53 = vmul.f32 %v3437_v22, %v6277_v42  ;;  %v3442_v26 = vmul.f32 %v3437_v22, %v6283_v8  ;;  %v3443_v3 = vmul.f32 %v3437_v22, %v6287_v58 }
 0x5b5   :  { %v3450_v31 = vmul.f32 %v3840_v56, %v3438_v14  ;;  %v3456_v23 = vmul.f32 %v3840_v56, %v3444_v19  ;;  %v3457_v11 = vmul.f32 %v3840_v56, %v3445_v25  ;;  %v3451_v50 = vmul.f32 %v3840_v56, %v3439_v38 }
 0x5b6   :  { %v3452_v6 = vmul.f32 %v3840_v56, %v3440_v10  ;;  %v3453_v39 = vmul.f32 %v3840_v56, %v3441_v53  ;;  %v3454_v13 = vmul.f32 %v3840_v56, %v3442_v26  ;;  %v3455_v40 = vmul.f32 %v3840_v56, %v3443_v3 }
 0x5b7   :  { %v3462_v62 = vadd.f32 %v3841_v60, %v3450_v31  ;;  %v3468_v52 = vadd.f32 %v3841_v60, %v3456_v23  ;;  %v3463_v61 = vadd.f32 %v3841_v60, %v3451_v50  ;;  %v3469_v7 = vadd.f32 %v3841_v60, %v3457_v11 }
 0x5b8   :  { %v3464_v21 = vadd.f32 %v3841_v60, %v3452_v6  ;;  %v3465_v0 = vadd.f32 %v3841_v60, %v3453_v39  ;;  %v3466_v37 = vadd.f32 %v3841_v60, %v3454_v13  ;;  %v3467_v1 = vadd.f32 %v3841_v60, %v3455_v40 }
 0x5b9   :  { %vm3470_vm6 = vcmp.ge.f32.partialorder %v3462_v62, 0.0  ;;  %v3478_v43 = vmul.f32 0.01, %v3462_v62  ;;  %vm3476_vm7 = vcmp.ge.f32.partialorder %v3468_v52, 0.0  ;;  %v3484_v55 = vmul.f32 0.01, %v3468_v52 }
 0x5ba   :  { %v3479_v42 = vmul.f32 0.01, %v3463_v61  ;;  %v3485_v8 = vmul.f32 0.01, %v3469_v7  ;;  %vm3471_vm8 = vcmp.ge.f32.partialorder %v3463_v61, 0.0  ;;  %vm3477_vm9 = vcmp.ge.f32.partialorder %v3469_v7, 0.0 }
 0x5bb   :  { %v3486_v28 = vsel %vm3470_vm6, %v3462_v62, %v3478_v43  ;;  %v3492_v54 = vsel %vm3476_vm7, %v3468_v52, %v3484_v55  ;;  %v3480_v20 = vmul.f32 0.01, %v3464_v21  ;;  %vm3472_vm10 = vcmp.ge.f32.partialorder %v3464_v21, 0.0 }
 0x5bc   :  { %3530 = vmatmul.f32.vlgmr.msra.gmra.mxu2 %v3486_v28  ;;  %3548 = vmatmul.f32.vlgmr.msrb.gmra.mxu3 %v3492_v54  ;;  %v3487_v58 = vsel %vm3471_vm8, %v3463_v61, %v3479_v42  ;;  %v3493_v49 = vsel %vm3477_vm9, %v3469_v7, %v3485_v8  ;;  %v3481_v45 = vmul.f32 0.01, %v3465_v0  ;;  %vm3473_vm11 = vcmp.ge.f32.partialorder %v3465_v0, 0.0 }
 0x5bd   :  { %v3488_v46 = vsel %vm3472_vm10, %v3464_v21, %v3480_v20  ;;  %v3482_v4 = vmul.f32 0.01, %v3466_v37  ;;  %vm3474_vm12 = vcmp.ge.f32.partialorder %v3466_v37, 0.0  ;;  %v3483_v15 = vmul.f32 0.01, %v3467_v1 }
 0x5be   :  { %v3489_v35 = vsel %vm3473_vm11, %v3465_v0, %v3481_v45  ;;  %vm3475_vm13 = vcmp.ge.f32.partialorder %v3467_v1, 0.0 }
 0x5bf   :  { %v3490_v59 = vsel %vm3474_vm12, %v3466_v37, %v3482_v4  ;;  %v3491_v24 = vsel %vm3475_vm13, %v3467_v1, %v3483_v15 }
 0x5c4   :  { %3533 = vmatmul.f32.gmra.mxu2 %v3487_v58  ;;  %3551 = vmatmul.f32.gmra.mxu3 %v3493_v49 }
 0x5cc   :  { %3536 = vmatmul.f32.gmra.mxu2 %v3488_v46 }
 0x5d4   :  { %3539 = vmatmul.f32.gmra.mxu2 %v3489_v35 }
 0x5dc   :  { %3542 = vmatmul.f32.gmra.mxu2 %v3490_v59 }
 0x5e4   :  { %3545 = vmatmul.f32.gmra.mxu2 %v3491_v24 }
 0x63f   :  { %v3531_v48 = vpop.f32.mrf.mxu2  ;;  %v3549_v17 = vpop.f32.mrf.mxu3 }
 0x640   :  { %v3532_v63 = vadd.f32 %v3842_v57, %v3531_v48  ;;  %v3550_v12 = vadd.f32 %v3842_v57, %v3549_v17 }
 0x642   :  { %v3556_v2 = vsel %vm3555_vm14, %v3532_v63, -inf  ;;  %v3574_v9 = vsel %vm3555_vm14, %v3550_v12, -inf }
 0x643   :  { %3557 = vmax.xlane.f32.xlu0 %v3556_v2 }
 0x647   :  { %v3534_v47 = vpop.f32.mrf.mxu2  ;;  %v3552_v27 = vpop.f32.mrf.mxu3 }
 0x648   :  { %v3535_v16 = vadd.f32 %v3842_v57, %v3534_v47  ;;  %v3553_v32 = vadd.f32 %v3842_v57, %v3552_v27 }
 0x64a   :  { %v3559_v18 = vsel %vm3555_vm14, %v3535_v16, -inf  ;;  %v3577_v56 = vsel %vm3555_vm14, %v3553_v32, -inf }
 0x64b   :  { %3560 = vmax.xlane.f32.xlu0 %v3559_v18 }
 0x64f   :  { %v3537_v51 = vpop.f32.mrf.mxu2 }
 0x650   :  { %v3538_v44 = vadd.f32 %v3842_v57, %v3537_v51 }
 0x652   :  { %v3562_v34 = vsel %vm3555_vm14, %v3538_v44, -inf }
 0x653   :  { %3563 = vmax.xlane.f32.xlu1 %v3562_v34  ;;  %3575 = vmax.xlane.f32.xlu0 %v3574_v9 }
 0x657   :  { %v3540_v5 = vpop.f32.mrf.mxu2 }
 0x658   :  { %v3541_v41 = vadd.f32 %v3842_v57, %v3540_v5 }
 0x65a   :  { %v3565_v29 = vsel %vm3555_vm14, %v3541_v41, -inf }
 0x65b   :  { %3566 = vmax.xlane.f32.xlu1 %v3565_v29 }
 0x65f   :  { %v3543_v33 = vpop.f32.mrf.mxu2 }
 0x660   :  { %v3544_v30 = vadd.f32 %v3842_v57, %v3543_v33 }
 0x662   :  { %v3568_v36 = vsel %vm3555_vm14, %v3544_v30, -inf }
 0x663   :  { %3569 = vmax.xlane.f32.xlu2 %v3568_v36  ;;  %3578 = vmax.xlane.f32.xlu1 %v3577_v56 }
 0x667   :  { %v3546_v22 = vpop.f32.mrf.mxu2 }
 0x668   :  { %v3547_v25 = vadd.f32 %v3842_v57, %v3546_v22 }
 0x66a   :  { %v3571_v14 = vsel %vm3555_vm14, %v3547_v25, -inf }
 0x66b   :  { %3572 = vmax.xlane.f32.xlu2 %v3571_v14 }
 0x6b6   :  { %v3558_v60 = vpop.xlane.xlu0 %3557 }
 0x6b7   :  { %v3580_v19 = vsub.f32 %v3532_v63, %v3558_v60 }
 0x6b9   :  { %v3588_v38 = vmul.f32 1.442695, %v3580_v19 }
 0x6bb   :  { %3859 = vpow2.f32 %v3588_v38 }
 0x6be   :  { %v3561_v10 = vpop.xlane.xlu0 %3560 }
 0x6bf   :  { %v3581_v53 = vsub.f32 %v3535_v16, %v3561_v10 }
 0x6c1   :  { %v6368_v26 = vpop.eup %3859  ;;  %v3590_v3 = vmul.f32 1.442695, %v3581_v53 }
 0x6c2   :  { %v3604_v31 = vsel %vm3555_vm14, %v6368_v26, 0.0 }
 0x6c3   :  { %3861 = vpow2.f32 %v3590_v3  ;;  %3605 = vadd.xlane.f32.xlu2 %v3604_v31 }
 0x6c6   :  { %v3564_v23 = vpop.xlane.xlu1 %3563  ;;  %v3576_v43 = vpop.xlane.xlu0 %3575 }
 0x6c7   :  { %v3582_v11 = vsub.f32 %v3538_v44, %v3564_v23  ;;  %v3586_v61 = vsub.f32 %v3550_v12, %v3576_v43 }
 0x6c9   :  { %v6372_v62 = vpop.eup %3861  ;;  %v3592_v52 = vmul.f32 1.442695, %v3582_v11  ;;  %v3600_v8 = vmul.f32 1.442695, %v3586_v61 }
 0x6ca   :  { %v3607_v50 = vsel %vm3555_vm14, %v6372_v62, 0.0 }
 0x6cb   :  { %3863 = vpow2.f32 %v3592_v52  ;;  %3608 = vadd.xlane.f32.xlu0 %v3607_v50 }
 0x6ce   :  { %v3567_v55 = vpop.xlane.xlu1 %3566 }
 0x6cf   :  { %v3583_v28 = vsub.f32 %v3541_v41, %v3567_v55 }
 0x6d1   :  { %v6376_v54 = vpop.eup %3863  ;;  %v3594_v7 = vmul.f32 1.442695, %v3583_v28 }
 0x6d2   :  { %v3610_v42 = vsel %vm3555_vm14, %v6376_v54, 0.0 }
 0x6d3   :  { %3865 = vpow2.f32 %v3594_v7  ;;  %3611 = vadd.xlane.f32.xlu1 %v3610_v42 }
 0x6d4   :  { %3867 = vpow2.f32 %v3600_v8 }
 0x6d6   :  { %v3570_v6 = vpop.xlane.xlu2 %3569  ;;  %v3579_v58 = vpop.xlane.xlu1 %3578 }
 0x6d7   :  { %v3584_v49 = vsub.f32 %v3544_v30, %v3570_v6  ;;  %v3587_v39 = vsub.f32 %v3553_v32, %v3579_v58 }
 0x6d9   :  { %v6380_v21 = vpop.eup %3865  ;;  %v3596_v20 = vmul.f32 1.442695, %v3584_v49  ;;  %v3602_v0 = vmul.f32 1.442695, %v3587_v39 }
 0x6da   :  { %v3613_v46 = vsel %vm3555_vm14, %v6380_v21, 0.0  ;;  %v6384_v13 = vpop.eup %3867 }
 0x6db   :  { %3869 = vpow2.f32 %v3596_v20  ;;  %3614 = vadd.xlane.f32.xlu2 %v3613_v46  ;;  %v3622_v59 = vsel %vm3555_vm14, %v6384_v13, 0.0 }
 0x6dc   :  { %3871 = vpow2.f32 %v3602_v0 }
 0x6de   :  { %v3573_v45 = vpop.xlane.xlu2 %3572 }
 0x6df   :  { %v3585_v35 = vsub.f32 %v3547_v25, %v3573_v45 }
 0x6e1   :  { %v6386_v37 = vpop.eup %3869  ;;  %v3598_v4 = vmul.f32 1.442695, %v3585_v35 }
 0x6e2   :  { %v3616_v40 = vsel %vm3555_vm14, %v6386_v37, 0.0  ;;  %v6392_v1 = vpop.eup %3871 }
 0x6e3   :  { %3873 = vpow2.f32 %v3598_v4  ;;  %3617 = vadd.xlane.f32.xlu0 %v3616_v40  ;;  %3623 = vadd.xlane.f32.xlu2 %v3622_v59  ;;  %v3625_v57 = vsel %vm3555_vm14, %v6392_v1, 0.0 }
 0x6e9   :  { %v6394_v15 = vpop.eup %3873 }
 0x6ea   :  { %v3619_v24 = vsel %vm3555_vm14, %v6394_v15, 0.0 }
 0x6eb   :  { %3620 = vadd.xlane.f32.xlu1 %v3619_v24  ;;  %3626 = vadd.xlane.f32.xlu0 %v3625_v57 }
 0x736   :  { %v3606_v48 = vpop.xlane.xlu2 %3605 }
 0x737   :  { %3875 = vrcp.f32 %v3606_v48  ;;  %v3639_v18 = vand.u32 2147483648, %v3606_v48  ;;  %v3637_v12 = vand.u32 2147483647, %v3606_v48  ;;  %vm3633_vm0 = vweird.f32 %v3606_v48 }
 0x739   :  { %v3640_v34 = vor.u32 1.1754944e-38, %v3639_v18  ;;  %vm3638_vm2 = vcmp.eq.f32.partialorder %v3637_v12, 8.507059e+37 }
 0x73d   :  { %v3876_v63 = vpop.eup %3875 }
 0x73e   :  { %v3629_v2 = vmul.f32 %v3876_v63, %v3606_v48  ;;  %v3609_v47 = vpop.xlane.xlu0 %3608  ;;  %vm3634_vm15 = vweird.f32 %v3876_v63 }
 0x73f   :  { %3877 = vrcp.f32 %v3609_v47  ;;  %vm3635_vm1 = vmor %vm3633_vm0, %vm3634_vm15  ;;  %v3654_v33 = vand.u32 2147483648, %v3609_v47  ;;  %v3652_v36 = vand.u32 2147483647, %v3609_v47  ;;  %vm3648_vm4 = vweird.f32 %v3609_v47 }
 0x740   :  { %v3630_v16 = vsub.f32 1.0, %v3629_v2 }
 0x741   :  { %v3655_v25 = vor.u32 1.1754944e-38, %v3654_v33  ;;  %vm3653_vm6 = vcmp.eq.f32.partialorder %v3652_v36, 8.507059e+37 }
 0x742   :  { %v3631_v17 = vmul.f32 %v3876_v63, %v3630_v16 }
 0x744   :  { %v3632_v51 = vadd.f32 %v3876_v63, %v3631_v17 }
 0x745   :  { %v3878_v44 = vpop.eup %3877 }
 0x746   :  { %v3636_v9 = vsel %vm3635_vm1, %v3876_v63, %v3632_v51  ;;  %v3644_v5 = vmul.f32 %v3878_v44, %v3609_v47  ;;  %v3612_v41 = vpop.xlane.xlu1 %3611  ;;  %vm3649_vm3 = vweird.f32 %v3878_v44 }
 0x747   :  { %v3641_v29 = vsel %vm3638_vm2, %v3640_v34, %v3636_v9  ;;  %3879 = vrcp.f32 %v3612_v41  ;;  %vm3650_vm5 = vmor %vm3648_vm4, %vm3649_vm3  ;;  %v3667_v31 = vand.u32 2147483647, %v3612_v41  ;;  %vm3663_vm8 = vweird.f32 %v3612_v41 }
 0x748   :  { %v3642_v27 = vmul.f32 %v6368_v26, %v3641_v29  ;;  %v3645_v32 = vsub.f32 1.0, %v3644_v5  ;;  %v3669_v26 = vand.u32 2147483648, %v3612_v41 }
 0x749   :  { %vm3668_vm10 = vcmp.eq.f32.partialorder %v3667_v31, 8.507059e+37 }
 0x74a   :  { %3748 = vst.msk [vmem:[%s6462_s15] sm:$0xff] %vm3555_vm14, %v3642_v27  ;;  %v3646_v30 = vmul.f32 %v3878_v44, %v3645_v32  ;;  %v3670_v52 = vor.u32 1.1754944e-38, %v3669_v26 }
 0x74c   :  { %v3647_v56 = vadd.f32 %v3878_v44, %v3646_v30 }
 0x74d   :  { %v3880_v22 = vpop.eup %3879 }
 0x74e   :  { %v3651_v14 = vsel %vm3650_vm5, %v3878_v44, %v3647_v56  ;;  %v3659_v60 = vmul.f32 %v3880_v22, %v3612_v41  ;;  %v3615_v19 = vpop.xlane.xlu2 %3614  ;;  %vm3664_vm7 = vweird.f32 %v3880_v22 }
 0x74f   :  { %v3656_v38 = vsel %vm3653_vm6, %v3655_v25, %v3651_v14  ;;  %3881 = vrcp.f32 %v3615_v19  ;;  %vm3665_vm9 = vmor %vm3663_vm8, %vm3664_vm7  ;;  %v3684_v42 = vand.u32 2147483648, %v3615_v19  ;;  %v3682_v6 = vand.u32 2147483647, %v3615_v19 }
 0x750   :  { %v3657_v10 = vmul.f32 %v6372_v62, %v3656_v38  ;;  %v3660_v53 = vsub.f32 1.0, %v3659_v60  ;;  %vm3678_vm12 = vweird.f32 %v3615_v19 }
 0x751   :  { %v3685_v20 = vor.u32 1.1754944e-38, %v3684_v42  ;;  %vm3683_vm15 = vcmp.eq.f32.partialorder %v3682_v6, 8.507059e+37 }
 0x752   :  { %3749 = vst.msk [vmem:[%s6462_s15 + $0x8] sm:$0xff] %vm3555_vm14, %v3657_v10  ;;  %v3661_v3 = vmul.f32 %v3880_v22, %v3660_v53 }
 0x754   :  { %v3662_v23 = vadd.f32 %v3880_v22, %v3661_v3 }
 0x755   :  { %v3882_v11 = vpop.eup %3881 }
 0x756   :  { %v3666_v50 = vsel %vm3665_vm9, %v3880_v22, %v3662_v23  ;;  %v3674_v43 = vmul.f32 %v3882_v11, %v3615_v19  ;;  %v3624_v55 = vpop.xlane.xlu2 %3623  ;;  %v3618_v62 = vpop.xlane.xlu0 %3617  ;;  %vm3679_vm11 = vweird.f32 %v3882_v11 }
 0x757   :  { %v3671_v28 = vsel %vm3668_vm10, %v3670_v52, %v3666_v50  ;;  %3883 = vrcp.f32 %v3624_v55  ;;  %vm3680_vm13 = vmor %vm3678_vm12, %vm3679_vm11  ;;  %v3729_v24 = vand.u32 2147483648, %v3624_v55  ;;  %v3727_v63 = vand.u32 2147483647, %v3624_v55 }
 0x758   :  { %v3672_v61 = vmul.f32 %v6376_v54, %v3671_v28  ;;  %v3675_v7 = vsub.f32 1.0, %v3674_v43  ;;  %3885 = vrcp.f32 %v3618_v62  ;;  %v3699_v2 = vand.u32 2147483648, %v3618_v62 }
 0x759   :  { %v3697_v16 = vand.u32 2147483647, %v3618_v62  ;;  %vm3723_vm2 = vweird.f32 %v3624_v55  ;;  %v3730_v17 = vor.u32 1.1754944e-38, %v3729_v24  ;;  %vm3693_vm4 = vweird.f32 %v3618_v62 }
 0x75a   :  { %3750 = vst.msk [vmem:[%s6462_s15 + $0x10] sm:$0xff] %vm3555_vm14, %v3672_v61  ;;  %v3676_v8 = vmul.f32 %v3882_v11, %v3675_v7  ;;  %vm3728_vm5 = vcmp.eq.f32.partialorder %v3727_v63, 8.507059e+37  ;;  %v3700_v44 = vor.u32 1.1754944e-38, %v3699_v2 }
 0x75b   :  { %vm3698_vm7 = vcmp.eq.f32.partialorder %v3697_v16, 8.507059e+37 }
 0x75c   :  { %v3677_v58 = vadd.f32 %v3882_v11, %v3676_v8 }
 0x75d   :  { %v3884_v49 = vpop.eup %3883 }
 0x75e   :  { %v3886_v39 = vpop.eup %3885  ;;  %v3681_v46 = vsel %vm3680_vm13, %v3882_v11, %v3677_v58  ;;  %v3719_v54 = vmul.f32 %v3884_v49, %v3624_v55  ;;  %v3621_v0 = vpop.xlane.xlu1 %3620  ;;  %vm3724_vm0 = vweird.f32 %v3884_v49 }
 0x75f   :  { %v6415_v45 = vpop.xlane.xlu0 %3626  ;;  %v3686_v35 = vsel %vm3683_vm15, %v3685_v20, %v3681_v46  ;;  %v3689_v4 = vmul.f32 %v3886_v39, %v3618_v62  ;;  %3887 = vrcp.f32 %v3621_v0  ;;  %vm3694_vm1 = vweird.f32 %v3886_v39  ;;  %vm3725_vm3 = vmor %vm3723_vm2, %vm3724_vm0 }
 0x760   :  { %v3687_v40 = vmul.f32 %v6380_v21, %v3686_v35  ;;  %v3720_v59 = vsub.f32 1.0, %v3719_v54  ;;  %3889 = vrcp.f32 %v6415_v45  ;;  %vm3695_vm6 = vmor %vm3693_vm4, %vm3694_vm1  ;;  %v3714_v36 = vand.u32 2147483648, %v3621_v0 }
 0x761   :  { %v3690_v57 = vsub.f32 1.0, %v3689_v4  ;;  %v3712_v22 = vand.u32 2147483647, %v3621_v0  ;;  %vm3708_vm9 = vweird.f32 %v3621_v0  ;;  %v3742_v60 = vand.u32 2147483647, %v6415_v45 }
 0x762   :  { %3751 = vst.msk [vmem:[%s6462_s15 + $0x18] sm:$0xff] %vm3555_vm14, %v3687_v40  ;;  %v3721_v48 = vmul.f32 %v3884_v49, %v3720_v59  ;;  %v3715_v19 = vor.u32 1.1754944e-38, %v3714_v36  ;;  %vm3738_vm13 = vweird.f32 %v6415_v45 }
 0x763   :  { %v3691_v47 = vmul.f32 %v3886_v39, %v3690_v57  ;;  %vm3713_vm12 = vcmp.eq.f32.partialorder %v3712_v22, 8.507059e+37  ;;  %vm3743_vm0 = vcmp.eq.f32.partialorder %v3742_v60, 8.507059e+37 }
 0x764   :  { %v3722_v18 = vadd.f32 %v3884_v49, %v3721_v48 }
 0x765   :  { %v3888_v21 = vpop.eup %3887  ;;  %v3692_v12 = vadd.f32 %v3886_v39, %v3691_v47 }
 0x766   :  { %v3726_v51 = vsel %vm3725_vm3, %v3884_v49, %v3722_v18  ;;  %v3704_v34 = vmul.f32 %v3888_v21, %v3621_v0  ;;  %v3890_v9 = vpop.eup %3889  ;;  %vm3709_vm8 = vweird.f32 %v3888_v21 }
 0x767   :  { %v3731_v5 = vsel %vm3728_vm5, %v3730_v17, %v3726_v51  ;;  %v3696_v41 = vsel %vm3695_vm6, %v3886_v39, %v3692_v12  ;;  %v3734_v33 = vmul.f32 %v3890_v9, %v6415_v45  ;;  %vm3739_vm10 = vweird.f32 %v3890_v9  ;;  %vm3710_vm11 = vmor %vm3708_vm9, %vm3709_vm8 }
 0x768   :  { %v3732_v29 = vmul.f32 %v6384_v13, %v3731_v5  ;;  %v3701_v27 = vsel %vm3698_vm7, %v3700_v44, %v3696_v41  ;;  %v3705_v32 = vsub.f32 1.0, %v3704_v34  ;;  %v3744_v13 = vand.u32 2147483648, %v6415_v45  ;;  %vm3740_vm15 = vmor %vm3738_vm13, %vm3739_vm10 }
 0x769   :  { %v3702_v30 = vmul.f32 %v6386_v37, %v3701_v27  ;;  %v3735_v25 = vsub.f32 1.0, %v3734_v33 }
 0x76a   :  { %3754 = vst.msk [vmem:[%s6462_s15 + $0x30] sm:$0xff] %vm3555_vm14, %v3732_v29  ;;  %v3706_v56 = vmul.f32 %v3888_v21, %v3705_v32  ;;  %v3745_v26 = vor.u32 1.1754944e-38, %v3744_v13 }
 0x76b   :  { %3752 = vst.msk [vmem:[%s6462_s15 + $0x20] sm:$0xff] %vm3555_vm14, %v3702_v30  ;;  %v3736_v37 = vmul.f32 %v3890_v9, %v3735_v25 }
 0x76c   :  { %v3707_v14 = vadd.f32 %v3888_v21, %v3706_v56 }
 0x76d   :  { %v3737_v10 = vadd.f32 %v3890_v9, %v3736_v37 }
 0x76e   :  { %v3711_v38 = vsel %vm3710_vm11, %v3888_v21, %v3707_v14 }
 0x76f   :  { %v3716_v53 = vsel %vm3713_vm12, %v3715_v19, %v3711_v38  ;;  %v3741_v31 = vsel %vm3740_vm15, %v3890_v9, %v3737_v10 }
 0x770   :  { %v3717_v3 = vmul.f32 %v6394_v15, %v3716_v53  ;;  %v3746_v23 = vsel %vm3743_vm0, %v3745_v26, %v3741_v31 }
 0x771   :  { %v3747_v11 = vmul.f32 %v6392_v1, %v3746_v23 }
 0x772   :  { %3753 = vst.msk [vmem:[%s6462_s15 + $0x28] sm:$0xff] %vm3555_vm14, %v3717_v3 }
 0x773   :  { %3755 = vst.msk [vmem:[%s6462_s15 + $0x38] sm:$0xff] %vm3555_vm14, %v3747_v11 }
 0x774   :  { %3760 = vsyncpa [#allocation3], 1 }
 0x775   :  { %3761 = vsyncpa [#allocation5], 1 }
 0x776   :  { %3762 = vsyncpa [#allocation8], 1 }
 0x777   :  { %3763 = vsyncpa [#allocation11], 1 }
 0x778   :  { %3764 = vsyncpa [#allocation14], 1 }
 0x779   :  { %3765 = vsyncpa [#allocation17], 1 }
 0x77a   :  { %3766 = vsyncpa [#allocation20], 1 }
 0x77b   :  { %3767 = vsyncpa [#allocation23], 1 }

</bundles_post_ra>
